<compile_context>
chip_gen: v5e
topology: v5e:2x2
jax: 0.10.0
libtpu: 0.0.40
codegen_flags: <defaults>
</compile_context>

<pallas_src>
import numpy as np

import jax
import jax.numpy as jnp
from jax import lax
from jax.experimental import pallas as pl
from jax.experimental.pallas import tpu as pltpu


def _sigmoid(x):
    # sigmoid(x) == 0.5*(tanh(x/2)+1): one EUP launch instead of exp+reciprocal.
    return 0.5 * (jnp.tanh(0.5 * x) + 1.0)


# ----------------------------------------------------------------------------
# Fused kernel (one batch block per grid step):
#   conv(1,3)+bias (structured matmul) -> SiLU -> MaxPool(1,2)
#   -> fused 2-layer LSTM (skewed recurrence, gate cols [i0 i1 f0 f1 o0 o1 g0 g1])
#   -> final Linear on the last layer-1 hidden state.
# Input rows are t-major within the block: row = t*Bb + b.
# ----------------------------------------------------------------------------
def fused_kernel(x_ref, cm_ref, cb_ref, wih_ref, wrec_ref, bias_ref,
                 wfc_ref, bfc_ref, out_ref):
    TB = x_ref.shape[0]
    F = cm_ref.shape[1] // 2            # 32 * (W // 2)
    Hd = wrec_ref.shape[0] // 2
    Bb = out_ref.shape[0]
    T = TB // Bb

    # --- Conv2d(1,3) + bias as ONE matmul; even/odd pool candidates are the
    #     two contiguous F-wide column halves (lane-dense, (c, w') order).
    g = jnp.dot(x_ref[...], cm_ref[...],
                preferred_element_type=jnp.float32) + cb_ref[...]
    ge = g[:, :F]
    go = g[:, F:]
    seq = jnp.maximum(ge * jax.nn.sigmoid(ge),      # SiLU + MaxPool2d((1,2))
                      go * jax.nn.sigmoid(go))      # (T*Bb, F)

    # --- Layer-0 input projection batched over all timesteps; both layers'
    #     biases are baked into the fused 8*Hd gate layout (layer-1 input
    #     columns of wih are zero, so those lanes carry exactly b1).
    g_all = jnp.dot(seq, wih_ref[...],
                    preferred_element_type=jnp.float32) + bias_ref[...]  # (T*Bb, 8Hd)

    def step(gates, c_both):                        # gates: (Bb, 8*Hd)
        sig = _sigmoid(gates[:, :6 * Hd])           # one sigmoid, both layers
        i_b = sig[:, 0:2 * Hd]                      # [i0 | i1]
        f_b = sig[:, 2 * Hd:4 * Hd]                 # [f0 | f1]
        o_b = sig[:, 4 * Hd:6 * Hd]                 # [o0 | o1]
        g_b = jnp.tanh(gates[:, 6 * Hd:])           # [g0 | g1]
        c_new = f_b * c_both + i_b * g_b            # [c0 | c1]
        h_new = o_b * jnp.tanh(c_new)               # [h0 | h1] = next matmul LHS
        return h_new, c_new

    # --- Skewed fused recurrence. Invariant at the start of step s:
    #       h_b = [h0_{s-1} | h1_{s-2}],  c_b = [c0_{s-1} | c1_{s-2}].
    # s = 0: previous states are zero, so the recurrent matmul is skipped and
    # the fictitious layer-1 half (which would be driven by b1 alone) is zeroed.
    h_b, c_b = step(g_all[0:Bb, :], jnp.zeros((Bb, 2 * Hd), jnp.float32))
    l0_mask = (lax.broadcasted_iota(jnp.int32, (1, 2 * Hd), 1) < Hd
               ).astype(jnp.float32)
    h_b = h_b * l0_mask
    c_b = c_b * l0_mask

    # s = 1 .. T-1: one (Bb, 2Hd) @ (2Hd, 8Hd) matmul per step covers both
    # layers' recurrent terms (layer-0 step s and layer-1 step s-1).
    for s in range(1, T):                           # static unroll; T is small
        gates = g_all[s * Bb:(s + 1) * Bb, :] + jnp.dot(
            h_b, wrec_ref[...], preferred_element_type=jnp.float32)
        h_b, c_b = step(gates, c_b)

    # s = T: only layer-1's last step is real (layer-0 has no input at time T);
    # the bias row stands in for the missing g_all block, layer-0 half discarded.
    gates = bias_ref[...] + jnp.dot(h_b, wrec_ref[...],
                                    preferred_element_type=jnp.float32)
    h_b, _ = step(gates, c_b)
    h_last = h_b[:, Hd:2 * Hd]                      # layer-1 hidden, last step

    # --- Final Linear.
    out_ref[...] = jnp.dot(h_last, wfc_ref[...],
                           preferred_element_type=jnp.float32) + bfc_ref[...]


# ----------------------------------------------------------------------------
# Parameter construction (deterministic, PyTorch-default-like uniform init).
# ----------------------------------------------------------------------------
def init_params(key, input_shape, num_classes=10, lstm_hidden_size=64):
    # lstm_num_layers is fixed to 2 (the module default).
    cin, h, w = input_shape
    c_out = 32
    feat = c_out * (w // 2)
    hd = lstm_hidden_size
    keys = jax.random.split(key, 12)

    def u(k, shape, bound):
        return jax.random.uniform(k, shape, jnp.float32, -bound, bound)

    kc = 1.0 / (cin * 1 * 3) ** 0.5
    kl = 1.0 / hd ** 0.5
    return {
        "conv_w": u(keys[0], (c_out, cin, 1, 3), kc),
        "conv_b": u(keys[1], (c_out,), kc),
        "w_ih_l0": u(keys[2], (4 * hd, feat), kl),
        "w_hh_l0": u(keys[3], (4 * hd, hd), kl),
        "b_ih_l0": u(keys[4], (4 * hd,), kl),
        "b_hh_l0": u(keys[5], (4 * hd,), kl),
        "w_ih_l1": u(keys[6], (4 * hd, hd), kl),
        "w_hh_l1": u(keys[7], (4 * hd, hd), kl),
        "b_ih_l1": u(keys[8], (4 * hd,), kl),
        "b_hh_l1": u(keys[9], (4 * hd,), kl),
        "fc_w": u(keys[10], (num_classes, hd), kl),
        "fc_b": u(keys[11], (num_classes,), kl),
    }


# ----------------------------------------------------------------------------
# Forward wrapper: host-side weight re-packing (tap matrix, fused gate layout,
# block recurrent matrix) + one pallas_call over batch blocks.
# ----------------------------------------------------------------------------
def mixed_memory_net_forward(params, x, *, batch_block=8):
    B, Cin, H, W = x.shape              # NCHW, like PyTorch
    C_out = 32
    Wp = W // 2                         # MaxPool2d((1,2)) floors, like PyTorch
    F = C_out * Wp
    W2 = W + 2                          # width after padding (0,1)
    Hd = params["w_hh_l0"].shape[1]
    ncls = params["fc_w"].shape[0]
    T = H

    Bb = batch_block                    # per-block batch (sublane-tile aligned)
    Bp = ((B + Bb - 1) // Bb) * Bb
    n_blk = Bp // Bb

    # Tap-selection tensor S[j, k, s, w'] = 1 iff padded column s == 2*w'+j+k
    # (j = pool candidate, k = conv tap). Pure structure -> host numpy.
    S = np.zeros((2, 3, W2, Wp), np.float32)
    for j in range(2):
        for k in range(3):
            for wpp in range(Wp):
                S[j, k, 2 * wpp + j + k, wpp] = 1.0
    wgc = params["conv_w"][:, :, 0, :]                        # (C_out, Cin, 3)
    cm = jnp.einsum("ock,jksw->csjow", wgc, jnp.asarray(S)).reshape(Cin * W2, 2 * F)
    cb = jnp.tile(jnp.repeat(params["conv_b"], Wp), 2)[None, :]      # (1, 2F)

    # Padded input (conv width padding + batch padding to a multiple of Bb);
    # rows laid out batch-block-major, then time, then in-block batch.
    xpad = jnp.pad(x, ((0, Bp - B), (0, 0), (0, 0), (1, 1)))
    xk = jnp.transpose(
        xpad.reshape(n_blk, Bb, Cin, H, W2), (0, 3, 1, 2, 4)
    ).reshape(n_blk * T * Bb, Cin * W2)

    # Fused gate packing: columns [i0 i1 f0 f1 o0 o1 g0 g1], each Hd wide.
    def split4(w):
        return jnp.split(w, 4, axis=0)                        # PyTorch order i,f,g,o

    wi0, wf0, wg0, wo0 = split4(params["w_ih_l0"])            # (Hd, F)
    hi0, hf0, hg0, ho0 = split4(params["w_hh_l0"])            # (Hd, Hd)
    ii1, if1, ig1, io1 = split4(params["w_ih_l1"])            # (Hd, Hd)
    hi1, hf1, hg1, ho1 = split4(params["w_hh_l1"])            # (Hd, Hd)

    ZF = jnp.zeros((F, Hd), jnp.float32)
    ZH = jnp.zeros((Hd, Hd), jnp.float32)
    # Batched layer-0 input projection weight (layer-1 columns zero -> carry b1).
    wih_f = jnp.concatenate(
        [wi0.T, ZF, wf0.T, ZF, wo0.T, ZF, wg0.T, ZF], axis=1)        # (F, 8Hd)
    # Fused recurrent block matrix: rows [h0 | h1] -> both layers' gate columns.
    w_rec = jnp.concatenate([
        jnp.concatenate([hi0.T, ii1.T, hf0.T, if1.T,
                         ho0.T, io1.T, hg0.T, ig1.T], axis=1),
        jnp.concatenate([ZH, hi1.T, ZH, hf1.T,
                         ZH, ho1.T, ZH, hg1.T], axis=1),
    ], axis=0)                                                       # (2Hd, 8Hd)

    b0 = params["b_ih_l0"] + params["b_hh_l0"]
    b1 = params["b_ih_l1"] + params["b_hh_l1"]
    bi0, bf0, bg0, bo0 = jnp.split(b0, 4)
    bi1, bf1, bg1, bo1 = jnp.split(b1, 4)
    bias_f = jnp.concatenate(
        [bi0, bi1, bf0, bf1, bo0, bo1, bg0, bg1])[None, :]           # (1, 8Hd)

    wfc = params["fc_w"].T
    bfc = params["fc_b"][None, :]

    out = pl.pallas_call(
        fused_kernel,
        out_shape=jax.ShapeDtypeStruct((Bp, ncls), jnp.float32),
        grid=(n_blk,),
        in_specs=[
            pl.BlockSpec((T * Bb, Cin * W2), lambda i: (i, 0)),      # per-block x
            pl.BlockSpec((Cin * W2, 2 * F), lambda i: (0, 0)),       # weights:
            pl.BlockSpec((1, 2 * F), lambda i: (0, 0)),              #   constant
            pl.BlockSpec((F, 8 * Hd), lambda i: (0, 0)),             #   block idx
            pl.BlockSpec((2 * Hd, 8 * Hd), lambda i: (0, 0)),        #   -> DMA'd
            pl.BlockSpec((1, 8 * Hd), lambda i: (0, 0)),             #   once
            pl.BlockSpec((Hd, ncls), lambda i: (0, 0)),
            pl.BlockSpec((1, ncls), lambda i: (0, 0)),
        ],
        out_specs=pl.BlockSpec((Bb, ncls), lambda i: (i, 0)),
        compiler_params=pltpu.CompilerParams(
            dimension_semantics=("parallel",)),                      # megacore/v7x
    )(xk, cm, cb, wih_f, w_rec, bias_f, wfc, bfc)
    return out[:B]


# ----------------------------------------------------------------------------
# Pure-JAX reference (mirrors the PyTorch forward) for a correctness check.
# ----------------------------------------------------------------------------
def reference_forward(params, x):
    B, Cin, H, W = x.shape
    xp = jnp.pad(x, ((0, 0), (0, 0), (0, 0), (1, 1)))
    w = params["conv_w"]
    conv = jnp.zeros((B, 32, H, W), jnp.float32)
    for k in range(3):
        conv = conv + jnp.einsum("bchw,oc->bohw", xp[..., k:k + W], w[:, :, 0, k])
    conv = conv + params["conv_b"][None, :, None, None]
    conv = conv * jax.nn.sigmoid(conv)                                  # SiLU
    Wp = W // 2
    pooled = jnp.maximum(conv[..., 0:2 * Wp:2], conv[..., 1:2 * Wp:2])  # (B,32,H,Wp)
    seq = jnp.transpose(pooled, (0, 2, 1, 3)).reshape(B, H, 32 * Wp)
    Hd = params["w_hh_l0"].shape[1]

    def cell(x_t, h, c, wih, whh, bih, bhh):
        gates = x_t @ wih.T + bih + h @ whh.T + bhh
        i, f, g, o = jnp.split(gates, 4, axis=-1)
        c = jax.nn.sigmoid(f) * c + jax.nn.sigmoid(i) * jnp.tanh(g)
        h = jax.nn.sigmoid(o) * jnp.tanh(c)
        return h, c

    h1 = jnp.zeros((B, Hd)); c1 = jnp.zeros((B, Hd))
    h2 = jnp.zeros((B, Hd)); c2 = jnp.zeros((B, Hd))
    for t in range(H):
        h1, c1 = cell(seq[:, t, :], h1, c1, params["w_ih_l0"], params["w_hh_l0"],
                      params["b_ih_l0"], params["b_hh_l0"])
        h2, c2 = cell(h1, h2, c2, params["w_ih_l1"], params["w_hh_l1"],
                      params["b_ih_l1"], params["b_hh_l1"])
    return h2 @ params["fc_w"].T + params["fc_b"]


if __name__ == "__main__":
    # Small shapes consistent with the module: batch=2, channels=1, H=8, W=16.
    B, Cin, H, W = 2, 1, 8, 16
    num_classes, hidden = 10, 64

    key = jax.random.PRNGKey(0)
    kp, kx = jax.random.split(key)
    params = init_params(kp, (Cin, H, W), num_classes=num_classes,
                         lstm_hidden_size=hidden)
    x = jax.random.normal(kx, (B, Cin, H, W), jnp.float32)

    fwd = jax.jit(mixed_memory_net_forward)
    out = jax.block_until_ready(fwd(params, x))
    ref = jax.block_until_ready(reference_forward(params, x))

    assert out.shape == (B, num_classes)
    assert bool(jnp.all(jnp.isfinite(out)))
    assert bool(jnp.allclose(out, ref, atol=1e-4, rtol=1e-4))

    print("KERNEL_OK")
</pallas_src>

<mosaic_0001>
module attributes {stable_mosaic.version = 11 : i64} {
  func.func @fused_kernel(%arg0: i32, %arg1: memref<64x18xf32, #tpu.memory_space<vmem>>, %arg2: memref<18x512xf32, #tpu.memory_space<vmem>>, %arg3: memref<1x512xf32, #tpu.memory_space<vmem>>, %arg4: memref<256x512xf32, #tpu.memory_space<vmem>>, %arg5: memref<128x512xf32, #tpu.memory_space<vmem>>, %arg6: memref<1x512xf32, #tpu.memory_space<vmem>>, %arg7: memref<64x10xf32, #tpu.memory_space<vmem>>, %arg8: memref<1x10xf32, #tpu.memory_space<vmem>>, %arg9: memref<8x10xf32, #tpu.memory_space<vmem>>) attributes {dimension_semantics = [#tpu.dimension_semantics<parallel>], iteration_bounds = array<i64: 1>, scalar_prefetch = 0 : i64, scratch_operands = 0 : i64, tpu.core_type = #tpu.core_type<tc>, window_params = [{transform_indices = @transform_0, window_bounds = array<i64: 64, 18>}, {pipeline_mode = #tpu.pipeline_mode<synchronous>, transform_indices = @transform_1, window_bounds = array<i64: 18, 512>}, {pipeline_mode = #tpu.pipeline_mode<synchronous>, transform_indices = @transform_2, window_bounds = array<i64: 1, 512>}, {pipeline_mode = #tpu.pipeline_mode<synchronous>, transform_indices = @transform_3, window_bounds = array<i64: 256, 512>}, {pipeline_mode = #tpu.pipeline_mode<synchronous>, transform_indices = @transform_4, window_bounds = array<i64: 128, 512>}, {pipeline_mode = #tpu.pipeline_mode<synchronous>, transform_indices = @transform_5, window_bounds = array<i64: 1, 512>}, {pipeline_mode = #tpu.pipeline_mode<synchronous>, transform_indices = @transform_6, window_bounds = array<i64: 64, 10>}, {pipeline_mode = #tpu.pipeline_mode<synchronous>, transform_indices = @transform_7, window_bounds = array<i64: 1, 10>}, {transform_indices = @transform_8, window_bounds = array<i64: 8, 10>}]} {
    %c0 = arith.constant 0 : index
    %c0_0 = arith.constant 0 : index
    %0 = vector.load %arg1[%c0, %c0_0] : memref<64x18xf32, #tpu.memory_space<vmem>>, vector<64x18xf32>
    %c0_1 = arith.constant 0 : index
    %c0_2 = arith.constant 0 : index
    %1 = vector.load %arg2[%c0_1, %c0_2] : memref<18x512xf32, #tpu.memory_space<vmem>>, vector<18x512xf32>
    %cst = arith.constant dense<0.000000e+00> : vector<64x512xf32>
    %2 = tpu.matmul %0, %1, %cst {dimension_numbers = #tpu.dot_dimension_numbers<[1], [0], [0], [1], [0, 0, 1, 1], [], []>} : vector<64x18xf32>, vector<18x512xf32>, vector<64x512xf32> -> vector<64x512xf32>
    %c0_3 = arith.constant 0 : index
    %c0_4 = arith.constant 0 : index
    %3 = vector.load %arg3[%c0_3, %c0_4] : memref<1x512xf32, #tpu.memory_space<vmem>>, vector<1x512xf32>
    %4 = vector.broadcast %3 : vector<1x512xf32> to vector<64x512xf32>
    %5 = arith.addf %2, %4 : vector<64x512xf32>
    %6 = vector.extract_strided_slice %5 {offsets = [0, 0], sizes = [64, 256], strides = [1, 1]} : vector<64x512xf32> to vector<64x256xf32>
    %7 = vector.extract_strided_slice %5 {offsets = [0, 256], sizes = [64, 256], strides = [1, 1]} : vector<64x512xf32> to vector<64x256xf32>
    %8 = arith.negf %6 : vector<64x256xf32>
    %9 = math.exp %8 : vector<64x256xf32>
    %cst_5 = arith.constant 1.000000e+00 : f32
    %10 = vector.broadcast %cst_5 : f32 to vector<64x256xf32>
    %11 = arith.addf %10, %9 : vector<64x256xf32>
    %12 = arith.divf %10, %11 : vector<64x256xf32>
    %13 = arith.mulf %6, %12 : vector<64x256xf32>
    %14 = arith.negf %7 : vector<64x256xf32>
    %15 = math.exp %14 : vector<64x256xf32>
    %cst_6 = arith.constant 1.000000e+00 : f32
    %16 = vector.broadcast %cst_6 : f32 to vector<64x256xf32>
    %17 = arith.addf %16, %15 : vector<64x256xf32>
    %18 = arith.divf %16, %17 : vector<64x256xf32>
    %19 = arith.mulf %7, %18 : vector<64x256xf32>
    %20 = arith.maximumf %13, %19 : vector<64x256xf32>
    %c0_7 = arith.constant 0 : index
    %c0_8 = arith.constant 0 : index
    %21 = vector.load %arg4[%c0_7, %c0_8] : memref<256x512xf32, #tpu.memory_space<vmem>>, vector<256x512xf32>
    %cst_9 = arith.constant dense<0.000000e+00> : vector<64x512xf32>
    %22 = tpu.matmul %20, %21, %cst_9 {dimension_numbers = #tpu.dot_dimension_numbers<[1], [0], [0], [1], [0, 0, 1, 1], [], []>} : vector<64x256xf32>, vector<256x512xf32>, vector<64x512xf32> -> vector<64x512xf32>
    %c0_10 = arith.constant 0 : index
    %c0_11 = arith.constant 0 : index
    %23 = vector.load %arg6[%c0_10, %c0_11] : memref<1x512xf32, #tpu.memory_space<vmem>>, vector<1x512xf32>
    %24 = vector.broadcast %23 : vector<1x512xf32> to vector<64x512xf32>
    %25 = arith.addf %22, %24 : vector<64x512xf32>
    %26 = vector.extract_strided_slice %25 {offsets = [0, 0], sizes = [8, 512], strides = [1, 1]} : vector<64x512xf32> to vector<8x512xf32>
    %cst_12 = arith.constant 0.000000e+00 : f32
    %27 = vector.broadcast %cst_12 : f32 to vector<8x128xf32>
    %28 = vector.extract_strided_slice %26 {offsets = [0, 0], sizes = [8, 384], strides = [1, 1]} : vector<8x512xf32> to vector<8x384xf32>
    %cst_13 = arith.constant 5.000000e-01 : f32
    %29 = vector.broadcast %cst_13 : f32 to vector<8x384xf32>
    %30 = arith.mulf %29, %28 : vector<8x384xf32>
    %31 = math.tanh %30 : vector<8x384xf32>
    %cst_14 = arith.constant 1.000000e+00 : f32
    %32 = vector.broadcast %cst_14 : f32 to vector<8x384xf32>
    %33 = arith.addf %31, %32 : vector<8x384xf32>
    %cst_15 = arith.constant 5.000000e-01 : f32
    %34 = vector.broadcast %cst_15 : f32 to vector<8x384xf32>
    %35 = arith.mulf %34, %33 : vector<8x384xf32>
    %36 = vector.extract_strided_slice %35 {offsets = [0, 0], sizes = [8, 128], strides = [1, 1]} : vector<8x384xf32> to vector<8x128xf32>
    %37 = vector.extract_strided_slice %35 {offsets = [0, 128], sizes = [8, 128], strides = [1, 1]} : vector<8x384xf32> to vector<8x128xf32>
    %38 = vector.extract_strided_slice %35 {offsets = [0, 256], sizes = [8, 128], strides = [1, 1]} : vector<8x384xf32> to vector<8x128xf32>
    %39 = vector.extract_strided_slice %26 {offsets = [0, 384], sizes = [8, 128], strides = [1, 1]} : vector<8x512xf32> to vector<8x128xf32>
    %40 = math.tanh %39 : vector<8x128xf32>
    %41 = arith.mulf %37, %27 : vector<8x128xf32>
    %42 = arith.mulf %36, %40 : vector<8x128xf32>
    %43 = arith.addf %41, %42 : vector<8x128xf32>
    %44 = math.tanh %43 : vector<8x128xf32>
    %45 = arith.mulf %38, %44 : vector<8x128xf32>
    %46 = tpu.iota {dimensions = array<i32: 1>} : vector<1x128xi32>
    %c64_i32 = arith.constant 64 : i32
    %47 = vector.broadcast %c64_i32 : i32 to vector<1x128xi32>
    %48 = arith.cmpi slt, %46, %47 : vector<1x128xi32>
    %49 = arith.extui %48 : vector<1x128xi1> to vector<1x128xi32>
    %50 = arith.sitofp %49 : vector<1x128xi32> to vector<1x128xf32>
    %51 = vector.broadcast %50 : vector<1x128xf32> to vector<8x128xf32>
    %52 = arith.mulf %45, %51 : vector<8x128xf32>
    %53 = vector.broadcast %50 : vector<1x128xf32> to vector<8x128xf32>
    %54 = arith.mulf %43, %53 : vector<8x128xf32>
    %55 = vector.extract_strided_slice %25 {offsets = [8, 0], sizes = [8, 512], strides = [1, 1]} : vector<64x512xf32> to vector<8x512xf32>
    %c0_16 = arith.constant 0 : index
    %c0_17 = arith.constant 0 : index
    %56 = vector.load %arg5[%c0_16, %c0_17] : memref<128x512xf32, #tpu.memory_space<vmem>>, vector<128x512xf32>
    %cst_18 = arith.constant dense<0.000000e+00> : vector<8x512xf32>
    %57 = tpu.matmul %52, %56, %cst_18 {dimension_numbers = #tpu.dot_dimension_numbers<[1], [0], [0], [1], [0, 0, 1, 1], [], []>} : vector<8x128xf32>, vector<128x512xf32>, vector<8x512xf32> -> vector<8x512xf32>
    %58 = arith.addf %55, %57 : vector<8x512xf32>
    %59 = vector.extract_strided_slice %58 {offsets = [0, 0], sizes = [8, 384], strides = [1, 1]} : vector<8x512xf32> to vector<8x384xf32>
    %cst_19 = arith.constant 5.000000e-01 : f32
    %60 = vector.broadcast %cst_19 : f32 to vector<8x384xf32>
    %61 = arith.mulf %60, %59 : vector<8x384xf32>
    %62 = math.tanh %61 : vector<8x384xf32>
    %cst_20 = arith.constant 1.000000e+00 : f32
    %63 = vector.broadcast %cst_20 : f32 to vector<8x384xf32>
    %64 = arith.addf %62, %63 : vector<8x384xf32>
    %cst_21 = arith.constant 5.000000e-01 : f32
    %65 = vector.broadcast %cst_21 : f32 to vector<8x384xf32>
    %66 = arith.mulf %65, %64 : vector<8x384xf32>
    %67 = vector.extract_strided_slice %66 {offsets = [0, 0], sizes = [8, 128], strides = [1, 1]} : vector<8x384xf32> to vector<8x128xf32>
    %68 = vector.extract_strided_slice %66 {offsets = [0, 128], sizes = [8, 128], strides = [1, 1]} : vector<8x384xf32> to vector<8x128xf32>
    %69 = vector.extract_strided_slice %66 {offsets = [0, 256], sizes = [8, 128], strides = [1, 1]} : vector<8x384xf32> to vector<8x128xf32>
    %70 = vector.extract_strided_slice %58 {offsets = [0, 384], sizes = [8, 128], strides = [1, 1]} : vector<8x512xf32> to vector<8x128xf32>
    %71 = math.tanh %70 : vector<8x128xf32>
    %72 = arith.mulf %68, %54 : vector<8x128xf32>
    %73 = arith.mulf %67, %71 : vector<8x128xf32>
    %74 = arith.addf %72, %73 : vector<8x128xf32>
    %75 = math.tanh %74 : vector<8x128xf32>
    %76 = arith.mulf %69, %75 : vector<8x128xf32>
    %77 = vector.extract_strided_slice %25 {offsets = [16, 0], sizes = [8, 512], strides = [1, 1]} : vector<64x512xf32> to vector<8x512xf32>
    %c0_22 = arith.constant 0 : index
    %c0_23 = arith.constant 0 : index
    %78 = vector.load %arg5[%c0_22, %c0_23] : memref<128x512xf32, #tpu.memory_space<vmem>>, vector<128x512xf32>
    %cst_24 = arith.constant dense<0.000000e+00> : vector<8x512xf32>
    %79 = tpu.matmul %76, %78, %cst_24 {dimension_numbers = #tpu.dot_dimension_numbers<[1], [0], [0], [1], [0, 0, 1, 1], [], []>} : vector<8x128xf32>, vector<128x512xf32>, vector<8x512xf32> -> vector<8x512xf32>
    %80 = arith.addf %77, %79 : vector<8x512xf32>
    %81 = vector.extract_strided_slice %80 {offsets = [0, 0], sizes = [8, 384], strides = [1, 1]} : vector<8x512xf32> to vector<8x384xf32>
    %cst_25 = arith.constant 5.000000e-01 : f32
    %82 = vector.broadcast %cst_25 : f32 to vector<8x384xf32>
    %83 = arith.mulf %82, %81 : vector<8x384xf32>
    %84 = math.tanh %83 : vector<8x384xf32>
    %cst_26 = arith.constant 1.000000e+00 : f32
    %85 = vector.broadcast %cst_26 : f32 to vector<8x384xf32>
    %86 = arith.addf %84, %85 : vector<8x384xf32>
    %cst_27 = arith.constant 5.000000e-01 : f32
    %87 = vector.broadcast %cst_27 : f32 to vector<8x384xf32>
    %88 = arith.mulf %87, %86 : vector<8x384xf32>
    %89 = vector.extract_strided_slice %88 {offsets = [0, 0], sizes = [8, 128], strides = [1, 1]} : vector<8x384xf32> to vector<8x128xf32>
    %90 = vector.extract_strided_slice %88 {offsets = [0, 128], sizes = [8, 128], strides = [1, 1]} : vector<8x384xf32> to vector<8x128xf32>
    %91 = vector.extract_strided_slice %88 {offsets = [0, 256], sizes = [8, 128], strides = [1, 1]} : vector<8x384xf32> to vector<8x128xf32>
    %92 = vector.extract_strided_slice %80 {offsets = [0, 384], sizes = [8, 128], strides = [1, 1]} : vector<8x512xf32> to vector<8x128xf32>
    %93 = math.tanh %92 : vector<8x128xf32>
    %94 = arith.mulf %90, %74 : vector<8x128xf32>
    %95 = arith.mulf %89, %93 : vector<8x128xf32>
    %96 = arith.addf %94, %95 : vector<8x128xf32>
    %97 = math.tanh %96 : vector<8x128xf32>
    %98 = arith.mulf %91, %97 : vector<8x128xf32>
    %99 = vector.extract_strided_slice %25 {offsets = [24, 0], sizes = [8, 512], strides = [1, 1]} : vector<64x512xf32> to vector<8x512xf32>
    %c0_28 = arith.constant 0 : index
    %c0_29 = arith.constant 0 : index
    %100 = vector.load %arg5[%c0_28, %c0_29] : memref<128x512xf32, #tpu.memory_space<vmem>>, vector<128x512xf32>
    %cst_30 = arith.constant dense<0.000000e+00> : vector<8x512xf32>
    %101 = tpu.matmul %98, %100, %cst_30 {dimension_numbers = #tpu.dot_dimension_numbers<[1], [0], [0], [1], [0, 0, 1, 1], [], []>} : vector<8x128xf32>, vector<128x512xf32>, vector<8x512xf32> -> vector<8x512xf32>
    %102 = arith.addf %99, %101 : vector<8x512xf32>
    %103 = vector.extract_strided_slice %102 {offsets = [0, 0], sizes = [8, 384], strides = [1, 1]} : vector<8x512xf32> to vector<8x384xf32>
    %cst_31 = arith.constant 5.000000e-01 : f32
    %104 = vector.broadcast %cst_31 : f32 to vector<8x384xf32>
    %105 = arith.mulf %104, %103 : vector<8x384xf32>
    %106 = math.tanh %105 : vector<8x384xf32>
    %cst_32 = arith.constant 1.000000e+00 : f32
    %107 = vector.broadcast %cst_32 : f32 to vector<8x384xf32>
    %108 = arith.addf %106, %107 : vector<8x384xf32>
    %cst_33 = arith.constant 5.000000e-01 : f32
    %109 = vector.broadcast %cst_33 : f32 to vector<8x384xf32>
    %110 = arith.mulf %109, %108 : vector<8x384xf32>
    %111 = vector.extract_strided_slice %110 {offsets = [0, 0], sizes = [8, 128], strides = [1, 1]} : vector<8x384xf32> to vector<8x128xf32>
    %112 = vector.extract_strided_slice %110 {offsets = [0, 128], sizes = [8, 128], strides = [1, 1]} : vector<8x384xf32> to vector<8x128xf32>
    %113 = vector.extract_strided_slice %110 {offsets = [0, 256], sizes = [8, 128], strides = [1, 1]} : vector<8x384xf32> to vector<8x128xf32>
    %114 = vector.extract_strided_slice %102 {offsets = [0, 384], sizes = [8, 128], strides = [1, 1]} : vector<8x512xf32> to vector<8x128xf32>
    %115 = math.tanh %114 : vector<8x128xf32>
    %116 = arith.mulf %112, %96 : vector<8x128xf32>
    %117 = arith.mulf %111, %115 : vector<8x128xf32>
    %118 = arith.addf %116, %117 : vector<8x128xf32>
    %119 = math.tanh %118 : vector<8x128xf32>
    %120 = arith.mulf %113, %119 : vector<8x128xf32>
    %121 = vector.extract_strided_slice %25 {offsets = [32, 0], sizes = [8, 512], strides = [1, 1]} : vector<64x512xf32> to vector<8x512xf32>
    %c0_34 = arith.constant 0 : index
    %c0_35 = arith.constant 0 : index
    %122 = vector.load %arg5[%c0_34, %c0_35] : memref<128x512xf32, #tpu.memory_space<vmem>>, vector<128x512xf32>
    %cst_36 = arith.constant dense<0.000000e+00> : vector<8x512xf32>
    %123 = tpu.matmul %120, %122, %cst_36 {dimension_numbers = #tpu.dot_dimension_numbers<[1], [0], [0], [1], [0, 0, 1, 1], [], []>} : vector<8x128xf32>, vector<128x512xf32>, vector<8x512xf32> -> vector<8x512xf32>
    %124 = arith.addf %121, %123 : vector<8x512xf32>
    %125 = vector.extract_strided_slice %124 {offsets = [0, 0], sizes = [8, 384], strides = [1, 1]} : vector<8x512xf32> to vector<8x384xf32>
    %cst_37 = arith.constant 5.000000e-01 : f32
    %126 = vector.broadcast %cst_37 : f32 to vector<8x384xf32>
    %127 = arith.mulf %126, %125 : vector<8x384xf32>
    %128 = math.tanh %127 : vector<8x384xf32>
    %cst_38 = arith.constant 1.000000e+00 : f32
    %129 = vector.broadcast %cst_38 : f32 to vector<8x384xf32>
    %130 = arith.addf %128, %129 : vector<8x384xf32>
    %cst_39 = arith.constant 5.000000e-01 : f32
    %131 = vector.broadcast %cst_39 : f32 to vector<8x384xf32>
    %132 = arith.mulf %131, %130 : vector<8x384xf32>
    %133 = vector.extract_strided_slice %132 {offsets = [0, 0], sizes = [8, 128], strides = [1, 1]} : vector<8x384xf32> to vector<8x128xf32>
    %134 = vector.extract_strided_slice %132 {offsets = [0, 128], sizes = [8, 128], strides = [1, 1]} : vector<8x384xf32> to vector<8x128xf32>
    %135 = vector.extract_strided_slice %132 {offsets = [0, 256], sizes = [8, 128], strides = [1, 1]} : vector<8x384xf32> to vector<8x128xf32>
    %136 = vector.extract_strided_slice %124 {offsets = [0, 384], sizes = [8, 128], strides = [1, 1]} : vector<8x512xf32> to vector<8x128xf32>
    %137 = math.tanh %136 : vector<8x128xf32>
    %138 = arith.mulf %134, %118 : vector<8x128xf32>
    %139 = arith.mulf %133, %137 : vector<8x128xf32>
    %140 = arith.addf %138, %139 : vector<8x128xf32>
    %141 = math.tanh %140 : vector<8x128xf32>
    %142 = arith.mulf %135, %141 : vector<8x128xf32>
    %143 = vector.extract_strided_slice %25 {offsets = [40, 0], sizes = [8, 512], strides = [1, 1]} : vector<64x512xf32> to vector<8x512xf32>
    %c0_40 = arith.constant 0 : index
    %c0_41 = arith.constant 0 : index
    %144 = vector.load %arg5[%c0_40, %c0_41] : memref<128x512xf32, #tpu.memory_space<vmem>>, vector<128x512xf32>
    %cst_42 = arith.constant dense<0.000000e+00> : vector<8x512xf32>
    %145 = tpu.matmul %142, %144, %cst_42 {dimension_numbers = #tpu.dot_dimension_numbers<[1], [0], [0], [1], [0, 0, 1, 1], [], []>} : vector<8x128xf32>, vector<128x512xf32>, vector<8x512xf32> -> vector<8x512xf32>
    %146 = arith.addf %143, %145 : vector<8x512xf32>
    %147 = vector.extract_strided_slice %146 {offsets = [0, 0], sizes = [8, 384], strides = [1, 1]} : vector<8x512xf32> to vector<8x384xf32>
    %cst_43 = arith.constant 5.000000e-01 : f32
    %148 = vector.broadcast %cst_43 : f32 to vector<8x384xf32>
    %149 = arith.mulf %148, %147 : vector<8x384xf32>
    %150 = math.tanh %149 : vector<8x384xf32>
    %cst_44 = arith.constant 1.000000e+00 : f32
    %151 = vector.broadcast %cst_44 : f32 to vector<8x384xf32>
    %152 = arith.addf %150, %151 : vector<8x384xf32>
    %cst_45 = arith.constant 5.000000e-01 : f32
    %153 = vector.broadcast %cst_45 : f32 to vector<8x384xf32>
    %154 = arith.mulf %153, %152 : vector<8x384xf32>
    %155 = vector.extract_strided_slice %154 {offsets = [0, 0], sizes = [8, 128], strides = [1, 1]} : vector<8x384xf32> to vector<8x128xf32>
    %156 = vector.extract_strided_slice %154 {offsets = [0, 128], sizes = [8, 128], strides = [1, 1]} : vector<8x384xf32> to vector<8x128xf32>
    %157 = vector.extract_strided_slice %154 {offsets = [0, 256], sizes = [8, 128], strides = [1, 1]} : vector<8x384xf32> to vector<8x128xf32>
    %158 = vector.extract_strided_slice %146 {offsets = [0, 384], sizes = [8, 128], strides = [1, 1]} : vector<8x512xf32> to vector<8x128xf32>
    %159 = math.tanh %158 : vector<8x128xf32>
    %160 = arith.mulf %156, %140 : vector<8x128xf32>
    %161 = arith.mulf %155, %159 : vector<8x128xf32>
    %162 = arith.addf %160, %161 : vector<8x128xf32>
    %163 = math.tanh %162 : vector<8x128xf32>
    %164 = arith.mulf %157, %163 : vector<8x128xf32>
    %165 = vector.extract_strided_slice %25 {offsets = [48, 0], sizes = [8, 512], strides = [1, 1]} : vector<64x512xf32> to vector<8x512xf32>
    %c0_46 = arith.constant 0 : index
    %c0_47 = arith.constant 0 : index
    %166 = vector.load %arg5[%c0_46, %c0_47] : memref<128x512xf32, #tpu.memory_space<vmem>>, vector<128x512xf32>
    %cst_48 = arith.constant dense<0.000000e+00> : vector<8x512xf32>
    %167 = tpu.matmul %164, %166, %cst_48 {dimension_numbers = #tpu.dot_dimension_numbers<[1], [0], [0], [1], [0, 0, 1, 1], [], []>} : vector<8x128xf32>, vector<128x512xf32>, vector<8x512xf32> -> vector<8x512xf32>
    %168 = arith.addf %165, %167 : vector<8x512xf32>
    %169 = vector.extract_strided_slice %168 {offsets = [0, 0], sizes = [8, 384], strides = [1, 1]} : vector<8x512xf32> to vector<8x384xf32>
    %cst_49 = arith.constant 5.000000e-01 : f32
    %170 = vector.broadcast %cst_49 : f32 to vector<8x384xf32>
    %171 = arith.mulf %170, %169 : vector<8x384xf32>
    %172 = math.tanh %171 : vector<8x384xf32>
    %cst_50 = arith.constant 1.000000e+00 : f32
    %173 = vector.broadcast %cst_50 : f32 to vector<8x384xf32>
    %174 = arith.addf %172, %173 : vector<8x384xf32>
    %cst_51 = arith.constant 5.000000e-01 : f32
    %175 = vector.broadcast %cst_51 : f32 to vector<8x384xf32>
    %176 = arith.mulf %175, %174 : vector<8x384xf32>
    %177 = vector.extract_strided_slice %176 {offsets = [0, 0], sizes = [8, 128], strides = [1, 1]} : vector<8x384xf32> to vector<8x128xf32>
    %178 = vector.extract_strided_slice %176 {offsets = [0, 128], sizes = [8, 128], strides = [1, 1]} : vector<8x384xf32> to vector<8x128xf32>
    %179 = vector.extract_strided_slice %176 {offsets = [0, 256], sizes = [8, 128], strides = [1, 1]} : vector<8x384xf32> to vector<8x128xf32>
    %180 = vector.extract_strided_slice %168 {offsets = [0, 384], sizes = [8, 128], strides = [1, 1]} : vector<8x512xf32> to vector<8x128xf32>
    %181 = math.tanh %180 : vector<8x128xf32>
    %182 = arith.mulf %178, %162 : vector<8x128xf32>
    %183 = arith.mulf %177, %181 : vector<8x128xf32>
    %184 = arith.addf %182, %183 : vector<8x128xf32>
    %185 = math.tanh %184 : vector<8x128xf32>
    %186 = arith.mulf %179, %185 : vector<8x128xf32>
    %187 = vector.extract_strided_slice %25 {offsets = [56, 0], sizes = [8, 512], strides = [1, 1]} : vector<64x512xf32> to vector<8x512xf32>
    %c0_52 = arith.constant 0 : index
    %c0_53 = arith.constant 0 : index
    %188 = vector.load %arg5[%c0_52, %c0_53] : memref<128x512xf32, #tpu.memory_space<vmem>>, vector<128x512xf32>
    %cst_54 = arith.constant dense<0.000000e+00> : vector<8x512xf32>
    %189 = tpu.matmul %186, %188, %cst_54 {dimension_numbers = #tpu.dot_dimension_numbers<[1], [0], [0], [1], [0, 0, 1, 1], [], []>} : vector<8x128xf32>, vector<128x512xf32>, vector<8x512xf32> -> vector<8x512xf32>
    %190 = arith.addf %187, %189 : vector<8x512xf32>
    %191 = vector.extract_strided_slice %190 {offsets = [0, 0], sizes = [8, 384], strides = [1, 1]} : vector<8x512xf32> to vector<8x384xf32>
    %cst_55 = arith.constant 5.000000e-01 : f32
    %192 = vector.broadcast %cst_55 : f32 to vector<8x384xf32>
    %193 = arith.mulf %192, %191 : vector<8x384xf32>
    %194 = math.tanh %193 : vector<8x384xf32>
    %cst_56 = arith.constant 1.000000e+00 : f32
    %195 = vector.broadcast %cst_56 : f32 to vector<8x384xf32>
    %196 = arith.addf %194, %195 : vector<8x384xf32>
    %cst_57 = arith.constant 5.000000e-01 : f32
    %197 = vector.broadcast %cst_57 : f32 to vector<8x384xf32>
    %198 = arith.mulf %197, %196 : vector<8x384xf32>
    %199 = vector.extract_strided_slice %198 {offsets = [0, 0], sizes = [8, 128], strides = [1, 1]} : vector<8x384xf32> to vector<8x128xf32>
    %200 = vector.extract_strided_slice %198 {offsets = [0, 128], sizes = [8, 128], strides = [1, 1]} : vector<8x384xf32> to vector<8x128xf32>
    %201 = vector.extract_strided_slice %198 {offsets = [0, 256], sizes = [8, 128], strides = [1, 1]} : vector<8x384xf32> to vector<8x128xf32>
    %202 = vector.extract_strided_slice %190 {offsets = [0, 384], sizes = [8, 128], strides = [1, 1]} : vector<8x512xf32> to vector<8x128xf32>
    %203 = math.tanh %202 : vector<8x128xf32>
    %204 = arith.mulf %200, %184 : vector<8x128xf32>
    %205 = arith.mulf %199, %203 : vector<8x128xf32>
    %206 = arith.addf %204, %205 : vector<8x128xf32>
    %207 = math.tanh %206 : vector<8x128xf32>
    %208 = arith.mulf %201, %207 : vector<8x128xf32>
    %c0_58 = arith.constant 0 : index
    %c0_59 = arith.constant 0 : index
    %209 = vector.load %arg6[%c0_58, %c0_59] : memref<1x512xf32, #tpu.memory_space<vmem>>, vector<1x512xf32>
    %c0_60 = arith.constant 0 : index
    %c0_61 = arith.constant 0 : index
    %210 = vector.load %arg5[%c0_60, %c0_61] : memref<128x512xf32, #tpu.memory_space<vmem>>, vector<128x512xf32>
    %cst_62 = arith.constant dense<0.000000e+00> : vector<8x512xf32>
    %211 = tpu.matmul %208, %210, %cst_62 {dimension_numbers = #tpu.dot_dimension_numbers<[1], [0], [0], [1], [0, 0, 1, 1], [], []>} : vector<8x128xf32>, vector<128x512xf32>, vector<8x512xf32> -> vector<8x512xf32>
    %212 = vector.broadcast %209 : vector<1x512xf32> to vector<8x512xf32>
    %213 = arith.addf %212, %211 : vector<8x512xf32>
    %214 = vector.extract_strided_slice %213 {offsets = [0, 0], sizes = [8, 384], strides = [1, 1]} : vector<8x512xf32> to vector<8x384xf32>
    %cst_63 = arith.constant 5.000000e-01 : f32
    %215 = vector.broadcast %cst_63 : f32 to vector<8x384xf32>
    %216 = arith.mulf %215, %214 : vector<8x384xf32>
    %217 = math.tanh %216 : vector<8x384xf32>
    %cst_64 = arith.constant 1.000000e+00 : f32
    %218 = vector.broadcast %cst_64 : f32 to vector<8x384xf32>
    %219 = arith.addf %217, %218 : vector<8x384xf32>
    %cst_65 = arith.constant 5.000000e-01 : f32
    %220 = vector.broadcast %cst_65 : f32 to vector<8x384xf32>
    %221 = arith.mulf %220, %219 : vector<8x384xf32>
    %222 = vector.extract_strided_slice %221 {offsets = [0, 0], sizes = [8, 128], strides = [1, 1]} : vector<8x384xf32> to vector<8x128xf32>
    %223 = vector.extract_strided_slice %221 {offsets = [0, 128], sizes = [8, 128], strides = [1, 1]} : vector<8x384xf32> to vector<8x128xf32>
    %224 = vector.extract_strided_slice %221 {offsets = [0, 256], sizes = [8, 128], strides = [1, 1]} : vector<8x384xf32> to vector<8x128xf32>
    %225 = vector.extract_strided_slice %213 {offsets = [0, 384], sizes = [8, 128], strides = [1, 1]} : vector<8x512xf32> to vector<8x128xf32>
    %226 = math.tanh %225 : vector<8x128xf32>
    %227 = arith.mulf %223, %206 : vector<8x128xf32>
    %228 = arith.mulf %222, %226 : vector<8x128xf32>
    %229 = arith.addf %227, %228 : vector<8x128xf32>
    %230 = math.tanh %229 : vector<8x128xf32>
    %231 = arith.mulf %224, %230 : vector<8x128xf32>
    %232 = vector.extract_strided_slice %231 {offsets = [0, 64], sizes = [8, 64], strides = [1, 1]} : vector<8x128xf32> to vector<8x64xf32>
    %c0_66 = arith.constant 0 : index
    %c0_67 = arith.constant 0 : index
    %233 = vector.load %arg7[%c0_66, %c0_67] : memref<64x10xf32, #tpu.memory_space<vmem>>, vector<64x10xf32>
    %cst_68 = arith.constant dense<0.000000e+00> : vector<8x10xf32>
    %234 = tpu.matmul %232, %233, %cst_68 {dimension_numbers = #tpu.dot_dimension_numbers<[1], [0], [0], [1], [0, 0, 1, 1], [], []>} : vector<8x64xf32>, vector<64x10xf32>, vector<8x10xf32> -> vector<8x10xf32>
    %c0_69 = arith.constant 0 : index
    %c0_70 = arith.constant 0 : index
    %235 = vector.load %arg8[%c0_69, %c0_70] : memref<1x10xf32, #tpu.memory_space<vmem>>, vector<1x10xf32>
    %236 = vector.broadcast %235 : vector<1x10xf32> to vector<8x10xf32>
    %237 = arith.addf %234, %236 : vector<8x10xf32>
    %c0_71 = arith.constant 0 : index
    %c0_72 = arith.constant 0 : index
    %238 = vector.load %arg9[%c0_71, %c0_72] : memref<8x10xf32, #tpu.memory_space<vmem>>, vector<8x10xf32>
    tpu.vector_store %arg9[%c0_71, %c0_72], %237 {strides = array<i32>} : memref<8x10xf32, #tpu.memory_space<vmem>>, vector<8x10xf32>,
    return
  }
  func.func @transform_0(%arg0: i32) -> (i32, i32) {
    %c0_i32 = arith.constant 0 : i32
    %c0_i32_0 = arith.constant 0 : i32
    return %arg0, %c0_i32 : i32, i32
  }
  func.func @transform_1(%arg0: i32) -> (i32, i32) {
    %c0_i32 = arith.constant 0 : i32
    %c0_i32_0 = arith.constant 0 : i32
    %c0_i32_1 = arith.constant 0 : i32
    return %c0_i32, %c0_i32_0 : i32, i32
  }
  func.func @transform_2(%arg0: i32) -> (i32, i32) {
    %c0_i32 = arith.constant 0 : i32
    %c0_i32_0 = arith.constant 0 : i32
    %c0_i32_1 = arith.constant 0 : i32
    return %c0_i32, %c0_i32_0 : i32, i32
  }
  func.func @transform_3(%arg0: i32) -> (i32, i32) {
    %c0_i32 = arith.constant 0 : i32
    %c0_i32_0 = arith.constant 0 : i32
    %c0_i32_1 = arith.constant 0 : i32
    return %c0_i32, %c0_i32_0 : i32, i32
  }
  func.func @transform_4(%arg0: i32) -> (i32, i32) {
    %c0_i32 = arith.constant 0 : i32
    %c0_i32_0 = arith.constant 0 : i32
    %c0_i32_1 = arith.constant 0 : i32
    return %c0_i32, %c0_i32_0 : i32, i32
  }
  func.func @transform_5(%arg0: i32) -> (i32, i32) {
    %c0_i32 = arith.constant 0 : i32
    %c0_i32_0 = arith.constant 0 : i32
    %c0_i32_1 = arith.constant 0 : i32
    return %c0_i32, %c0_i32_0 : i32, i32
  }
  func.func @transform_6(%arg0: i32) -> (i32, i32) {
    %c0_i32 = arith.constant 0 : i32
    %c0_i32_0 = arith.constant 0 : i32
    %c0_i32_1 = arith.constant 0 : i32
    return %c0_i32, %c0_i32_0 : i32, i32
  }
  func.func @transform_7(%arg0: i32) -> (i32, i32) {
    %c0_i32 = arith.constant 0 : i32
    %c0_i32_0 = arith.constant 0 : i32
    %c0_i32_1 = arith.constant 0 : i32
    return %c0_i32, %c0_i32_0 : i32, i32
  }
  func.func @transform_8(%arg0: i32) -> (i32, i32) {
    %c0_i32 = arith.constant 0 : i32
    %c0_i32_0 = arith.constant 0 : i32
    return %arg0, %c0_i32 : i32, i32
  }
}

</mosaic_0001>

<bundles_post_ra>
// kernel: tile.5
= control target key start
LH: loop header
LB: loop body
LE: loop exit
PB: predicated region body
PF: predicated region fallthrough
CT: control target
= control target key end

     0   :  { %s7_s6 = smov 3  ;;  %s21_s9 = smov 3  ;;  %vm4_vm0 = vcmask 64512   ;;  %vm11_vm1 = vcmask 1048512   ;;  %vm18_vm2 = vcmask 982912   ;;  %vm25_vm3 = vcmask 917312   ;;  %s223_s0 = inlined_call_operand.vmem [shape: f32[32,8], index: 0, kind: input, shape index: {}]   ;;  %s224_s1 = inlined_call_operand.vmem [shape: f32[256], index: 1, kind: output, shape index: {}]  }
   0x1   :  { %v117_v0 = vld [vmem:[%s223_s0 + $0xf] ss:$16 sm:%s7_s6]   ;;  %s147_s10 = smov 120   ;;  %v119_v1 = vld [vmem:[%s223_s0 + $0xd] ss:$16 sm:%s21_s9]   ;;  %s148_s13 = smov 104  }
   0x2   :  { %9 = vrot.lane.b32.xlu0 %v117_v0, %s147_s10  ;;  %23 = vrot.lane.b32.xlu1 %v119_v1, %s148_s13  ;;  %s14_s14 = smov 3  ;;  %s28_s15 = smov 3  ;;  %vm32_vm4 = vcmask 851712   ;;  %vm39_vm5 = vcmask 786112   ;;  %vm46_vm6 = vcmask 720512   ;;  %vm53_vm7 = vcmask 654912  }
   0x3   :  { %v118_v2 = vld [vmem:[%s223_s0 + $0xe] ss:$16 sm:%s14_s14]   ;;  %v120_v3 = vld [vmem:[%s223_s0 + $0xc] ss:$16 sm:%s28_s15]   ;;  %s35_s20 = smov 3  ;;  %s149_s23 = smov 112  }
   0x4   :  { %v121_v4 = vld [vmem:[%s223_s0 + $0xb] ss:$16 sm:%s35_s20]   ;;  %s150_s24 = smov 88   ;;  %s151_s25 = smov 96   ;;  %vm60_vm8 = vcmask 589312   ;;  %vm67_vm9 = vcmask 523712  }
   0x5   :  { %37 = vrot.lane.b32.xlu2 %v121_v4, %s150_s24  ;;  %s49_s26 = smov 3  ;;  %s42_s27 = smov 3  ;;  %vm74_vm10 = vcmask 458112   ;;  %vm81_vm11 = vcmask 392512   ;;  %vm88_vm12 = vcmask 326912   ;;  %vm95_vm13 = vcmask 261312  }
   0x6   :  { %s56_s28 = smov 3  ;;  %v123_v5 = vld [vmem:[%s223_s0 + $0x9] ss:$16 sm:%s49_s26]   ;;  %v122_v6 = vld [vmem:[%s223_s0 + $0xa] ss:$16 sm:%s42_s27]   ;;  %s152_s6 = smov 72  }
   0x7   :  { %v124_v7 = vld [vmem:[%s223_s0 + $0x8] ss:$16 sm:%s56_s28]   ;;  %s153_s7 = smov 80   ;;  %s154_s8 = smov 64   ;;  %vm102_vm14 = vcmask 195712   ;;  %vm109_vm15 = vcmask 130112  }
   0x8   :  { %s70_s9 = smov 3  ;;  %s63_s10 = smov 3 }
   0x9   :  { %s77_s11 = smov 3  ;;  %v126_v8 = vld [vmem:[%s223_s0 + $0x6] ss:$16 sm:%s70_s9]   ;;  %v125_v9 = vld [vmem:[%s223_s0 + $0x7] ss:$16 sm:%s63_s10]   ;;  %s155_s18 = smov 48  }
   0xa   :  { %16 = vrot.lane.b32.xlu0 %v118_v2, %s149_s23  ;;  %30 = vrot.lane.b32.xlu1 %v120_v3, %s151_s25  ;;  %v127_v10 = vld [vmem:[%s223_s0 + $0x5] ss:$16 sm:%s77_s11]   ;;  %s156_s19 = smov 56   ;;  %s157_s20 = smov 40  }
   0xb   :  { %s91_s21 = smov 3  ;;  %s84_s22 = smov 3 }
   0xc   :  { %s98_s23 = smov 3  ;;  %v129_v11 = vld [vmem:[%s223_s0 + $0x3] ss:$16 sm:%s91_s21]   ;;  %v128_v12 = vld [vmem:[%s223_s0 + $0x4] ss:$16 sm:%s84_s22]   ;;  %s158_s30 = smov 24  }
   0xd   :  { %44 = vrot.lane.b32.xlu2 %v122_v6, %s153_s7  ;;  %v130_v13 = vld [vmem:[%s223_s0 + $0x2] ss:$16 sm:%s98_s23]   ;;  %s159_s2 = smov 32   ;;  %s160_s3 = smov 16  }
   0xe   :  { %s105_s4 = smov 3  ;;  %s161_s7 = smov 8  }
   0xf   :  { %v131_v14 = vld [vmem:[%s223_s0 + $0x1] ss:$16 sm:%s105_s4]  }
  0x12   :  { %51 = vrot.lane.b32.xlu0 %v123_v5, %s152_s6  ;;  %58 = vrot.lane.b32.xlu1 %v124_v7, %s154_s8  ;;  %s2_s8 = smov 3 }
  0x13   :  { %v3_v15 = vld [vmem:[%s223_s0] ss:$16 sm:%s2_s8]  }
  0x14   :  { %5 = vst.msk [vmem:[#allocation0] sm:$0x3] %vm4_vm0, %v3_v15  }
  0x15   :  { %65 = vrot.lane.b32.xlu2 %v125_v9, %s156_s19 }
  0x1a   :  { %72 = vrot.lane.b32.xlu0 %v126_v8, %s155_s18  ;;  %79 = vrot.lane.b32.xlu1 %v127_v10, %s157_s20 }
  0x1d   :  { %86 = vrot.lane.b32.xlu2 %v128_v12, %s159_s2 }
  0x22   :  { %93 = vrot.lane.b32.xlu0 %v129_v11, %s158_s30  ;;  %100 = vrot.lane.b32.xlu1 %v130_v13, %s160_s3 }
  0x25   :  { %107 = vrot.lane.b32.xlu2 %v131_v14, %s161_s7 }
  0x5f   :  { %v38_v16 = vpop.permute.xlu2 %37  }
  0x67   :  { %v45_v17 = vpop.permute.xlu2 %44  }
  0x6f   :  { %v66_v19 = vpop.permute.xlu2 %65  }
  0x74   :  { %v10_v18 = vpop.permute.xlu0 %9   ;;  %v24_v20 = vpop.permute.xlu1 %23  }
  0x75   :  { %12 = vst.msk [vmem:[#allocation0] sm:$0x3] %vm11_vm1, %v10_v18  }
  0x77   :  { %v87_v22 = vpop.permute.xlu2 %86  }
  0x7c   :  { %v17_v21 = vpop.permute.xlu0 %16   ;;  %v31_v23 = vpop.permute.xlu1 %30  }
  0x7d   :  { %19 = vst.msk [vmem:[#allocation0] sm:$0x3] %vm18_vm2, %v17_v21  }
  0x7e   :  { %26 = vst.msk [vmem:[#allocation0] sm:$0x3] %vm25_vm3, %v24_v20  }
  0x7f   :  { %33 = vst.msk [vmem:[#allocation0] sm:$0x3] %vm32_vm4, %v31_v23   ;;  %v108_v25 = vpop.permute.xlu2 %107  }
  0x80   :  { %40 = vst.msk [vmem:[#allocation0] sm:$0x3] %vm39_vm5, %v38_v16  }
  0x81   :  { %47 = vst.msk [vmem:[#allocation0] sm:$0x3] %vm46_vm6, %v45_v17  }
  0x84   :  { %v52_v24 = vpop.permute.xlu0 %51   ;;  %v59_v26 = vpop.permute.xlu1 %58  }
  0x85   :  { %54 = vst.msk [vmem:[#allocation0] sm:$0x3] %vm53_vm7, %v52_v24  }
  0x86   :  { %61 = vst.msk [vmem:[#allocation0] sm:$0x3] %vm60_vm8, %v59_v26  }
  0x87   :  { %68 = vst.msk [vmem:[#allocation0] sm:$0x3] %vm67_vm9, %v66_v19  }
  0x8c   :  { %v73_v27 = vpop.permute.xlu0 %72   ;;  %v80_v28 = vpop.permute.xlu1 %79  }
  0x8d   :  { %75 = vst.msk [vmem:[#allocation0] sm:$0x3] %vm74_vm10, %v73_v27  }
  0x8e   :  { %82 = vst.msk [vmem:[#allocation0] sm:$0x3] %vm81_vm11, %v80_v28  }
  0x8f   :  { %89 = vst.msk [vmem:[#allocation0] sm:$0x3] %vm88_vm12, %v87_v22  }
  0x94   :  { %v94_v29 = vpop.permute.xlu0 %93   ;;  %v101_v30 = vpop.permute.xlu1 %100  }
  0x95   :  { %96 = vst.msk [vmem:[#allocation0] sm:$0x3] %vm95_vm13, %v94_v29  }
  0x96   :  { %103 = vst.msk [vmem:[#allocation0] sm:$0x3] %vm102_vm14, %v101_v30  }
  0x97   :  { %110 = vst.msk [vmem:[#allocation0] sm:$0x3] %vm109_vm15, %v108_v25  }
  0x9e   :  { %v113_v31 = vld [vmem:[#allocation0] sm:$0x3] }
  0x9f   :  { %116 = vst [vmem:[%s224_s1] sm:$0x3] %v113_v31 }

// kernel: mixed_memory_net_forward.1
= control target key start
LH: loop header
LB: loop body
LE: loop exit
PB: predicated region body
PF: predicated region fallthrough
CT: control target
= control target key end

     0   :  { %vm84_vm0 = vcmask 1041408   ;;  %vm59_vm1 = vcmask 146432   ;;  %s2691_s9 = smov 64   ;;  %s5618_s1 = inlined_call_operand.vmem [shape: f32[18,512], index: 1, kind: input, shape index: {}]   ;;  %s5619_s0 = inlined_call_operand.vmem [shape: f32[64,18], index: 0, kind: input, shape index: {}]   ;;  %s5620_s3 = inlined_call_operand.vmem [shape: f32[256,512], index: 3, kind: input, shape index: {}]   ;;  %s5621_s2 = inlined_call_operand.vmem [shape: f32[1,512], index: 2, kind: input, shape index: {}]   ;;  %s5622_s5 = inlined_call_operand.vmem [shape: f32[1,512], index: 5, kind: input, shape index: {}]   ;;  %s5623_s4 = inlined_call_operand.vmem [shape: f32[128,512], index: 4, kind: input, shape index: {}]   ;;  %s5624_s6 = inlined_call_operand.vmem [shape: f32[64,10], index: 6, kind: input, shape index: {}]   ;;  %s5625_s7 = inlined_call_operand.vmem [shape: f32[1,10], index: 7, kind: input, shape index: {}]   ;;  %s5626_s8 = inlined_call_operand.vmem [shape: f32[8,10], index: 8, kind: output, shape index: {}]  }
   0x1   :  { %v45_v0 = vld [vmem:[%s5618_s1 + $0x40] sm:$0x3]  ;;  %v47_v1 = vld [vmem:[%s5618_s1 + $0x50] sm:$0x3]  ;;  %v48_v2 = vld [vmem:[%s5618_s1 + $0x58] sm:$0x3] }
   0x2   :  { %2332 = vmatpush.msk.msra.mxu0 %vm84_vm0, %v45_v0  ;;  %2402 = vmatpush.msk.msra.mxu1 %vm84_vm0, %v45_v0  ;;  %v41_v3 = vld [vmem:[%s5618_s1 + $0x20] sm:$0xff]  ;;  %v43_v4 = vld [vmem:[%s5618_s1 + $0x30] sm:$0xff]  ;;  %v44_v5 = vld [vmem:[%s5618_s1 + $0x38] sm:$0xff] }
   0x3   :  { %2350 = vmatpush.msk.msra.mxu2 %vm84_vm0, %v47_v1  ;;  %2359 = vmatpush.msk.msra.mxu3 %vm84_vm0, %v48_v2  ;;  %v37_v6 = vld [vmem:[%s5618_s1] sm:$0xff]  ;;  %v39_v7 = vld [vmem:[%s5618_s1 + $0x10] sm:$0xff]  ;;  %v40_v8 = vld [vmem:[%s5618_s1 + $0x18] sm:$0xff] }
   0x4   :  { %111 = vmatpush.msra.mxu0 %v41_v3  ;;  %2403 = vmatpush.msra.mxu1 %v41_v3  ;;  %v29_v9 = vld [vmem:[%s5619_s0] sm:$0xff]  ;;  %v2774_v10 = vld [vmem:[%s5619_s0 + $0x38] sm:$0xff]  ;;  %v46_v11 = vld [vmem:[%s5618_s1 + $0x48] sm:$0x3] }
   0x5   :  { %193 = vmatpush.msra.mxu2 %v43_v4  ;;  %234 = vmatpush.msra.mxu3 %v44_v5  ;;  %v42_v12 = vld [vmem:[%s5618_s1 + $0x28] sm:$0xff]  ;;  %v31_v15 = vld [vmem:[%s5619_s0 + $0x10] sm:$0xff]  ;;  %v32_v16 = vld [vmem:[%s5619_s0 + $0x18] sm:$0xff] }
   0x6   :  { %112 = vmatpush.msra.mxu0 %v37_v6  ;;  %2404 = vmatpush.msra.mxu1 %v37_v6  ;;  %v38_v13 = vld [vmem:[%s5618_s1 + $0x8] sm:$0xff]  ;;  %v33_v17 = vld [vmem:[%s5619_s0 + $0x20] sm:$0xff]  ;;  %v35_v35 = vld [vmem:[%s5619_s0 + $0x30] sm:$0xff] }
   0x7   :  { %194 = vmatpush.msra.mxu2 %v39_v7  ;;  %235 = vmatpush.msra.mxu3 %v40_v8  ;;  %v30_v14 = vld [vmem:[%s5619_s0 + $0x8] sm:$0xff]  ;;  %v1041_v23 = vld [vmem:[%s5620_s3 + $0x3e0] sm:$0xff] }
   0x8   :  { %2333 = vmatmul.msk.f32.vlgmr.msra.gmra.mxu0 %vm59_vm1, %v29_v9  ;;  %2340 = vmatmul.msk.f32.vlgmr.msra.gmra.mxu1 %vm59_vm1, %v2774_v10  ;;  %v978_v18 = vld [vmem:[%s5620_s3 + $0x1e8] sm:$0xff]  ;;  %v1037_v25 = vld [vmem:[%s5620_s3 + $0x3c0] sm:$0xff] }
   0x9   :  { %2341 = vmatpush.msk.msrb.mxu1 %vm84_vm0, %v46_v11  ;;  %2351 = vmatmul.msk.f32.vlgmr.msra.gmra.mxu2 %vm59_vm1, %v29_v9  ;;  %v1042_v19 = vld [vmem:[%s5620_s3 + $0x3e8] sm:$0xff]  ;;  %v977_v27 = vld [vmem:[%s5620_s3 + $0x1e0] sm:$0xff] }
   0xa   :  { %2360 = vmatmul.msk.f32.vlgmr.msra.gmra.mxu3 %vm59_vm1, %v29_v9  ;;  %v974_v20 = vld [vmem:[%s5620_s3 + $0x1c8] sm:$0xff]  ;;  %1137 = vmatpush.msrb.mxu2 %v978_v18  ;;  %v1033_v28 = vld [vmem:[%s5620_s3 + $0x3a0] sm:$0xff] }
   0xb   :  { %152 = vmatpush.msrb.mxu1 %v42_v12  ;;  %1178 = vmatpush.msrb.mxu3 %v1042_v19  ;;  %v1038_v21 = vld [vmem:[%s5620_s3 + $0x3c8] sm:$0xff]  ;;  %v973_v36 = vld [vmem:[%s5620_s3 + $0x1c0] sm:$0xff] }
   0xc   :  { %v1034_v22 = vld [vmem:[%s5620_s3 + $0x3a8] sm:$0xff]  ;;  %1138 = vmatpush.msrb.mxu2 %v974_v20  ;;  %1055 = vmatpush.msrb.mxu0 %v977_v27  ;;  %v969_v37 = vld [vmem:[%s5620_s3 + $0x1a0] sm:$0xff] }
   0xd   :  { %153 = vmatpush.msrb.mxu1 %v38_v13  ;;  %1179 = vmatpush.msrb.mxu3 %v1038_v21  ;;  %v970_v24 = vld [vmem:[%s5620_s3 + $0x1a8] sm:$0xff]  ;;  %v1029_v38 = vld [vmem:[%s5620_s3 + $0x380] sm:$0xff] }
   0xe   :  { %v1030_v26 = vld [vmem:[%s5620_s3 + $0x388] sm:$0xff]  ;;  %1139 = vmatpush.msrb.mxu2 %v970_v24  ;;  %1056 = vmatpush.msrb.mxu0 %v973_v36  ;;  %v965_v39 = vld [vmem:[%s5620_s3 + $0x180] sm:$0xff] }
   0xf   :  { %1096 = vmatpush.msra.mxu1 %v1041_v23  ;;  %v34_v29 = vld [vmem:[%s5619_s0 + $0x28] sm:$0xff]  ;;  %1180 = vmatpush.msrb.mxu3 %v1034_v22  ;;  %v1025_v41 = vld [vmem:[%s5620_s3 + $0x360] sm:$0xff] }
  0x10   :  { %2334 = vmatmul.msk.f32.gmra.mxu0 %vm59_vm1, %v30_v14  ;;  %2342 = vmatmul.msk.f32.vlgmr.msrb.gmra.mxu1 %vm59_vm1, %v29_v9  ;;  %v1026_v30 = vld [vmem:[%s5620_s3 + $0x368] sm:$0xff]  ;;  %v49_v44 = vld [vmem:[%s5621_s2] sm:$0xf] }
  0x11   :  { %2352 = vmatmul.msk.f32.gmra.mxu2 %vm59_vm1, %v30_v14  ;;  %1097 = vmatpush.msra.mxu1 %v1037_v25  ;;  %v966_v31 = vld [vmem:[%s5620_s3 + $0x188] sm:$0xff]  ;;  %v961_v45 = vld [vmem:[%s5620_s3 + $0x160] sm:$0xff]  ;;  %v2918_v46 = vperm.slane %v49_v44, 0  ;;  %v2939_v56 = vperm.slane %v49_v44, 2  ;;  %v2945_v59 = vperm.slane %v49_v44, 3  ;;  %v2947_v60 = vperm.slane %v49_v44, 1 }
  0x12   :  { %2361 = vmatmul.msk.f32.gmra.mxu3 %vm59_vm1, %v30_v14  ;;  %v1022_v32 = vld [vmem:[%s5620_s3 + $0x348] sm:$0xff]  ;;  %1140 = vmatpush.msrb.mxu2 %v966_v31  ;;  %v957_v48 = vld [vmem:[%s5620_s3 + $0x140] sm:$0xff] }
  0x13   :  { %1181 = vmatpush.msrb.mxu3 %v1030_v26  ;;  %1098 = vmatpush.msra.mxu1 %v1033_v28  ;;  %v962_v33 = vld [vmem:[%s5620_s3 + $0x168] sm:$0xff]  ;;  %v1021_v51 = vld [vmem:[%s5620_s3 + $0x340] sm:$0xff] }
  0x14   :  { %v958_v34 = vld [vmem:[%s5620_s3 + $0x148] sm:$0xff]  ;;  %1141 = vmatpush.msrb.mxu2 %v962_v33  ;;  %1057 = vmatpush.msrb.mxu0 %v969_v37  ;;  %v1017_v54 = vld [vmem:[%s5620_s3 + $0x320] sm:$0xff] }
  0x15   :  { %1182 = vmatpush.msrb.mxu3 %v1026_v30  ;;  %1099 = vmatpush.msra.mxu1 %v1029_v38  ;;  %v954_v40 = vld [vmem:[%s5620_s3 + $0x128] sm:$0xff]  ;;  %v949_v19 = vld [vmem:[%s5620_s3 + $0x100] sm:$0xff] }
  0x16   :  { %1142 = vmatpush.msrb.mxu2 %v958_v34  ;;  %1058 = vmatpush.msrb.mxu0 %v965_v39  ;;  %v1018_v42 = vld [vmem:[%s5620_s3 + $0x328] sm:$0xff]  ;;  %v1013_v23 = vld [vmem:[%s5620_s3 + $0x300] sm:$0xff] }
  0x17   :  { %1183 = vmatpush.msrb.mxu3 %v1022_v32  ;;  %1100 = vmatpush.msra.mxu1 %v1025_v41  ;;  %v950_v43 = vld [vmem:[%s5620_s3 + $0x108] sm:$0xff]  ;;  %v945_v38 = vld [vmem:[%s5620_s3 + $0xe0] sm:$0xff] }
  0x18   :  { %2335 = vmatmul.msk.f32.gmra.mxu0 %vm59_vm1, %v31_v15  ;;  %2343 = vmatmul.msk.f32.gmra.mxu1 %vm59_vm1, %v30_v14  ;;  %v1014_v47 = vld [vmem:[%s5620_s3 + $0x308] sm:$0xff]  ;;  %v953_v14 = vld [vmem:[%s5620_s3 + $0x120] sm:$0xff] }
  0x19   :  { %2353 = vmatmul.msk.f32.gmra.mxu2 %vm59_vm1, %v31_v15  ;;  %1184 = vmatpush.msrb.mxu3 %v1018_v42  ;;  %v946_v57 = vld [vmem:[%s5620_s3 + $0xe8] sm:$0xff] }
  0x1a   :  { %2362 = vmatmul.msk.f32.gmra.mxu3 %vm59_vm1, %v31_v15  ;;  %1143 = vmatpush.msrb.mxu2 %v954_v40  ;;  %v1010_v61 = vld [vmem:[%s5620_s3 + $0x2e8] sm:$0xff] }
  0x1b   :  { %1059 = vmatpush.msrb.mxu0 %v961_v45  ;;  %1185 = vmatpush.msrb.mxu3 %v1014_v47  ;;  %v942_v62 = vld [vmem:[%s5620_s3 + $0xc8] sm:$0xff] }
  0x1c   :  { %1144 = vmatpush.msrb.mxu2 %v950_v43  ;;  %1101 = vmatpush.msra.mxu1 %v1021_v51  ;;  %v1006_v3 = vld [vmem:[%s5620_s3 + $0x2c8] sm:$0xff] }
  0x1d   :  { %1060 = vmatpush.msrb.mxu0 %v957_v48  ;;  %1186 = vmatpush.msrb.mxu3 %v1010_v61  ;;  %v938_v34 = vld [vmem:[%s5620_s3 + $0xa8] sm:$0xff]  ;;  %v941_v48 = vld [vmem:[%s5620_s3 + $0xc0] sm:$0xff] }
  0x1e   :  { %1102 = vmatpush.msra.mxu1 %v1017_v54  ;;  %1145 = vmatpush.msrb.mxu2 %v946_v57  ;;  %v1002_v42 = vld [vmem:[%s5620_s3 + $0x2a8] sm:$0xff]  ;;  %v1005_v57 = vld [vmem:[%s5620_s3 + $0x2c0] sm:$0xff] }
  0x1f   :  { %1187 = vmatpush.msrb.mxu3 %v1006_v3  ;;  %1061 = vmatpush.msrb.mxu0 %v953_v14  ;;  %v934_v43 = vld [vmem:[%s5620_s3 + $0x88] sm:$0xff] }
  0x20   :  { %2336 = vmatmul.msk.f32.gmra.mxu0 %vm59_vm1, %v32_v16  ;;  %2344 = vmatmul.msk.f32.gmra.mxu1 %vm59_vm1, %v31_v15 }
  0x21   :  { %2354 = vmatmul.msk.f32.gmra.mxu2 %vm59_vm1, %v32_v16  ;;  %1062 = vmatpush.msrb.mxu0 %v949_v19 }
  0x22   :  { %2363 = vmatmul.msk.f32.gmra.mxu3 %vm59_vm1, %v32_v16  ;;  %1146 = vmatpush.msrb.mxu2 %v942_v62 }
  0x23   :  { %1103 = vmatpush.msra.mxu1 %v1013_v23  ;;  %1063 = vmatpush.msrb.mxu0 %v945_v38 }
  0x24   :  { %1147 = vmatpush.msrb.mxu2 %v938_v34  ;;  %1188 = vmatpush.msrb.mxu3 %v1002_v42 }
  0x25   :  { %1064 = vmatpush.msrb.mxu0 %v941_v48 }
  0x26   :  { %1148 = vmatpush.msrb.mxu2 %v934_v43 }
  0x28   :  { %2337 = vmatmul.msk.f32.gmra.mxu0 %vm59_vm1, %v33_v17  ;;  %2345 = vmatmul.msk.f32.gmra.mxu1 %vm59_vm1, %v32_v16 }
  0x29   :  { %2355 = vmatmul.msk.f32.gmra.mxu2 %vm59_vm1, %v33_v17 }
  0x2a   :  { %2364 = vmatmul.msk.f32.gmra.mxu3 %vm59_vm1, %v33_v17 }
  0x30   :  { %2338 = vmatmul.msk.f32.gmra.mxu0 %vm59_vm1, %v34_v29  ;;  %2346 = vmatmul.msk.f32.gmra.mxu1 %vm59_vm1, %v33_v17 }
  0x31   :  { %2356 = vmatmul.msk.f32.gmra.mxu2 %vm59_vm1, %v34_v29 }
  0x32   :  { %2365 = vmatmul.msk.f32.gmra.mxu3 %vm59_vm1, %v34_v29 }
  0x38   :  { %2339 = vmatmul.msk.f32.gmra.mxu0 %vm59_vm1, %v35_v35  ;;  %2347 = vmatmul.msk.f32.gmra.mxu1 %vm59_vm1, %v34_v29  ;;  %v1009_v29 = vld [vmem:[%s5620_s3 + $0x2e0] sm:$0xff] }
  0x39   :  { %2357 = vmatmul.msk.f32.gmra.mxu2 %vm59_vm1, %v35_v35  ;;  %1104 = vmatpush.msra.mxu1 %v1009_v29 }
  0x3a   :  { %2366 = vmatmul.msk.f32.gmra.mxu3 %vm59_vm1, %v35_v35 }
  0x3b   :  { %1105 = vmatpush.msra.mxu1 %v1005_v57 }
  0x40   :  { %2348 = vmatmul.msk.f32.gmra.mxu1 %vm59_vm1, %v35_v35 }
  0x41   :  { %2358 = vmatmul.msk.f32.gmra.mxu2 %vm59_vm1, %v2774_v10 }
  0x42   :  { %2367 = vmatmul.msk.f32.gmra.mxu3 %vm59_vm1, %v2774_v10 }
  0x48   :  { %2349 = vmatmul.msk.f32.gmra.mxu1 %vm59_vm1, %v2774_v10 }
  0x85   :  { %v114_v49 = vpop.f32.mrf.mxu0  ;;  %v135_v50 = vpop.f32.mrf.mxu1 }
  0x86   :  { %v2930_v52 = vadd.f32 %v114_v49, %v2918_v46  ;;  %v2933_v53 = vadd.f32 %v135_v50, %v2918_v46  ;;  %v998_v50 = vld [vmem:[%s5620_s3 + $0x288] sm:$0xff] }
  0x87   :  { %1189 = vmatpush.msrb.mxu3 %v998_v50 }
  0x88   :  { %v2368_v55 = vmul.f32 -1.442695, %v2930_v52  ;;  %v2382_v58 = vmul.f32 -1.442695, %v2933_v53 }
  0x8a   :  { %2408 = vpow2.f32 %v2368_v55 }
  0x8b   :  { %2410 = vpow2.f32 %v2382_v58 }
  0x8c   :  { %v196_v63 = vpop.f32.mrf.mxu2 }
  0x8d   :  { %v2956_v0 = vadd.f32 %v196_v63, %v2939_v56  ;;  %v237_v1 = vpop.f32.mrf.mxu3  ;;  %v117_v2 = vpop.f32.mrf.mxu0 }
  0x8e   :  { %v2962_v4 = vadd.f32 %v237_v1, %v2945_v59  ;;  %v2965_v5 = vadd.f32 %v117_v2, %v2918_v46  ;;  %v155_v6 = vpop.f32.mrf.mxu1 }
  0x8f   :  { %v2384_v7 = vmul.f32 -1.442695, %v2956_v0  ;;  %v2969_v8 = vadd.f32 %v155_v6, %v2947_v60 }
  0x90   :  { %v2409_v9 = vpop.eup %2408  ;;  %v2385_v10 = vmul.f32 -1.442695, %v2962_v4  ;;  %v2370_v12 = vmul.f32 -1.442695, %v2965_v5 }
  0x91   :  { %v2972_v11 = vadd.f32 1.0, %v2409_v9  ;;  %2412 = vpow2.f32 %v2384_v7  ;;  %v2369_v13 = vmul.f32 -1.442695, %v2969_v8  ;;  %v2411_v15 = vpop.eup %2410 }
  0x92   :  { %2414 = vpow2.f32 %v2385_v10  ;;  %v2986_v21 = vadd.f32 1.0, %v2411_v15  ;;  %v937_v15 = vld [vmem:[%s5620_s3 + $0xa0] sm:$0xff] }
  0x93   :  { %2416 = vrcp.f32 %v2972_v11  ;;  %v334_v39 = vand.u32 2147483647, %v2972_v11  ;;  %v336_v40 = vand.u32 2147483648, %v2972_v11  ;;  %vm330_vm2 = vweird.f32 %v2972_v11  ;;  %1065 = vmatpush.msrb.mxu0 %v937_v15 }
  0x94   :  { %v199_v16 = vpop.f32.mrf.mxu2  ;;  %2418 = vpow2.f32 %v2370_v12 }
  0x95   :  { %v2981_v17 = vadd.f32 %v199_v16, %v2939_v56  ;;  %v240_v18 = vpop.f32.mrf.mxu3  ;;  %2420 = vpow2.f32 %v2369_v13  ;;  %v120_v31 = vpop.f32.mrf.mxu0  ;;  %vm3052_vm3 = vcmp.eq.f32.partialorder %v334_v39, 8.507059e+37  ;;  %v337_v62 = vor.u32 1.1754944e-38, %v336_v40 }
  0x96   :  { %v2989_v22 = vadd.f32 %v240_v18, %v2945_v59  ;;  %v158_v37 = vpop.f32.mrf.mxu1  ;;  %v3019_v41 = vadd.f32 %v120_v31, %v2918_v46  ;;  %v1001_v31 = vld [vmem:[%s5620_s3 + $0x2a0] sm:$0xff] }
  0x97   :  { %v2413_v20 = vpop.eup %2412  ;;  %v2386_v28 = vmul.f32 -1.442695, %v2981_v17  ;;  %v3036_v49 = vadd.f32 %v158_v37, %v2947_v60  ;;  %v926_v37 = vld [vmem:[%s5620_s3 + $0x48] sm:$0xff]  ;;  %1106 = vmatpush.msra.mxu1 %v1001_v31 }
  0x98   :  { %v2415_v24 = vpop.eup %2414  ;;  %v2994_v25 = vadd.f32 1.0, %v2413_v20  ;;  %v2387_v33 = vmul.f32 -1.442695, %v2989_v22  ;;  %v2372_v2 = vmul.f32 -1.442695, %v3019_v41  ;;  %v930_v20 = vld [vmem:[%s5620_s3 + $0x68] sm:$0xff] }
  0x99   :  { %v2996_v26 = vpop.eup %2416  ;;  %v2998_v27 = vadd.f32 1.0, %v2415_v24  ;;  %v3070_v13 = vmul.f32 -1.442695, %v3036_v49  ;;  %1149 = vmatpush.msrb.mxu2 %v930_v20 }
  0x9a   :  { %v326_v30 = vmul.f32 %v2996_v26, %v2972_v11  ;;  %2422 = vrcp.f32 %v2994_v25  ;;  %v2419_v32 = vpop.eup %2418  ;;  %v654_v54 = vand.u32 2147483647, %v2994_v25  ;;  %v656_v55 = vand.u32 2147483648, %v2994_v25 }
  0x9b   :  { %2424 = vrcp.f32 %v2986_v21  ;;  %v2421_v35 = vpop.eup %2420  ;;  %v3028_v45 = vadd.f32 1.0, %v2419_v32  ;;  %v671_v1 = vand.u32 2147483648, %v2998_v27  ;;  %vm331_vm4 = vweird.f32 %v2996_v26  ;;  %1150 = vmatpush.msrb.mxu2 %v926_v37 }
  0x9c   :  { %v327_v36 = vsub.f32 1.0, %v326_v30  ;;  %2426 = vrcp.f32 %v2998_v27  ;;  %v3030_v47 = vadd.f32 1.0, %v2421_v35  ;;  %v669_v7 = vand.u32 2147483647, %v2998_v27  ;;  %v202_v14 = vpop.f32.mrf.mxu2  ;;  %vm3091_vm8 = vmor %vm330_vm2, %vm331_vm4 }
  0x9d   :  { %2428 = vpow2.f32 %v2386_v28  ;;  %vm650_vm5 = vweird.f32 %v2994_v25  ;;  %vm3079_vm6 = vcmp.eq.f32.partialorder %v654_v54, 8.507059e+37  ;;  %v657_v19 = vor.u32 1.1754944e-38, %v656_v55 }
  0x9e   :  { %v328_v44 = vmul.f32 %v2996_v26, %v327_v36  ;;  %2430 = vpow2.f32 %v2387_v33  ;;  %vm665_vm7 = vweird.f32 %v2998_v27  ;;  %v672_v30 = vor.u32 1.1754944e-38, %v671_v1  ;;  %v994_v36 = vld [vmem:[%s5620_s3 + $0x268] sm:$0xff] }
  0x9f   :  { %2432 = vrcp.f32 %v3028_v45  ;;  %vm3105_vm10 = vcmp.eq.f32.partialorder %v669_v7, 8.507059e+37  ;;  %v3112_v35 = vadd.f32 %v202_v14, %v2939_v56  ;;  %v364_v40 = vand.u32 2147483647, %v3028_v45  ;;  %1190 = vmatpush.msrb.mxu3 %v994_v36 }
  0xa0   :  { %v3041_v51 = vpop.eup %2422  ;;  %v329_v6 = vadd.f32 %v2996_v26, %v328_v44  ;;  %2434 = vrcp.f32 %v3030_v47  ;;  %vm360_vm13 = vweird.f32 %v3028_v45  ;;  %v366_v57 = vand.u32 2147483648, %v3028_v45 }
  0xa1   :  { %v3050_v58 = vpop.eup %2424  ;;  %v646_v63 = vmul.f32 %v3041_v51, %v2994_v25  ;;  %vm651_vm9 = vweird.f32 %v3041_v51  ;;  %2436 = vpow2.f32 %v2372_v2  ;;  %vm345_vm14 = vweird.f32 %v3030_v47 }
  0xa2   :  { %v3060_v3 = vpop.eup %2426  ;;  %v3077_v16 = vmul.f32 %v3050_v58, %v2986_v21  ;;  %v333_v11 = vsel %vm3091_vm8, %v2996_v26, %v329_v6  ;;  %vm652_vm11 = vmor %vm650_vm5, %vm651_vm9  ;;  %vm3153_vm0 = vcmp.eq.f32.partialorder %v364_v40, 8.507059e+37  ;;  %v351_v2 = vand.u32 2147483648, %v3030_v47  ;;  %v990_v6 = vld [vmem:[%s5620_s3 + $0x248] sm:$0xff] }
  0xa3   :  { %v2429_v9 = vpop.eup %2428  ;;  %v647_v10 = vsub.f32 1.0, %v646_v63  ;;  %v661_v12 = vmul.f32 %v3060_v3, %v2998_v27  ;;  %vm666_vm12 = vweird.f32 %v3060_v3  ;;  %v338_v25 = vsel %vm3052_vm3, %v337_v62, %v333_v11  ;;  %1191 = vmatpush.msrb.mxu3 %v990_v6 }
  0xa4   :  { %v2431_v23 = vpop.eup %2430  ;;  %v3109_v34 = vadd.f32 1.0, %v2429_v9  ;;  %vm3148_vm15 = vmor %vm665_vm7, %vm666_vm12  ;;  %v349_v62 = vand.u32 2147483647, %v3030_v47  ;;  %v367_v20 = vor.u32 1.1754944e-38, %v366_v57  ;;  %v352_v31 = vor.u32 1.1754944e-38, %v351_v2  ;;  %v933_v2 = vld [vmem:[%s5620_s3 + $0x80] sm:$0xff] }
  0xa5   :  { %v648_v28 = vmul.f32 %v3041_v51, %v647_v10  ;;  %v662_v29 = vsub.f32 1.0, %v661_v12  ;;  %v3100_v32 = vpop.eup %2432  ;;  %v3134_v43 = vadd.f32 1.0, %v2431_v23  ;;  %1066 = vmatpush.msrb.mxu0 %v933_v2  ;;  %v985_v2 = vld [vmem:[%s5620_s3 + $0x220] sm:$0xff] }
  0xa6   :  { %v356_v39 = vmul.f32 %v3100_v32, %v3028_v45  ;;  %v3125_v42 = vpop.eup %2434  ;;  %2438 = vrcp.f32 %v3109_v34  ;;  %vm361_vm1 = vweird.f32 %v3100_v32  ;;  %v684_v9 = vand.u32 2147483647, %v3109_v34 }
  0xa7   :  { %v649_v26 = vadd.f32 %v3041_v51, %v648_v28  ;;  %v663_v38 = vmul.f32 %v3060_v3, %v662_v29  ;;  %v341_v54 = vmul.f32 %v3125_v42, %v3030_v47  ;;  %v2437_v27 = vpop.eup %2436  ;;  %2440 = vrcp.f32 %v3134_v43  ;;  %v243_v29 = vpop.f32.mrf.mxu3  ;;  %vm3188_vm4 = vmor %vm360_vm13, %vm361_vm1 }
  0xa8   :  { %v357_v50 = vsub.f32 1.0, %v356_v39  ;;  %v686_v15 = vand.u32 2147483648, %v3109_v34  ;;  %vm346_vm2 = vweird.f32 %v3125_v42  ;;  %vm3179_vm3 = vcmp.eq.f32.partialorder %v349_v62, 8.507059e+37  ;;  %v123_v47 = vpop.f32.mrf.mxu0 }
  0xa9   :  { %v653_v44 = vsel %vm652_vm11, %v3041_v51, %v649_v26  ;;  %v664_v48 = vadd.f32 %v3060_v3, %v663_v38  ;;  %v342_v61 = vsub.f32 1.0, %v341_v54  ;;  %vm680_vm5 = vweird.f32 %v3109_v34  ;;  %vm3205_vm7 = vmor %vm345_vm14, %vm346_vm2 }
  0xaa   :  { %v658_v55 = vsel %vm3079_vm6, %v657_v19, %v653_v44  ;;  %v358_v63 = vmul.f32 %v3100_v32, %v357_v50  ;;  %v565_v19 = vmul.f32 %v338_v25, %v2930_v52  ;;  %vm3193_vm6 = vcmp.eq.f32.partialorder %v684_v9, 8.507059e+37  ;;  %v205_v50 = vpop.f32.mrf.mxu2  ;;  %v993_v52 = vld [vmem:[%s5620_s3 + $0x260] sm:$0xff] }
  0xab   :  { %v668_v7 = vsel %vm3148_vm15, %v3060_v3, %v664_v48  ;;  %v885_v10 = vmul.f32 %v658_v55, %v2956_v0  ;;  %v343_v14 = vmul.f32 %v3125_v42, %v342_v61  ;;  %v3174_v3 = vadd.f32 1.0, %v2437_v27  ;;  %v161_v48 = vpop.f32.mrf.mxu1 }
  0xac   :  { %v359_v12 = vadd.f32 %v3100_v32, %v358_v63  ;;  %v2439_v18 = vpop.eup %2438  ;;  %v673_v23 = vsel %vm3105_vm10, %v672_v30, %v668_v7  ;;  %v687_v37 = vor.u32 1.1754944e-38, %v686_v15  ;;  %vm695_vm8 = vweird.f32 %v3134_v43  ;;  %v997_v15 = vld [vmem:[%s5620_s3 + $0x280] sm:$0xff] }
  0xad   :  { %v344_v24 = vadd.f32 %v3125_v42, %v343_v14  ;;  %v676_v28 = vmul.f32 %v2439_v18, %v3109_v34  ;;  %2442 = vrcp.f32 %v3174_v3  ;;  %v3198_v11 = vmax.f32 %v565_v19, %v885_v10  ;;  %v3209_v26 = vpop.eup %2440  ;;  %v929_v14 = vld [vmem:[%s5620_s3 + $0x60] sm:$0xff]  ;;  %1107 = vmatpush.msra.mxu1 %v997_v15 }
  0xae   :  { %v363_v33 = vsel %vm3188_vm4, %v3100_v32, %v359_v12  ;;  %v3212_v38 = vmul.f32 %v673_v23, %v2962_v4  ;;  %2444 = vpow2.f32 %v3070_v13  ;;  %vm681_vm9 = vweird.f32 %v2439_v18  ;;  %1067 = vmatpush.msrb.mxu0 %v929_v14  ;;  %v981_v15 = vld [vmem:[%s5620_s3 + $0x200] sm:$0xff] }
  0xaf   :  { %v677_v36 = vsub.f32 1.0, %v676_v28  ;;  %v348_v39 = vsel %vm3205_vm7, %v3125_v42, %v344_v24  ;;  %v691_v40 = vmul.f32 %v3209_v26, %v3134_v43  ;;  %v699_v44 = vand.u32 2147483647, %v3134_v43  ;;  %vm682_vm10 = vmor %vm680_vm5, %vm681_vm9  ;;  %v246_v24 = vpop.f32.mrf.mxu3  ;;  %1108 = vmatpush.msra.mxu1 %v993_v52 }
  0xb0   :  { %v368_v4 = vsel %vm3153_vm0, %v367_v20, %v363_v33  ;;  %v701_v54 = vand.u32 2147483648, %v3134_v43  ;;  %v2388_v42 = vmul.f32 -1.442695, %v3112_v35  ;;  %v3227_v25 = vadd.f32 %v243_v29, %v2945_v59  ;;  %v925_v29 = vld [vmem:[%s5620_s3 + $0x40] sm:$0xff] }
  0xb1   :  { %v678_v32 = vmul.f32 %v2439_v18, %v677_v36  ;;  %v353_v13 = vsel %vm3179_vm3, %v352_v31, %v348_v39  ;;  %v692_v57 = vsub.f32 1.0, %v691_v40  ;;  %v3232_v51 = vadd.f32 %v123_v47, %v2918_v46  ;;  %1068 = vmatpush.msrb.mxu0 %v925_v29  ;;  %v922_v39 = vld [vmem:[%s5620_s3 + $0x28] sm:$0xff]  ;;  %v921_v47 = vld [vmem:[%s5620_s3 + $0x20] sm:$0xff] }
  0xb2   :  { %2446 = vpow2.f32 %v2388_v42  ;;  %v2389_v1 = vmul.f32 -1.442695, %v3227_v25  ;;  %v3240_v61 = vadd.f32 %v161_v48, %v2947_v60  ;;  %v3243_v62 = vadd.f32 %v205_v50, %v2939_v56  ;;  %1151 = vmatpush.msrb.mxu2 %v922_v39 }
  0xb3   :  { %v679_v55 = vadd.f32 %v2439_v18, %v678_v32  ;;  %v3234_v63 = vpop.eup %2442  ;;  %v693_v27 = vmul.f32 %v3209_v26, %v692_v57  ;;  %v394_v7 = vand.u32 2147483647, %v3174_v3  ;;  %vm696_vm11 = vweird.f32 %v3209_v26  ;;  %1069 = vmatpush.msrb.mxu0 %v921_v47 }
  0xb4   :  { %v386_v34 = vmul.f32 %v3234_v63, %v3174_v3  ;;  %v2445_v9 = vpop.eup %2444  ;;  %2448 = vpow2.f32 %v2389_v1  ;;  %v2374_v12 = vmul.f32 -1.442695, %v3232_v51  ;;  %v2373_v23 = vmul.f32 -1.442695, %v3240_v61  ;;  %vm3280_vm13 = vmor %vm695_vm8, %vm696_vm11  ;;  %v917_v1 = vld [vmem:[%s5620_s3] sm:$0xff] }
  0xb5   :  { %v683_v6 = vsel %vm682_vm10, %v2439_v18, %v679_v55  ;;  %v694_v18 = vadd.f32 %v3209_v26, %v693_v27  ;;  %v3263_v20 = vadd.f32 1.0, %v2445_v9  ;;  %vm390_vm12 = vweird.f32 %v3174_v3  ;;  %v986_v55 = vld [vmem:[%s5620_s3 + $0x228] sm:$0xff]  ;;  %1070 = vmatpush.msrb.mxu0 %v917_v1 }
  0xb6   :  { %v688_v10 = vsel %vm3193_vm6, %v687_v37, %v683_v6  ;;  %v387_v19 = vsub.f32 1.0, %v386_v34  ;;  %v396_v0 = vand.u32 2147483648, %v3174_v3  ;;  %2450 = vpow2.f32 %v2374_v12  ;;  %1192 = vmatpush.msrb.mxu3 %v986_v55  ;;  %1071 = vmatmul.f32.vlgmr.msrb.gmra.mxu0 %v3198_v11 }
  0xb7   :  { %v2390_v28 = vmul.f32 -1.442695, %v3243_v62  ;;  %v566_v31 = vmul.f32 %v353_v13, %v2969_v8  ;;  %vm391_vm14 = vweird.f32 %v3234_v63  ;;  %2452 = vrcp.f32 %v3263_v20  ;;  %v126_v13 = vpop.f32.mrf.mxu0 }
  0xb8   :  { %v388_v33 = vmul.f32 %v3234_v63, %v387_v19  ;;  %v2447_v45 = vpop.eup %2446  ;;  %v887_v36 = vmul.f32 %v688_v10, %v2981_v17  ;;  %vm3288_vm15 = vcmp.eq.f32.partialorder %v699_v44, 8.507059e+37  ;;  %v702_v43 = vor.u32 1.1754944e-38, %v701_v54  ;;  %v989_v17 = vld [vmem:[%s5620_s3 + $0x240] sm:$0xff]  ;;  %vm3315_vm0 = vmor %vm390_vm12, %vm391_vm14 }
  0xb9   :  { %v3293_v37 = vadd.f32 %v246_v24, %v2945_v59  ;;  %v698_v32 = vsel %vm3280_vm13, %v3209_v26, %v694_v18  ;;  %v3308_v44 = vadd.f32 1.0, %v2447_v45  ;;  %2454 = vpow2.f32 %v2373_v23  ;;  %1109 = vmatpush.msra.mxu1 %v989_v17 }
  0xba   :  { %v389_v40 = vadd.f32 %v3234_v63, %v388_v33  ;;  %v2449_v48 = vpop.eup %2448  ;;  %v567_v50 = vmul.f32 %v368_v4, %v2965_v5  ;;  %vm3319_vm1 = vcmp.eq.f32.partialorder %v394_v7, 8.507059e+37  ;;  %v397_v42 = vor.u32 1.1754944e-38, %v396_v0  ;;  %v918_v5 = vld [vmem:[%s5620_s3 + $0x8] sm:$0xff] }
  0xbb   :  { %2456 = vpow2.f32 %v2390_v28  ;;  %v3330_v3 = vmax.f32 %v566_v31, %v3212_v38  ;;  %v379_v57 = vand.u32 2147483647, %v3263_v20  ;;  %1152 = vmatpush.msrb.mxu2 %v918_v5  ;;  %v703_v6 = vsel %vm3288_vm15, %v702_v43, %v698_v32  ;;  %v982_v7 = vld [vmem:[%s5620_s3 + $0x208] sm:$0xff]  ;;  %1110 = vmatpush.msra.mxu1 %v985_v2 }
  0xbc   :  { %v393_v4 = vsel %vm3315_vm0, %v3234_v63, %v389_v40  ;;  %2458 = vrcp.f32 %v3308_v44  ;;  %v2451_v38 = vpop.eup %2450  ;;  %v381_v63 = vand.u32 2147483648, %v3263_v20  ;;  %v3346_v27 = vadd.f32 1.0, %v2449_v48  ;;  %1193 = vmatpush.msrb.mxu3 %v982_v7  ;;  %1153 = vmatmul.f32.vlgmr.msrb.gmra.mxu2 %v3198_v11 }
  0xbd   :  { %v2391_v34 = vmul.f32 -1.442695, %v3293_v37  ;;  %v2453_v9 = vpop.eup %2452  ;;  %v3352_v10 = vmax.f32 %v567_v50, %v887_v36  ;;  %vm375_vm2 = vweird.f32 %v3263_v20  ;;  %v3355_v12 = vadd.f32 1.0, %v2451_v38  ;;  %1111 = vmatpush.msra.mxu1 %v981_v15  ;;  %1194 = vmatmul.f32.vlgmr.msrb.gmra.mxu3 %v3330_v3 }
  0xbe   :  { %v3358_v14 = vadd.f32 %v126_v13, %v2918_v46  ;;  %v398_v18 = vsel %vm3319_vm1, %v397_v42, %v393_v4  ;;  %v371_v19 = vmul.f32 %v2453_v9, %v3263_v20  ;;  %v714_v23 = vand.u32 2147483647, %v3308_v44  ;;  %1112 = vmatmul.f32.vlgmr.msra.gmra.mxu1 %v3330_v3 }
  0xbf   :  { %2460 = vrcp.f32 %v3346_v27  ;;  %v2455_v24 = vpop.eup %2454  ;;  %v888_v0 = vmul.f32 %v703_v6, %v2989_v22  ;;  %vm3371_vm3 = vcmp.eq.f32.partialorder %v379_v57, 8.507059e+37  ;;  %v716_v29 = vand.u32 2147483648, %v3308_v44  ;;  %1074 = vmatmul.f32.gmra.mxu0 %v3352_v10 }
  0xc0   :  { %2462 = vrcp.f32 %v3355_v12  ;;  %v372_v31 = vsub.f32 1.0, %v371_v19  ;;  %v382_v30 = vor.u32 1.1754944e-38, %v381_v63  ;;  %vm710_vm4 = vweird.f32 %v3308_v44 }
  0xc1   :  { %v2457_v52 = vpop.eup %2456  ;;  %2464 = vpow2.f32 %v2391_v34  ;;  %v3381_v22 = vmul.f32 %v398_v18, %v3019_v41  ;;  %v731_v45 = vand.u32 2147483648, %v3346_v27  ;;  %v3384_v36 = vadd.f32 1.0, %v2455_v24  ;;  %v164_v24 = vpop.f32.mrf.mxu1 }
  0xc2   :  { %v2459_v33 = vpop.eup %2458  ;;  %v3386_v8 = vadd.f32 1.0, %v2457_v52  ;;  %v373_v43 = vmul.f32 %v2453_v9, %v372_v31  ;;  %vm376_vm5 = vweird.f32 %v2453_v9  ;;  %vm3389_vm6 = vcmp.eq.f32.partialorder %v714_v23, 8.507059e+37 }
  0xc3   :  { %v706_v39 = vmul.f32 %v2459_v33, %v3308_v44  ;;  %v717_v17 = vor.u32 1.1754944e-38, %v716_v29  ;;  %v426_v32 = vand.u32 2147483648, %v3355_v12  ;;  %2466 = vrcp.f32 %v3384_v36  ;;  %vm377_vm8 = vmor %vm375_vm2, %vm376_vm5 }
  0xc4   :  { %v2376_v41 = vmul.f32 -1.442695, %v3358_v14  ;;  %v374_v48 = vadd.f32 %v2453_v9, %v373_v43  ;;  %vm725_vm7 = vweird.f32 %v3346_v27  ;;  %v729_v54 = vand.u32 2147483647, %v3346_v27  ;;  %1156 = vmatmul.f32.gmra.mxu2 %v3352_v10 }
  0xc5   :  { %v3396_v40 = vpop.eup %2460  ;;  %v707_v50 = vsub.f32 1.0, %v706_v39  ;;  %2468 = vrcp.f32 %v3386_v8  ;;  %v3407_v13 = vor.u32 1.1754944e-38, %v731_v45  ;;  %vm420_vm9 = vweird.f32 %v3355_v12 }
  0xc6   :  { %v3401_v26 = vpop.eup %2462  ;;  %v721_v42 = vmul.f32 %v3396_v40, %v3346_v27  ;;  %v424_v55 = vand.u32 2147483647, %v3355_v12  ;;  %v378_v4 = vsel %vm377_vm8, %v2453_v9, %v374_v48  ;;  %vm711_vm10 = vweird.f32 %v2459_v33 }
  0xc7   :  { %v2465_v5 = vpop.eup %2464  ;;  %v708_v57 = vmul.f32 %v2459_v33, %v707_v50  ;;  %v416_v1 = vmul.f32 %v3401_v26, %v3355_v12  ;;  %v383_v20 = vsel %vm3371_vm3, %v382_v30, %v378_v4  ;;  %v427_v38 = vor.u32 1.1754944e-38, %v426_v32  ;;  %vm712_vm12 = vmor %vm710_vm4, %vm711_vm10  ;;  %v208_v30 = vpop.f32.mrf.mxu2 }
  0xc8   :  { %v722_v2 = vsub.f32 1.0, %v721_v42  ;;  %v409_v6 = vand.u32 2147483647, %v3384_v36  ;;  %v568_v63 = vmul.f32 %v383_v20, %v3036_v49  ;;  %vm3419_vm11 = vcmp.eq.f32.partialorder %v729_v54, 8.507059e+37  ;;  %v249_v42 = vpop.f32.mrf.mxu3 }
  0xc9   :  { %v709_v34 = vadd.f32 %v2459_v33, %v708_v57  ;;  %v417_v9 = vsub.f32 1.0, %v416_v1  ;;  %v411_v15 = vand.u32 2147483648, %v3384_v36  ;;  %v2467_v18 = vpop.eup %2466  ;;  %vm726_vm13 = vweird.f32 %v3396_v40 }
  0xca   :  { %v723_v19 = vmul.f32 %v3396_v40, %v722_v2  ;;  %vm3428_vm14 = vcmp.eq.f32.partialorder %v424_v55, 8.507059e+37  ;;  %v3432_v49 = vadd.f32 1.0, %v2465_v5  ;;  %2470 = vpow2.f32 %v2376_v41  ;;  %vm3452_vm0 = vmor %vm725_vm7, %vm726_vm13 }
  0xcb   :  { %v2469_v28 = vpop.eup %2468  ;;  %v3434_v29 = vmax.f32 %v568_v63, %v888_v0  ;;  %v713_v52 = vsel %vm712_vm12, %v2459_v33, %v709_v34  ;;  %v418_v31 = vmul.f32 %v3401_v26, %v417_v9  ;;  %v401_v44 = vmul.f32 %v2467_v18, %v3384_v36 }
  0xcc   :  { %v718_v45 = vsel %vm3389_vm6, %v717_v17, %v713_v52  ;;  %v724_v43 = vadd.f32 %v3396_v40, %v723_v19  ;;  %vm421_vm15 = vweird.f32 %v3401_v26  ;;  %v736_v39 = vmul.f32 %v2469_v28, %v3386_v8 }
  0xcd   :  { %v889_v32 = vmul.f32 %v718_v45, %v3112_v35  ;;  %v419_v0 = vadd.f32 %v3401_v26, %v418_v31  ;;  %v402_v41 = vsub.f32 1.0, %v401_v44  ;;  %v746_v33 = vand.u32 2147483648, %v3386_v8  ;;  %1115 = vmatmul.f32.gmra.mxu1 %v3434_v29  ;;  %1197 = vmatmul.f32.gmra.mxu3 %v3434_v29  ;;  %vm3472_vm3 = vmor %vm420_vm9, %vm421_vm15 }
  0xce   :  { %vm405_vm1 = vweird.f32 %v3384_v36  ;;  %vm3457_vm2 = vcmp.eq.f32.partialorder %v409_v6, 8.507059e+37  ;;  %v737_v17 = vsub.f32 1.0, %v736_v39  ;;  %2472 = vrcp.f32 %v3432_v49  ;;  %v129_v36 = vpop.f32.mrf.mxu0 }
  0xcf   :  { %v3463_v48 = vmax.f32 %v3381_v22, %v889_v32  ;;  %v728_v27 = vsel %vm3452_vm0, %v3396_v40, %v724_v43  ;;  %v403_v54 = vmul.f32 %v2467_v18, %v402_v41  ;;  %vm406_vm4 = vweird.f32 %v2467_v18 }
  0xd0   :  { %v2471_v55 = vpop.eup %2470  ;;  %v423_v22 = vsel %vm3472_vm3, %v3401_v26, %v419_v0  ;;  %v738_v5 = vmul.f32 %v2469_v28, %v737_v17  ;;  %vm741_vm5 = vweird.f32 %v2469_v28  ;;  %v744_v40 = vand.u32 2147483647, %v3386_v8  ;;  %vm407_vm7 = vmor %vm405_vm1, %vm406_vm4 }
  0xd1   :  { %v404_v4 = vadd.f32 %v2467_v18, %v403_v54  ;;  %v412_v57 = vor.u32 1.1754944e-38, %v411_v15  ;;  %vm740_vm6 = vweird.f32 %v3386_v8  ;;  %v747_v12 = vor.u32 1.1754944e-38, %v746_v33  ;;  %1077 = vmatmul.f32.gmra.mxu0 %v3463_v48  ;;  %1159 = vmatmul.f32.gmra.mxu2 %v3463_v48 }
  0xd2   :  { %v733_v1 = vsel %vm3419_vm11, %v3407_v13, %v728_v27  ;;  %v739_v26 = vadd.f32 %v2469_v28, %v738_v5  ;;  %v3488_v20 = vadd.f32 1.0, %v2471_v55  ;;  %v3491_v2 = vadd.f32 %v164_v24, %v2947_v60  ;;  %vm742_vm8 = vmor %vm740_vm6, %vm741_vm5  ;;  %v211_v24 = vpop.f32.mrf.mxu2  ;;  %v1044_v5 = vld [vmem:[%s5620_s3 + $0x3f8] sm:$0xff] }
  0xd3   :  { %v428_v8 = vsel %vm3428_vm14, %v427_v38, %v423_v22  ;;  %v408_v6 = vsel %vm407_vm7, %v2467_v18, %v404_v4  ;;  %v3497_v63 = vadd.f32 %v208_v30, %v2939_v56  ;;  %v3500_v13 = vadd.f32 %v249_v42, %v2945_v59  ;;  %v167_v38 = vpop.f32.mrf.mxu1  ;;  %v980_v22 = vld [vmem:[%s5620_s3 + $0x1f8] sm:$0xff]  ;;  %1342 = vmatpush.msra.mxu3 %v1044_v5 }
  0xd4   :  { %v3502_v34 = vpop.eup %2472  ;;  %v413_v7 = vsel %vm3457_vm2, %v412_v57, %v408_v6  ;;  %v743_v9 = vsel %vm742_vm8, %v2469_v28, %v739_v26  ;;  %vm745_vm9 = vcmp.eq.f32.partialorder %v744_v40, 8.507059e+37  ;;  %2474 = vrcp.f32 %v3488_v20  ;;  %v976_v40 = vld [vmem:[%s5620_s3 + $0x1d8] sm:$0xff]  ;;  %1301 = vmatpush.msra.mxu2 %v980_v22 }
  0xd5   :  { %v890_v15 = vmul.f32 %v733_v1, %v3227_v25  ;;  %v570_v18 = vmul.f32 %v413_v7, %v3240_v61  ;;  %v748_v19 = vsel %vm745_vm9, %v747_v12, %v743_v9  ;;  %v751_v23 = vmul.f32 %v3502_v34, %v3432_v49 }
  0xd6   :  { %v537_v52 = vsub.f32 1.0, %v3077_v16  ;;  %v571_v31 = vmul.f32 %v428_v8, %v3232_v51  ;;  %v891_v44 = vmul.f32 %v748_v19, %v3243_v62  ;;  %v2375_v28 = vmul.f32 -1.442695, %v3491_v2  ;;  %v252_v62 = vpop.f32.mrf.mxu3  ;;  %v132_v4 = vpop.f32.mrf.mxu0  ;;  %1302 = vmatpush.msra.mxu2 %v976_v40 }
  0xd7   :  { %v3515_v30 = vmax.f32 %v570_v18, %v890_v15  ;;  %v752_v45 = vsub.f32 1.0, %v751_v23  ;;  %v2392_v25 = vmul.f32 -1.442695, %v3497_v63  ;;  %v2393_v61 = vmul.f32 -1.442695, %v3500_v13 }
  0xd8   :  { %v3519_v43 = vmax.f32 %v571_v31, %v891_v44  ;;  %2476 = vpow2.f32 %v2375_v28  ;;  %v3523_v16 = vadd.f32 %v129_v36, %v2918_v46  ;;  %v3526_v51 = vadd.f32 %v167_v38, %v2947_v60 }
  0xd9   :  { %v753_v39 = vmul.f32 %v3502_v34, %v752_v45  ;;  %2478 = vpow2.f32 %v2392_v25  ;;  %1118 = vmatmul.f32.gmra.mxu1 %v3515_v30  ;;  %1200 = vmatmul.f32.gmra.mxu3 %v3515_v30  ;;  %v3533_v0 = vmul.f32 %v3050_v58, %v537_v52  ;;  %v3536_v41 = vadd.f32 %v211_v24, %v2939_v56 }
  0xda   :  { %v3530_v32 = vpop.eup %2474  ;;  %2480 = vpow2.f32 %v2393_v61  ;;  %1080 = vmatmul.f32.gmra.mxu0 %v3519_v43  ;;  %1162 = vmatmul.f32.gmra.mxu2 %v3519_v43  ;;  %vm756_vm10 = vweird.f32 %v3502_v34  ;;  %v759_v33 = vand.u32 2147483647, %v3432_v49  ;;  %v2378_v35 = vmul.f32 -1.442695, %v3523_v16  ;;  %v214_v9 = vpop.f32.mrf.mxu2 }
  0xdb   :  { %v446_v47 = vmul.f32 %v3530_v32, %v3488_v20  ;;  %v754_v17 = vadd.f32 %v3502_v34, %v753_v39  ;;  %v2377_v27 = vmul.f32 -1.442695, %v3526_v51  ;;  %v2394_v50 = vmul.f32 -1.442695, %v3536_v41  ;;  %v170_v26 = vpop.f32.mrf.mxu1 }
  0xdc   :  { %v3549_v54 = vadd.f32 %v252_v62, %v2945_v59  ;;  %vm755_vm11 = vweird.f32 %v3432_v49  ;;  %v761_v42 = vand.u32 2147483648, %v3432_v49  ;;  %2482 = vpow2.f32 %v2378_v35 }
  0xdd   :  { %v447_v55 = vsub.f32 1.0, %v446_v47  ;;  %vm450_vm12 = vweird.f32 %v3488_v20  ;;  %v454_v12 = vand.u32 2147483647, %v3488_v20  ;;  %v456_v1 = vand.u32 2147483648, %v3488_v20  ;;  %vm3569_vm13 = vmor %vm755_vm11, %vm756_vm10 }
  0xde   :  { %v2477_v57 = vpop.eup %2476  ;;  %2484 = vpow2.f32 %v2377_v27  ;;  %vm451_vm14 = vweird.f32 %v3530_v32  ;;  %v758_v15 = vsel %vm3569_vm13, %v3502_v34, %v754_v17  ;;  %v2395_v49 = vmul.f32 -1.442695, %v3549_v54  ;;  %v255_v47 = vpop.f32.mrf.mxu3 }
  0xdf   :  { %v2479_v8 = vpop.eup %2478  ;;  %v448_v36 = vmul.f32 %v3530_v32, %v447_v55  ;;  %v3575_v7 = vadd.f32 1.0, %v2477_v57  ;;  %2486 = vpow2.f32 %v2394_v50  ;;  %v3584_v19 = vadd.f32 %v132_v4, %v2918_v46  ;;  %vm3595_vm0 = vmor %vm450_vm12, %vm451_vm14 }
  0xe0   :  { %v2481_v38 = vpop.eup %2480  ;;  %v3580_v18 = vadd.f32 1.0, %v2479_v8  ;;  %v762_v23 = vor.u32 1.1754944e-38, %v761_v42  ;;  %v3589_v52 = vadd.f32 %v170_v26, %v2947_v60  ;;  %vm760_vm15 = vcmp.eq.f32.partialorder %v759_v33, 8.507059e+37 }
  0xe1   :  { %v449_v24 = vadd.f32 %v3530_v32, %v448_v36  ;;  %2488 = vrcp.f32 %v3575_v7  ;;  %vm3599_vm1 = vcmp.eq.f32.partialorder %v454_v12, 8.507059e+37  ;;  %v3605_v31 = vadd.f32 %v214_v9, %v2939_v56 }
  0xe2   :  { %2490 = vrcp.f32 %v3580_v18  ;;  %v2483_v44 = vpop.eup %2482  ;;  %v763_v28 = vsel %vm760_vm15, %v762_v23, %v758_v15  ;;  %v457_v20 = vor.u32 1.1754944e-38, %v456_v1  ;;  %v3610_v25 = vadd.f32 1.0, %v2481_v38 }
  0xe3   :  { %v453_v45 = vsel %vm3595_vm0, %v3530_v32, %v449_v24  ;;  %v439_v39 = vand.u32 2147483647, %v3575_v7  ;;  %v3613_v62 = vadd.f32 1.0, %v2483_v44  ;;  %2492 = vpow2.f32 %v2395_v49  ;;  %v1040_v32 = vld [vmem:[%s5620_s3 + $0x3d8] sm:$0xff] }
  0xe4   :  { %v2485_v61 = vpop.eup %2484  ;;  %v2380_v33 = vmul.f32 -1.442695, %v3584_v19  ;;  %v441_v17 = vand.u32 2147483648, %v3575_v7  ;;  %v774_v27 = vand.u32 2147483647, %v3580_v18  ;;  %2494 = vrcp.f32 %v3610_v25  ;;  %1343 = vmatpush.msra.mxu3 %v1040_v32 }
  0xe5   :  { %v2487_v35 = vpop.eup %2486  ;;  %v3623_v50 = vmul.f32 -1.442695, %v3589_v52  ;;  %v3626_v42 = vmul.f32 %v763_v28, %v3293_v37  ;;  %v458_v55 = vsel %vm3599_vm1, %v457_v20, %v453_v45  ;;  %2496 = vrcp.f32 %v3613_v62 }
  0xe6   :  { %v3632_v22 = vmul.f32 -1.442695, %v3605_v31  ;;  %v776_v40 = vand.u32 2147483648, %v3580_v18  ;;  %v3635_v4 = vadd.f32 1.0, %v2485_v61  ;;  %v3637_v57 = vadd.f32 1.0, %v2487_v35 }
  0xe7   :  { %v2489_v5 = vpop.eup %2488  ;;  %v3640_v12 = vadd.f32 %v255_v47, %v2945_v59  ;;  %vm435_vm2 = vweird.f32 %v3575_v7  ;;  %vm3644_vm3 = vcmp.eq.f32.partialorder %v439_v39, 8.507059e+37  ;;  %vm770_vm4 = vweird.f32 %v3580_v18  ;;  %v979_v47 = vld [vmem:[%s5620_s3 + $0x1f0] sm:$0xff] }
  0xe8   :  { %v2491_v37 = vpop.eup %2490  ;;  %v431_v1 = vmul.f32 %v2489_v5, %v3575_v7  ;;  %v3650_v8 = vmul.f32 %v458_v55, %v3358_v14  ;;  %v442_v6 = vor.u32 1.1754944e-38, %v441_v17  ;;  %vm3653_vm5 = vcmp.eq.f32.partialorder %v774_v27, 8.507059e+37  ;;  %1219 = vmatpush.msra.mxu0 %v979_v47 }
  0xe9   :  { %v766_v36 = vmul.f32 %v2491_v37, %v3580_v18  ;;  %v2493_v38 = vpop.eup %2492  ;;  %v789_v49 = vand.u32 2147483647, %v3610_v25  ;;  %v791_v23 = vand.u32 2147483648, %v3610_v25  ;;  %2498 = vrcp.f32 %v3635_v4  ;;  %v972_v18 = vld [vmem:[%s5620_s3 + $0x1b8] sm:$0xff] }
  0xea   :  { %v432_v15 = vsub.f32 1.0, %v431_v1  ;;  %v3660_v24 = vpop.eup %2494  ;;  %v777_v14 = vor.u32 1.1754944e-38, %v776_v40  ;;  %v486_v46 = vand.u32 2147483648, %v3613_v62  ;;  %2500 = vrcp.f32 %v3637_v57  ;;  %1303 = vmatpush.msra.mxu2 %v972_v18 }
  0xeb   :  { %v767_v34 = vsub.f32 1.0, %v766_v36  ;;  %v3664_v44 = vpop.eup %2496  ;;  %vm436_vm6 = vweird.f32 %v2489_v5  ;;  %v781_v45 = vmul.f32 %v3660_v24, %v3610_v25  ;;  %vm785_vm7 = vweird.f32 %v3610_v25  ;;  %v1043_v36 = vld [vmem:[%s5620_s3 + $0x3f0] sm:$0xff] }
  0xec   :  { %v433_v28 = vmul.f32 %v2489_v5, %v432_v15  ;;  %vm771_vm8 = vweird.f32 %v2491_v37  ;;  %v476_v61 = vmul.f32 %v3664_v44, %v3613_v62  ;;  %v484_v39 = vand.u32 2147483647, %v3613_v62  ;;  %vm437_vm11 = vmor %vm435_vm2, %vm436_vm6  ;;  %1260 = vmatpush.msrb.mxu1 %v1043_v36  ;;  %v1032_v36 = vld [vmem:[%s5620_s3 + $0x398] sm:$0xff] }
  0xed   :  { %v768_v20 = vmul.f32 %v2491_v37, %v767_v34  ;;  %v782_v17 = vsub.f32 1.0, %v781_v45  ;;  %vm3675_vm9 = vcmp.eq.f32.partialorder %v789_v49, 8.507059e+37  ;;  %v792_v32 = vor.u32 1.1754944e-38, %v791_v23  ;;  %vm772_vm12 = vmor %vm770_vm4, %vm771_vm8 }
  0xee   :  { %v434_v35 = vadd.f32 %v2489_v5, %v433_v28  ;;  %vm480_vm10 = vweird.f32 %v3613_v62  ;;  %v477_v40 = vsub.f32 1.0, %v476_v61  ;;  %v3682_v1 = vor.u32 1.1754944e-38, %v486_v46  ;;  %v960_v62 = vld [vmem:[%s5620_s3 + $0x158] sm:$0xff] }
  0xef   :  { %v769_v55 = vadd.f32 %v2491_v37, %v768_v20  ;;  %2502 = vpow2.f32 %v2380_v33  ;;  %v3687_v15 = vpop.eup %2498  ;;  %v783_v23 = vmul.f32 %v3660_v24, %v782_v17  ;;  %vm786_vm13 = vweird.f32 %v3660_v24 }
  0xf0   :  { %v438_v49 = vsel %vm437_vm11, %v2489_v5, %v434_v35  ;;  %v3694_v7 = vadd.f32 1.0, %v2493_v38  ;;  %v3696_v34 = vpop.eup %2500  ;;  %v478_v28 = vmul.f32 %v3664_v44, %v477_v40  ;;  %v461_v5 = vmul.f32 %v3687_v15, %v3635_v4  ;;  %v975_v38 = vld [vmem:[%s5620_s3 + $0x1d0] sm:$0xff]  ;;  %vm3719_vm14 = vmor %vm785_vm7, %vm786_vm13 }
  0xf1   :  { %v443_v33 = vsel %vm3644_vm3, %v442_v6, %v438_v49  ;;  %v773_v46 = vsel %vm772_vm12, %v2491_v37, %v769_v55  ;;  %v784_v37 = vadd.f32 %v3660_v24, %v783_v23  ;;  %v471_v6 = vand.u32 2147483648, %v3635_v4  ;;  %1220 = vmatpush.msra.mxu0 %v975_v38  ;;  %v1039_v55 = vld [vmem:[%s5620_s3 + $0x3d0] sm:$0xff]  ;;  %v964_v38 = vld [vmem:[%s5620_s3 + $0x178] sm:$0xff] }
  0xf2   :  { %v572_v45 = vmul.f32 %v443_v33, %v3491_v2  ;;  %v778_v26 = vsel %vm3653_vm5, %v777_v14, %v773_v46  ;;  %v462_v2 = vsub.f32 1.0, %v461_v5  ;;  %vm465_vm15 = vweird.f32 %v3635_v4  ;;  %v1036_v14 = vld [vmem:[%s5620_s3 + $0x3b8] sm:$0xff]  ;;  %1261 = vmatpush.msrb.mxu1 %v1039_v55  ;;  %v959_v35 = vld [vmem:[%s5620_s3 + $0x150] sm:$0xff] }
  0xf3   :  { %v893_v20 = vmul.f32 %v778_v26, %v3497_v63  ;;  %v796_v9 = vmul.f32 %v3696_v34, %v3637_v57  ;;  %v968_v63 = vld [vmem:[%s5620_s3 + $0x198] sm:$0xff]  ;;  %v788_v47 = vsel %vm3719_vm14, %v3660_v24, %v784_v37  ;;  %vm3738_vm0 = vcmp.eq.f32.partialorder %v484_v39, 8.507059e+37  ;;  %1344 = vmatpush.msra.mxu3 %v1036_v14  ;;  %v173_v26 = vpop.f32.mrf.mxu1  ;;  %v1035_v37 = vld [vmem:[%s5620_s3 + $0x3b0] sm:$0xff] }
  0xf4   :  { %v3733_v25 = vmax.f32 %v572_v45, %v3626_v42  ;;  %v469_v17 = vand.u32 2147483647, %v3635_v4  ;;  %2504 = vrcp.f32 %v3694_v7  ;;  %1304 = vmatpush.msra.mxu2 %v968_v63  ;;  %v971_v42 = vld [vmem:[%s5620_s3 + $0x1b0] sm:$0xff]  ;;  %vm481_vm1 = vweird.f32 %v3664_v44  ;;  %1262 = vmatpush.msrb.mxu1 %v1035_v37 }
  0xf5   :  { %v2503_v40 = vpop.eup %2502  ;;  %v3751_v24 = vmax.f32 %v3650_v8, %v893_v20  ;;  %v463_v39 = vmul.f32 %v3687_v15, %v462_v2  ;;  %vm466_vm2 = vweird.f32 %v3687_v15  ;;  %v479_v49 = vadd.f32 %v3664_v44, %v478_v28  ;;  %1345 = vmatpush.msra.mxu3 %v1032_v36  ;;  %1221 = vmatpush.msra.mxu0 %v971_v42  ;;  %vm3792_vm5 = vmor %vm480_vm10, %vm481_vm1  ;;  %v967_v2 = vld [vmem:[%s5620_s3 + $0x190] sm:$0xff] }
  0xf6   :  { %v472_v23 = vor.u32 1.1754944e-38, %v471_v6  ;;  %v797_v33 = vsub.f32 1.0, %v796_v9  ;;  %v804_v46 = vand.u32 2147483647, %v3637_v57  ;;  %v793_v8 = vsel %vm3675_vm9, %v792_v32, %v788_v47  ;;  %1121 = vmatmul.f32.gmra.mxu1 %v3733_v25  ;;  %1203 = vmatmul.f32.gmra.mxu3 %v3733_v25  ;;  %vm3775_vm4 = vmor %vm465_vm15, %vm466_vm2  ;;  %v1028_v6 = vld [vmem:[%s5620_s3 + $0x378] sm:$0xff]  ;;  %v217_v47 = vpop.f32.mrf.mxu2 }
  0xf7   :  { %v464_v5 = vadd.f32 %v3687_v15, %v463_v39  ;;  %vm801_vm3 = vweird.f32 %v3696_v34  ;;  %v806_v18 = vand.u32 2147483648, %v3637_v57  ;;  %v3780_v28 = vadd.f32 1.0, %v2503_v40  ;;  %1305 = vmatpush.msra.mxu2 %v964_v38  ;;  %1083 = vmatmul.f32.gmra.mxu0 %v3751_v24 }
  0xf8   :  { %v798_v32 = vmul.f32 %v3696_v34, %v797_v33  ;;  %2506 = vpow2.f32 %v3623_v50  ;;  %v2397_v45 = vmul.f32 -1.442695, %v3640_v12  ;;  %vm470_vm6 = vcmp.eq.f32.partialorder %v469_v17, 8.507059e+37  ;;  %1165 = vmatmul.f32.gmra.mxu2 %v3751_v24  ;;  %1346 = vmatpush.msra.mxu3 %v1028_v6  ;;  %v1024_v33 = vld [vmem:[%s5620_s3 + $0x358] sm:$0xff]  ;;  %v258_v6 = vpop.f32.mrf.mxu3 }
  0xf9   :  { %v468_v50 = vsel %vm3775_vm4, %v3687_v15, %v464_v5  ;;  %vm800_vm7 = vweird.f32 %v3637_v57  ;;  %2508 = vpow2.f32 %v3632_v22  ;;  %v483_v15 = vsel %vm3792_vm5, %v3664_v44, %v479_v49  ;;  %1306 = vmatpush.msra.mxu2 %v960_v62  ;;  %1222 = vmatpush.msra.mxu0 %v967_v2  ;;  %v1020_v2 = vld [vmem:[%s5620_s3 + $0x338] sm:$0xff] }
  0xfa   :  { %v3808_v20 = vpop.eup %2504  ;;  %v473_v61 = vsel %vm470_vm6, %v472_v23, %v468_v50  ;;  %v799_v22 = vadd.f32 %v3696_v34, %v798_v32  ;;  %2510 = vrcp.f32 %v3780_v28  ;;  %v894_v9 = vmul.f32 %v793_v8, %v3500_v13  ;;  %vm802_vm8 = vmor %vm800_vm7, %vm801_vm3  ;;  %v1031_v13 = vld [vmem:[%s5620_s3 + $0x390] sm:$0xff]  ;;  %1347 = vmatpush.msra.mxu3 %v1024_v33 }
  0xfb   :  { %v574_v14 = vmul.f32 %v473_v61, %v3526_v51  ;;  %v807_v44 = vor.u32 1.1754944e-38, %v806_v18  ;;  %v811_v63 = vmul.f32 %v3808_v20, %v3694_v7  ;;  %vm805_vm9 = vcmp.eq.f32.partialorder %v804_v46, 8.507059e+37  ;;  %v963_v51 = vld [vmem:[%s5620_s3 + $0x170] sm:$0xff]  ;;  %1263 = vmatpush.msrb.mxu1 %v1031_v13 }
  0xfc   :  { %v803_v17 = vsel %vm802_vm8, %v3696_v34, %v799_v22  ;;  %2512 = vpow2.f32 %v2397_v45  ;;  %v3828_v55 = vadd.f32 %v173_v26, %v2947_v60  ;;  %v488_v57 = vsel %vm3738_vm0, %v3682_v1, %v483_v15  ;;  %1223 = vmatpush.msra.mxu0 %v963_v51  ;;  %v1027_v1 = vld [vmem:[%s5620_s3 + $0x370] sm:$0xff]  ;;  %v956_v45 = vld [vmem:[%s5620_s3 + $0x138] sm:$0xff]  ;;  %v176_v22 = vpop.f32.mrf.mxu1  ;;  %1348 = vmatpush.msra.mxu3 %v1020_v2 }
  0xfd   :  { %v3839_v42 = vmax.f32 %v574_v14, %v894_v9  ;;  %v808_v34 = vsel %vm805_vm9, %v807_v44, %v803_v17  ;;  %v812_v40 = vsub.f32 1.0, %v811_v63  ;;  %v3844_v23 = vadd.f32 %v217_v47, %v2939_v56  ;;  %1264 = vmatpush.msrb.mxu1 %v1027_v1  ;;  %v1023_v26 = vld [vmem:[%s5620_s3 + $0x350] sm:$0xff]  ;;  %1307 = vmatpush.msra.mxu2 %v956_v45  ;;  %v952_v9 = vld [vmem:[%s5620_s3 + $0x118] sm:$0xff] }
  0xfe   :  { %v2507_v39 = vpop.eup %2506  ;;  %v895_v36 = vmul.f32 %v808_v34, %v3536_v41  ;;  %v2381_v49 = vmul.f32 -1.442695, %v3828_v55  ;;  %v546_v41 = vand.u32 2147483648, %v2986_v21  ;;  %v819_v56 = vand.u32 2147483647, %v3694_v7  ;;  %1224 = vmatpush.msra.mxu0 %v959_v35  ;;  %v1019_v63 = vld [vmem:[%s5620_s3 + $0x330] sm:$0xff] }
  0xff   :  { %v2509_v46 = vpop.eup %2508  ;;  %v813_v8 = vmul.f32 %v3808_v20, %v812_v40  ;;  %v3858_v5 = vadd.f32 1.0, %v2507_v39  ;;  %v575_v38 = vmul.f32 %v488_v57, %v3523_v16  ;;  %v821_v27 = vand.u32 2147483648, %v3694_v7  ;;  %1124 = vmatmul.f32.gmra.mxu1 %v3839_v42  ;;  %v955_v16 = vld [vmem:[%s5620_s3 + $0x130] sm:$0xff]  ;;  %1206 = vmatmul.f32.gmra.mxu3 %v3839_v42  ;;  %v1016_v57 = vld [vmem:[%s5620_s3 + $0x318] sm:$0xff] }
 0x100   :  { %v3860_v18 = vpop.eup %2510  ;;  %v3864_v32 = vadd.f32 1.0, %v2509_v46  ;;  %2514 = vpow2.f32 %v2381_v49  ;;  %v3878_v37 = vadd.f32 %v3050_v58, %v3533_v0  ;;  %v514_v50 = vand.u32 2147483647, %v3780_v28  ;;  %1265 = vmatpush.msrb.mxu1 %v1023_v26  ;;  %1225 = vmatpush.msra.mxu0 %v955_v16  ;;  %v951_v47 = vld [vmem:[%s5620_s3 + $0x110] sm:$0xff]  ;;  %v948_v34 = vld [vmem:[%s5620_s3 + $0xf8] sm:$0xff] }
 0x101   :  { %v506_v4 = vmul.f32 %v3860_v18, %v3780_v28  ;;  %2516 = vrcp.f32 %v3858_v5  ;;  %v3884_v15 = vmax.f32 %v575_v38, %v895_v36  ;;  %v516_v61 = vand.u32 2147483648, %v3780_v28  ;;  %1308 = vmatpush.msra.mxu2 %v952_v9  ;;  %v1015_v40 = vld [vmem:[%s5620_s3 + $0x310] sm:$0xff]  ;;  %1349 = vmatpush.msra.mxu3 %v1016_v57  ;;  %v944_v45 = vld [vmem:[%s5620_s3 + $0xd8] sm:$0xff] }
 0x102   :  { %v2513_v62 = vpop.eup %2512  ;;  %2518 = vrcp.f32 %v3864_v32  ;;  %v2398_v0 = vmul.f32 -1.442695, %v3844_v23  ;;  %v3897_v14 = vadd.f32 %v3808_v20, %v813_v8  ;;  %vm815_vm10 = vweird.f32 %v3694_v7  ;;  %1266 = vmatpush.msrb.mxu1 %v1019_v63  ;;  %1226 = vmatpush.msra.mxu0 %v951_v47  ;;  %v947_v33 = vld [vmem:[%s5620_s3 + $0xf0] sm:$0xff]  ;;  %v1012_v8 = vld [vmem:[%s5620_s3 + $0x2f8] sm:$0xff] }
 0x103   :  { %vm816_vm11 = vweird.f32 %v3808_v20  ;;  %v507_v44 = vsub.f32 1.0, %v506_v4  ;;  %vm3907_vm12 = vcmp.eq.f32.partialorder %v819_v56, 8.507059e+37  ;;  %v822_v13 = vor.u32 1.1754944e-38, %v821_v27  ;;  %1309 = vmatpush.msra.mxu2 %v948_v34  ;;  %1086 = vmatmul.f32.gmra.mxu0 %v3884_v15  ;;  %v1011_v26 = vld [vmem:[%s5620_s3 + $0x2f0] sm:$0xff]  ;;  %v1004_v57 = vld [vmem:[%s5620_s3 + $0x2b8] sm:$0xff] }
 0x104   :  { %vm510_vm13 = vweird.f32 %v3780_v28  ;;  %v3913_v51 = vadd.f32 %v258_v6, %v2945_v59  ;;  %vm3925_vm14 = vcmp.eq.f32.partialorder %v514_v50, 8.507059e+37  ;;  %v3929_v59 = vadd.f32 1.0, %v2513_v62  ;;  %vm3941_vm15 = vmor %vm815_vm10, %vm816_vm11  ;;  %1168 = vmatmul.f32.gmra.mxu2 %v3884_v15  ;;  %1350 = vmatpush.msra.mxu3 %v1012_v8  ;;  %v1008_v62 = vld [vmem:[%s5620_s3 + $0x2d8] sm:$0xff]  ;;  %v1003_v8 = vld [vmem:[%s5620_s3 + $0x2b0] sm:$0xff] }
 0x105   :  { %v508_v39 = vmul.f32 %v3860_v18, %v507_v44  ;;  %v3932_v49 = vadd.f32 %v176_v22, %v2947_v60  ;;  %vm511_vm0 = vweird.f32 %v3860_v18  ;;  %v517_v46 = vor.u32 1.1754944e-38, %v516_v61  ;;  %1267 = vmatpush.msrb.mxu1 %v1015_v40  ;;  %1310 = vmatpush.msra.mxu2 %v944_v45  ;;  %v940_v61 = vld [vmem:[%s5620_s3 + $0xb8] sm:$0xff]  ;;  %v939_v44 = vld [vmem:[%s5620_s3 + $0xb0] sm:$0xff] }
 0x106   :  { %v2515_v1 = vpop.eup %2514  ;;  %v499_v60 = vand.u32 2147483647, %v3858_v5  ;;  %2520 = vpow2.f32 %v2398_v0  ;;  %v818_v7 = vsel %vm3941_vm15, %v3808_v20, %v3897_v14  ;;  %v501_v27 = vand.u32 2147483648, %v3858_v5  ;;  %v943_v20 = vld [vmem:[%s5620_s3 + $0xd0] sm:$0xff]  ;;  %1227 = vmatpush.msra.mxu0 %v947_v33  ;;  %vm3991_vm2 = vmor %vm510_vm13, %vm511_vm0  ;;  %1351 = vmatpush.msra.mxu3 %v1008_v62  ;;  %v936_v34 = vld [vmem:[%s5620_s3 + $0x98] sm:$0xff] }
 0x107   :  { %v3952_v56 = vpop.eup %2516  ;;  %v509_v38 = vadd.f32 %v3860_v18, %v508_v39  ;;  %2522 = vrcp.f32 %v3929_v59  ;;  %vm495_vm1 = vweird.f32 %v3858_v5  ;;  %v3975_v50 = vadd.f32 1.0, %v2515_v1  ;;  %v1007_v0 = vld [vmem:[%s5620_s3 + $0x2d0] sm:$0xff]  ;;  %1268 = vmatpush.msrb.mxu1 %v1011_v26  ;;  %1311 = vmatpush.msra.mxu2 %v940_v61  ;;  %v1000_v40 = vld [vmem:[%s5620_s3 + $0x298] sm:$0xff] }
 0x108   :  { %v3970_v16 = vpop.eup %2518  ;;  %v491_v4 = vmul.f32 %v3952_v56, %v3858_v5  ;;  %v2399_v6 = vmul.f32 -1.442695, %v3913_v51  ;;  %vm830_vm3 = vweird.f32 %v3864_v32  ;;  %v834_v9 = vand.u32 2147483647, %v3864_v32  ;;  %1228 = vmatpush.msra.mxu0 %v943_v20  ;;  %1352 = vmatpush.msra.mxu3 %v1004_v57  ;;  %v932_v39 = vld [vmem:[%s5620_s3 + $0x78] sm:$0xff]  ;;  %v935_v20 = vld [vmem:[%s5620_s3 + $0x90] sm:$0xff] }
 0x109   :  { %v826_v2 = vmul.f32 %v3970_v16, %v3864_v32  ;;  %v2383_v14 = vmul.f32 -1.442695, %v3932_v49  ;;  %v823_v28 = vsel %vm3907_vm12, %v822_v13, %v818_v7  ;;  %v513_v63 = vsel %vm3991_vm2, %v3860_v18, %v509_v38  ;;  %1269 = vmatpush.msrb.mxu1 %v1007_v0  ;;  %1312 = vmatpush.msra.mxu2 %v936_v34  ;;  %v928_v26 = vld [vmem:[%s5620_s3 + $0x58] sm:$0xff]  ;;  %v931_v36 = vld [vmem:[%s5620_s3 + $0x70] sm:$0xff] }
 0x10a   :  { %v492_v47 = vsub.f32 1.0, %v491_v4  ;;  %2524 = vrcp.f32 %v3975_v50  ;;  %vm496_vm4 = vweird.f32 %v3952_v56  ;;  %vm4016_vm5 = vcmp.eq.f32.partialorder %v499_v60, 8.507059e+37  ;;  %v996_v60 = vld [vmem:[%s5620_s3 + $0x278] sm:$0xff]  ;;  %1229 = vmatpush.msra.mxu0 %v939_v44  ;;  %1353 = vmatpush.msra.mxu3 %v1000_v40  ;;  %v999_v5 = vld [vmem:[%s5620_s3 + $0x290] sm:$0xff] }
 0x10b   :  { %v827_v18 = vsub.f32 1.0, %v826_v2  ;;  %v836_v13 = vand.u32 2147483648, %v3864_v32  ;;  %vm541_vm6 = vweird.f32 %v3050_v58  ;;  %v502_v35 = vor.u32 1.1754944e-38, %v501_v27  ;;  %1270 = vmatpush.msrb.mxu1 %v1003_v8  ;;  %vm4059_vm9 = vmor %vm495_vm1, %vm496_vm4  ;;  %1313 = vmatpush.msra.mxu2 %v932_v39  ;;  %v924_v2 = vld [vmem:[%s5620_s3 + $0x38] sm:$0xff]  ;;  %v923_v17 = vld [vmem:[%s5620_s3 + $0x30] sm:$0xff] }
 0x10c   :  { %v2521_v33 = vpop.eup %2520  ;;  %v493_v1 = vmul.f32 %v3952_v56, %v492_v47  ;;  %vm831_vm7 = vweird.f32 %v3970_v16  ;;  %2526 = vpow2.f32 %v2399_v6  ;;  %v518_v38 = vsel %vm3925_vm14, %v517_v46, %v513_v63  ;;  %1230 = vmatpush.msra.mxu0 %v935_v20  ;;  %1354 = vmatpush.msra.mxu3 %v996_v60  ;;  %v920_v39 = vld [vmem:[%s5620_s3 + $0x18] sm:$0xff]  ;;  %v987_v8 = vld [vmem:[%s5620_s3 + $0x230] sm:$0xff] }
 0x10d   :  { %v4036_v7 = vpop.eup %2522  ;;  %v828_v27 = vmul.f32 %v3970_v16, %v827_v18  ;;  %v4041_v45 = vadd.f32 1.0, %v2521_v33  ;;  %2528 = vpow2.f32 %v2383_v14  ;;  %vm540_vm8 = vweird.f32 %v2986_v21  ;;  %1271 = vmatpush.msrb.mxu1 %v999_v5  ;;  %v995_v14 = vld [vmem:[%s5620_s3 + $0x270] sm:$0xff]  ;;  %vm4097_vm12 = vmor %vm830_vm3, %vm831_vm7  ;;  %1314 = vmatpush.msra.mxu2 %v928_v26  ;;  %v984_v60 = vld [vmem:[%s5620_s3 + $0x218] sm:$0xff] }
 0x10e   :  { %v896_v46 = vmul.f32 %v823_v28, %v3549_v54  ;;  %v494_v4 = vadd.f32 %v3952_v56, %v493_v1  ;;  %vm4063_vm10 = vcmp.eq.f32.partialorder %v834_v9, 8.507059e+37  ;;  %v841_v61 = vmul.f32 %v4036_v7, %v3929_v59  ;;  %v992_v54 = vld [vmem:[%s5620_s3 + $0x258] sm:$0xff]  ;;  %v927_v9 = vld [vmem:[%s5620_s3 + $0x50] sm:$0xff]  ;;  %1231 = vmatpush.msra.mxu0 %v931_v36  ;;  %vm4173_vm0 = vmor %vm540_vm8, %vm541_vm6 }
 0x10f   :  { %v829_v0 = vadd.f32 %v3970_v16, %v828_v27  ;;  %v837_v22 = vor.u32 1.1754944e-38, %v836_v13  ;;  %vm845_vm11 = vweird.f32 %v3929_v59  ;;  %2530 = vrcp.f32 %v4041_v45  ;;  %1355 = vmatpush.msra.mxu3 %v992_v54  ;;  %1272 = vmatpush.msrb.mxu1 %v995_v14  ;;  %v919_v5 = vld [vmem:[%s5620_s3 + $0x10] sm:$0xff] }
 0x110   :  { %v4087_v44 = vpop.eup %2524  ;;  %v577_v28 = vmul.f32 %v518_v38, %v3584_v19  ;;  %v498_v63 = vsel %vm4059_vm9, %v3952_v56, %v494_v4  ;;  %v842_v57 = vsub.f32 1.0, %v841_v61  ;;  %v849_v34 = vand.u32 2147483647, %v3929_v59  ;;  %v988_v19 = vld [vmem:[%s5620_s3 + $0x238] sm:$0xff]  ;;  %v991_v56 = vld [vmem:[%s5620_s3 + $0x250] sm:$0xff]  ;;  %1315 = vmatpush.msra.mxu2 %v924_v2  ;;  %1232 = vmatpush.msra.mxu0 %v927_v9 }
 0x111   :  { %v503_v32 = vsel %vm4016_vm5, %v502_v35, %v498_v63  ;;  %v833_v18 = vsel %vm4097_vm12, %v3970_v16, %v829_v0  ;;  %v851_v13 = vand.u32 2147483648, %v3929_v59  ;;  %v521_v40 = vmul.f32 %v4087_v44, %v3975_v50  ;;  %1356 = vmatpush.msra.mxu3 %v988_v19  ;;  %1273 = vmatpush.msrb.mxu1 %v991_v56  ;;  %v983_v59 = vld [vmem:[%s5620_s3 + $0x210] sm:$0xff] }
 0x112   :  { %v2527_v33 = vpop.eup %2526  ;;  %v576_v1 = vmul.f32 %v503_v32, %v3589_v52  ;;  %v838_v16 = vsel %vm4063_vm10, %v837_v22, %v833_v18  ;;  %v843_v35 = vmul.f32 %v4036_v7, %v842_v57  ;;  %vm846_vm13 = vweird.f32 %v4036_v7  ;;  %1316 = vmatpush.msra.mxu2 %v920_v39  ;;  %1233 = vmatpush.msra.mxu0 %v923_v17 }
 0x113   :  { %v2529_v38 = vpop.eup %2528  ;;  %v897_v52 = vmul.f32 %v838_v16, %v3605_v31  ;;  %v522_v27 = vsub.f32 1.0, %v521_v40  ;;  %v529_v26 = vand.u32 2147483647, %v3975_v50  ;;  %v4135_v20 = vadd.f32 1.0, %v2527_v33  ;;  %vm4149_vm14 = vmor %vm845_vm11, %vm846_vm13  ;;  %1357 = vmatpush.msra.mxu3 %v984_v60  ;;  %1274 = vmatpush.msrb.mxu1 %v987_v8 }
 0x114   :  { %v4137_v36 = vmax.f32 %v576_v1, %v896_v46  ;;  %v844_v4 = vadd.f32 %v4036_v7, %v843_v35  ;;  %v531_v6 = vand.u32 2147483648, %v3975_v50  ;;  %v4141_v62 = vadd.f32 1.0, %v2529_v38  ;;  %1234 = vmatpush.msra.mxu0 %v919_v5 }
 0x115   :  { %v2531_v61 = vpop.eup %2530  ;;  %v4143_v54 = vmax.f32 %v577_v28, %v897_v52  ;;  %v523_v46 = vmul.f32 %v4087_v44, %v522_v27  ;;  %vm526_vm15 = vweird.f32 %v4087_v44  ;;  %2532 = vrcp.f32 %v4135_v20  ;;  %1275 = vmatpush.msrb.mxu1 %v983_v59 }
 0x116   :  { %v544_v0 = vand.u32 2147483647, %v2986_v21  ;;  %v848_v22 = vsel %vm4149_vm14, %v4036_v7, %v844_v4  ;;  %v852_v2 = vor.u32 1.1754944e-38, %v851_v13  ;;  %v856_v9 = vmul.f32 %v2531_v61, %v4041_v45  ;;  %1127 = vmatmul.f32.gmra.mxu1 %v4137_v36  ;;  %1209 = vmatmul.f32.gmra.mxu3 %v4137_v36 }
 0x117   :  { %vm850_vm1 = vcmp.eq.f32.partialorder %v849_v34, 8.507059e+37  ;;  %v524_v28 = vadd.f32 %v4087_v44, %v523_v46  ;;  %vm525_vm2 = vweird.f32 %v3975_v50  ;;  %2534 = vrcp.f32 %v4141_v62  ;;  %1089 = vmatmul.f32.gmra.mxu0 %v4143_v54  ;;  %1171 = vmatmul.f32.gmra.mxu2 %v4143_v54 }
 0x118   :  { %v547_v7 = vor.u32 1.1754944e-38, %v546_v41  ;;  %v853_v63 = vsel %vm850_vm1, %v852_v2, %v848_v22  ;;  %vm527_vm3 = vmor %vm525_vm2, %vm526_vm15  ;;  %v532_v47 = vor.u32 1.1754944e-38, %v531_v6  ;;  %v857_v57 = vsub.f32 1.0, %v856_v9 }
 0x119   :  { %v543_v50 = vsel %vm4173_vm0, %v3050_v58, %v3878_v37  ;;  %v528_v34 = vsel %vm527_vm3, %v4087_v44, %v524_v28  ;;  %vm530_vm4 = vcmp.eq.f32.partialorder %v529_v26, 8.507059e+37  ;;  %v866_v19 = vand.u32 2147483648, %v4041_v45  ;;  %v4275_v28 = vld [vmem:[%s5623_s4 + $0x1e8] sm:$0xff] }
 0x11a   :  { %v533_v21 = vsel %vm530_vm4, %v532_v47, %v528_v34  ;;  %v858_v41 = vmul.f32 %v2531_v61, %v857_v57  ;;  %vm861_vm5 = vweird.f32 %v2531_v61  ;;  %v864_v56 = vand.u32 2147483647, %v4041_v45  ;;  %1492 = vmatpush.msra.mxu1 %v4275_v28 }
 0x11b   :  { %v2533_v32 = vpop.eup %2532  ;;  %vm545_vm6 = vcmp.eq.f32.partialorder %v544_v0, 8.507059e+37  ;;  %v898_v18 = vmul.f32 %v853_v63, %v3640_v12  ;;  %v578_v13 = vmul.f32 %v533_v21, %v3828_v55  ;;  %vm860_vm7 = vweird.f32 %v4041_v45  ;;  %v4282_v63 = vld [vmem:[%s5623_s4 + $0x1f8] sm:$0xff] }
 0x11c   :  { %v548_v40 = vsel %vm545_vm6, %v547_v7, %v543_v50  ;;  %v859_v39 = vadd.f32 %v2531_v61, %v858_v41  ;;  %v871_v58 = vmul.f32 %v2533_v32, %v4135_v20  ;;  %vm862_vm8 = vmor %vm860_vm7, %vm861_vm5  ;;  %v867_v17 = vor.u32 1.1754944e-38, %v866_v19  ;;  %v4298_v19 = vld [vmem:[%s5623_s4 + $0x1c8] sm:$0xff]  ;;  %1532 = vmatpush.msrb.mxu3 %v4282_v63  ;;  %v4311_v41 = vld [vmem:[%s5623_s4 + $0x1f0] sm:$0xff] }
 0x11d   :  { %v2535_v37 = vpop.eup %2534  ;;  %v4197_v44 = vmax.f32 %v578_v13, %v898_v18  ;;  %vm865_vm9 = vcmp.eq.f32.partialorder %v864_v56, 8.507059e+37  ;;  %v579_v12 = vmul.f32 %v548_v40, %v2933_v53  ;;  %v879_v55 = vand.u32 2147483647, %v4135_v20  ;;  %1493 = vmatpush.msra.mxu1 %v4298_v19  ;;  %1512 = vmatpush.msrb.mxu2 %v4311_v41  ;;  %v4331_v18 = vld [vmem:[%s5623_s4 + $0x1a8] sm:$0xff]  ;;  %v4336_v13 = vld [vmem:[%s5623_s4 + $0x1b8] sm:$0xff] }
 0x11e   :  { %v863_v33 = vsel %vm862_vm8, %v2531_v61, %v859_v39  ;;  %v872_v1 = vsub.f32 1.0, %v871_v58  ;;  %v551_v16 = vmul.f32 %v2535_v37, %v4141_v62  ;;  %v881_v60 = vand.u32 2147483648, %v4135_v20  ;;  %5820 = vst [vmem:[#allocation9_spill] sm:$0xff] %v4331_v18 }
 0x11f   :  { %v868_v35 = vsel %vm865_vm9, %v867_v17, %v863_v33  ;;  %1130 = vmatmul.f32.gmra.mxu1 %v4197_v44  ;;  %1212 = vmatmul.f32.gmra.mxu3 %v4197_v44  ;;  %vm876_vm10 = vweird.f32 %v2533_v32  ;;  %vm875_vm11 = vweird.f32 %v4135_v20  ;;  %v559_v52 = vand.u32 2147483647, %v4141_v62  ;;  %v4352_v17 = vld [vmem:[%s5623_s4 + $0x180] sm:$0xff]  ;;  %v4357_v33 = vld [vmem:[%s5623_s4 + $0x188] sm:$0xff] }
 0x120   :  { %v899_v45 = vmul.f32 %v868_v35, %v3844_v23  ;;  %v873_v8 = vmul.f32 %v2533_v32, %v872_v1  ;;  %v552_v38 = vsub.f32 1.0, %v551_v16  ;;  %v561_v53 = vand.u32 2147483648, %v4141_v62  ;;  %vm877_vm13 = vmor %vm875_vm11, %vm876_vm10  ;;  %1494 = vmatpush.msra.mxu1 %v4331_v18  ;;  %v4366_v16 = vld [vmem:[%s5623_s4 + $0x198] sm:$0xff] }
 0x121   :  { %vm556_vm12 = vweird.f32 %v2535_v37  ;;  %v882_v6 = vor.u32 1.1754944e-38, %v881_v60  ;;  %vm880_vm14 = vcmp.eq.f32.partialorder %v879_v55, 8.507059e+37  ;;  %vm555_vm15 = vweird.f32 %v4141_v62 }
 0x122   :  { %v4209_v27 = vmax.f32 %v579_v12, %v899_v45  ;;  %v874_v26 = vadd.f32 %v2533_v32, %v873_v8  ;;  %v553_v4 = vmul.f32 %v2535_v37, %v552_v38  ;;  %vm557_vm0 = vmor %vm555_vm15, %vm556_vm12  ;;  %v562_v20 = vor.u32 1.1754944e-38, %v561_v53  ;;  %v4371_v12 = vld [vmem:[%s5623_s4 + $0x1b0] sm:$0xff]  ;;  %1495 = vmatpush.msra.mxu1 %v4357_v33  ;;  %v4381_v8 = vld [vmem:[%s5623_s4 + $0x160] sm:$0xff] }
 0x123   :  { %vm560_vm1 = vcmp.eq.f32.partialorder %v559_v52, 8.507059e+37  ;;  %v4386_v38 = vld [vmem:[%s5623_s4 + $0x168] sm:$0xff]  ;;  %v4391_v52 = vld [vmem:[%s5623_s4 + $0x178] sm:$0xff]  ;;  %vm2303_vm3 = vcmask 523264   ;;  %vm2326_vm4 = vcmask 80896  }
 0x124   :  { %v878_v61 = vsel %vm877_vm13, %v2533_v32, %v874_v26  ;;  %v554_v31 = vadd.f32 %v2535_v37, %v553_v4  ;;  %1092 = vmatmul.f32.gmra.mxu0 %v4209_v27  ;;  %1174 = vmatmul.f32.gmra.mxu2 %v4209_v27  ;;  %v4326_v32 = vld [vmem:[%s5623_s4 + $0x1a0] sm:$0xff]  ;;  %v4401_v26 = vld [vmem:[%s5623_s4 + $0x190] sm:$0xff] }
 0x125   :  { %v883_v23 = vsel %vm880_vm14, %v882_v6, %v878_v61  ;;  %1496 = vmatpush.msra.mxu1 %v4386_v38  ;;  %v4406_v4 = vld [vmem:[%s5623_s4 + $0x140] sm:$0xff]  ;;  %v4411_v6 = vld [vmem:[%s5623_s4 + $0x148] sm:$0xff] }
 0x126   :  { %v558_v46 = vsel %vm557_vm0, %v2535_v37, %v554_v31  ;;  %v900_v59 = vmul.f32 %v883_v23, %v3913_v51  ;;  %v4420_v31 = vld [vmem:[%s5623_s4 + $0x158] sm:$0xff]  ;;  %v4425_v23 = vld [vmem:[%s5623_s4 + $0x170] sm:$0xff] }
 0x127   :  { %v563_v5 = vsel %vm560_vm1, %v562_v20, %v558_v46  ;;  %1497 = vmatpush.msra.mxu1 %v4411_v6 }
 0x128   :  { %v580_v0 = vmul.f32 %v563_v5, %v3932_v49  ;;  %v4434_v5 = vld [vmem:[%s5623_s4 + $0x120] sm:$0xff] }
 0x12a   :  { %v4216_v22 = vmax.f32 %v580_v0, %v900_v59  ;;  %v4439_v59 = vld [vmem:[%s5623_s4 + $0x128] sm:$0xff]  ;;  %v4444_v0 = vld [vmem:[%s5623_s4 + $0x138] sm:$0xff] }
 0x12b   :  { %5824 = vst [vmem:[#allocation13_spill] sm:$0xff] %v4444_v0  ;;  %1498 = vmatpush.msra.mxu1 %v4439_v59 }
 0x12c   :  { %1133 = vmatmul.f32.gmra.mxu1 %v4216_v22  ;;  %1215 = vmatmul.f32.gmra.mxu3 %v4216_v22 }
 0x12d   :  { %1235 = vmatmul.f32.vlgmr.msra.gmra.mxu0 %v3198_v11  ;;  %1317 = vmatmul.f32.vlgmr.msra.gmra.mxu2 %v3198_v11 }
 0x133   :  { %v4236_v11 = vpop.f32.mrf.mxu0 }
 0x134   :  { %1276 = vmatmul.f32.vlgmr.msrb.gmra.mxu1 %v3330_v3  ;;  %1358 = vmatmul.f32.vlgmr.msra.gmra.mxu3 %v3330_v3 }
 0x135   :  { %1238 = vmatmul.f32.gmra.mxu0 %v3352_v10  ;;  %1320 = vmatmul.f32.gmra.mxu2 %v3352_v10 }
 0x13b   :  { %v4238_v3 = vpop.f32.mrf.mxu1 }
 0x13c   :  { %1279 = vmatmul.f32.gmra.mxu1 %v3434_v29  ;;  %1361 = vmatmul.f32.gmra.mxu3 %v3434_v29 }
 0x13d   :  { %1241 = vmatmul.f32.gmra.mxu0 %v3463_v48  ;;  %1323 = vmatmul.f32.gmra.mxu2 %v3463_v48  ;;  %v4249_v48 = vld [vmem:[%s5622_s5] sm:$0xf] }
 0x13f   :  { %v4242_v10 = vpop.f32.mrf.mxu2 }
 0x140   :  { %v4244_v29 = vpop.f32.mrf.mxu3 }
 0x144   :  { %1282 = vmatmul.f32.gmra.mxu1 %v3515_v30  ;;  %1364 = vmatmul.f32.gmra.mxu3 %v3515_v30  ;;  %v4252_v30 = vperm.slane %v4249_v48, 0 }
 0x145   :  { %1244 = vmatmul.f32.gmra.mxu0 %v3519_v43  ;;  %1326 = vmatmul.f32.gmra.mxu2 %v3519_v43  ;;  %v4257_v43 = vperm.slane %v4249_v48, 1 }
 0x146   :  { %5813 = vst [vmem:[#allocation2_spill] sm:$0xff] %v4252_v30 }
 0x147   :  { %5814 = vst [vmem:[#allocation3_spill] sm:$0xff] %v4257_v43  ;;  %v1157_v49 = vpop.f32.mrf.mxu2 }
 0x148   :  { %v1158_v2 = vadd.f32 %v1157_v49, %v4257_v43  ;;  %v4464_v49 = vld [vmem:[%s5623_s4 + $0x108] sm:$0xff] }
 0x149   :  { %1499 = vmatpush.msra.mxu1 %v4464_v49 }
 0x14c   :  { %1285 = vmatmul.f32.gmra.mxu1 %v3733_v25  ;;  %1367 = vmatmul.f32.gmra.mxu3 %v3733_v25  ;;  %v1075_v25 = vpop.f32.mrf.mxu0 }
 0x14d   :  { %1247 = vmatmul.f32.gmra.mxu0 %v3751_v24  ;;  %1329 = vmatmul.f32.gmra.mxu2 %v3751_v24  ;;  %v1116_v24 = vpop.f32.mrf.mxu1  ;;  %v1076_v51 = vadd.f32 %v1075_v25, %v4252_v30 }
 0x14f   :  { %v4263_v9 = vadd.f32 %v1116_v24, %v1076_v51  ;;  %v4454_v24 = vld [vmem:[%s5623_s4 + $0x150] sm:$0xff]  ;;  %v4459_v51 = vld [vmem:[%s5623_s4 + $0x100] sm:$0xff] }
 0x150   :  { %v1198_v62 = vpop.f32.mrf.mxu3 }
 0x151   :  { %5815 = vst [vmem:[#allocation4_spill] sm:$0xff] %v4263_v9  ;;  %v4265_v14 = vadd.f32 %v1198_v62, %v1158_v2  ;;  %v4471_v62 = vld [vmem:[%s5623_s4 + $0x118] sm:$0xff]  ;;  %v4476_v2 = vld [vmem:[%s5623_s4 + $0x130] sm:$0xff] }
 0x152   :  { %5826 = vst [vmem:[#allocation15_spill] sm:$0xff] %v4476_v2 }
 0x153   :  { %5816 = vst [vmem:[#allocation5_spill] sm:$0xff] %v4265_v14 }
 0x154   :  { %1288 = vmatmul.f32.gmra.mxu1 %v3839_v42  ;;  %1370 = vmatmul.f32.gmra.mxu3 %v3839_v42  ;;  %v4270_v42 = vld [vmem:[%s5623_s4 + $0x1e0] sm:$0xff]  ;;  %v1160_v57 = vpop.f32.mrf.mxu2 }
 0x155   :  { %1250 = vmatmul.f32.gmra.mxu0 %v3884_v15  ;;  %1332 = vmatmul.f32.gmra.mxu2 %v3884_v15  ;;  %v1078_v15 = vpop.f32.mrf.mxu0  ;;  %v1161_v34 = vadd.f32 %v1160_v57, %v4257_v43  ;;  %v4490_v57 = vld [vmem:[%s5623_s4 + $0xe8] sm:$0xff] }
 0x156   :  { %v1119_v7 = vpop.f32.mrf.mxu1  ;;  %v1079_v47 = vadd.f32 %v1078_v15, %v4252_v30  ;;  %1472 = vmatpush.msrb.mxu0 %v4270_v42  ;;  %1500 = vmatpush.msra.mxu1 %v4490_v57 }
 0x158   :  { %v4305_v21 = vadd.f32 %v1119_v7, %v1079_v47  ;;  %v4485_v47 = vld [vmem:[%s5623_s4 + $0xe0] sm:$0xff] }
 0x15a   :  { %5818 = vst [vmem:[#allocation7_spill] sm:$0xff] %v4305_v21 }
 0x15c   :  { %1291 = vmatmul.f32.gmra.mxu1 %v4137_v36  ;;  %1373 = vmatmul.f32.gmra.mxu3 %v4137_v36  ;;  %v1201_v50 = vpop.f32.mrf.mxu3  ;;  %v4293_v36 = vld [vmem:[%s5623_s4 + $0x1c0] sm:$0xff] }
 0x15d   :  { %1253 = vmatmul.f32.gmra.mxu0 %v4143_v54  ;;  %1335 = vmatmul.f32.gmra.mxu2 %v4143_v54  ;;  %v4303_v54 = vld [vmem:[%s5623_s4 + $0x1d8] sm:$0xff]  ;;  %v4313_v56 = vadd.f32 %v1201_v50, %v1161_v34  ;;  %v1081_v40 = vpop.f32.mrf.mxu0  ;;  %v1163_v37 = vpop.f32.mrf.mxu2 }
 0x15e   :  { %5817 = vst [vmem:[#allocation6_spill] sm:$0xff] %v4303_v54  ;;  %1473 = vmatpush.msrb.mxu0 %v4293_v36  ;;  %1533 = vmatpush.msrb.mxu3 %v4303_v54  ;;  %v1082_v39 = vadd.f32 %v1081_v40, %v4252_v30  ;;  %v1164_v35 = vadd.f32 %v1163_v37, %v4257_v43  ;;  %v4495_v50 = vld [vmem:[%s5623_s4 + $0xf8] sm:$0xff] }
 0x15f   :  { %5819 = vst [vmem:[#allocation8_spill] sm:$0xff] %v4313_v56 }
 0x160   :  { %1474 = vmatpush.msrb.mxu0 %v4326_v32  ;;  %1534 = vmatpush.msrb.mxu3 %v4336_v13 }
 0x162   :  { %1475 = vmatpush.msrb.mxu0 %v4352_v17  ;;  %1535 = vmatpush.msrb.mxu3 %v4366_v16 }
 0x164   :  { %1294 = vmatmul.f32.gmra.mxu1 %v4197_v44  ;;  %1376 = vmatmul.f32.gmra.mxu3 %v4197_v44  ;;  %v4347_v44 = vld [vmem:[%s5623_s4 + $0x1d0] sm:$0xff] }
 0x165   :  { %1256 = vmatmul.f32.gmra.mxu0 %v4209_v27  ;;  %1338 = vmatmul.f32.gmra.mxu2 %v4209_v27 }
 0x166   :  { %1513 = vmatpush.msrb.mxu2 %v4347_v44  ;;  %1476 = vmatpush.msrb.mxu0 %v4381_v8 }
 0x167   :  { %1536 = vmatpush.msrb.mxu3 %v4391_v52 }
 0x168   :  { %1514 = vmatpush.msrb.mxu2 %v4371_v12  ;;  %1477 = vmatpush.msrb.mxu0 %v4406_v4 }
 0x169   :  { %1537 = vmatpush.msrb.mxu3 %v4420_v31 }
 0x16a   :  { %1515 = vmatpush.msrb.mxu2 %v4401_v26  ;;  %1478 = vmatpush.msrb.mxu0 %v4434_v5 }
 0x16b   :  { %1538 = vmatpush.msrb.mxu3 %v4444_v0 }
 0x16c   :  { %1297 = vmatmul.f32.gmra.mxu1 %v4216_v22  ;;  %1379 = vmatmul.f32.gmra.mxu3 %v4216_v22 }
 0x16d   :  { %1516 = vmatpush.msrb.mxu2 %v4425_v23  ;;  %1479 = vmatpush.msrb.mxu0 %v4459_v51 }
 0x16e   :  { %1539 = vmatpush.msrb.mxu3 %v4471_v62 }
 0x16f   :  { %1517 = vmatpush.msrb.mxu2 %v4454_v24  ;;  %1480 = vmatpush.msrb.mxu0 %v4485_v47 }
 0x170   :  { %1540 = vmatpush.msrb.mxu3 %v4495_v50 }
 0x171   :  { %1518 = vmatpush.msrb.mxu2 %v4476_v2 }
 0x173   :  { %v1122_v58 = vpop.f32.mrf.mxu1 }
 0x174   :  { %v4359_v1 = vadd.f32 %v1122_v58, %v1082_v39  ;;  %v1084_v55 = vpop.f32.mrf.mxu0 }
 0x175   :  { %v1085_v60 = vadd.f32 %v1084_v55, %v4252_v30 }
 0x176   :  { %5821 = vst [vmem:[#allocation10_spill] sm:$0xff] %v4359_v1  ;;  %v4611_v1 = vld [vmem:[%s5623_s4 + $0x90] sm:$0xff] }
 0x177   :  { %5839 = vst [vmem:[#allocation28_spill] sm:$0xff] %v4611_v1 }
 0x179   :  { %v1204_v45 = vpop.f32.mrf.mxu3 }
 0x17a   :  { %v4393_v53 = vadd.f32 %v1204_v45, %v1164_v35 }
 0x17b   :  { %v1166_v20 = vpop.f32.mrf.mxu2 }
 0x17c   :  { %5822 = vst [vmem:[#allocation11_spill] sm:$0xff] %v4393_v53  ;;  %v1125_v27 = vpop.f32.mrf.mxu1  ;;  %v1167_v46 = vadd.f32 %v1166_v20, %v4257_v43  ;;  %v4606_v53 = vld [vmem:[%s5623_s4 + $0x78] sm:$0xff] }
 0x17d   :  { %v4413_v61 = vadd.f32 %v1125_v27, %v1085_v60  ;;  %5838 = vst [vmem:[#allocation27_spill] sm:$0xff] %v4606_v53 }
 0x17f   :  { %5823 = vst [vmem:[#allocation12_spill] sm:$0xff] %v4413_v61 }
 0x180   :  { %v1087_v15 = vpop.f32.mrf.mxu0 }
 0x181   :  { %v1088_v7 = vadd.f32 %v1087_v15, %v4252_v30  ;;  %v4517_v15 = vld [vmem:[%s5623_s4 + $0xc0] sm:$0xff] }
 0x182   :  { %v1207_v22 = vpop.f32.mrf.mxu3  ;;  %1481 = vmatpush.msrb.mxu0 %v4517_v15 }
 0x183   :  { %v4449_v25 = vadd.f32 %v1207_v22, %v1167_v46  ;;  %v4512_v22 = vld [vmem:[%s5623_s4 + $0x110] sm:$0xff] }
 0x184   :  { %1519 = vmatpush.msrb.mxu2 %v4512_v22 }
 0x185   :  { %5825 = vst [vmem:[#allocation14_spill] sm:$0xff] %v4449_v25  ;;  %v4598_v25 = vld [vmem:[%s5623_s4 + $0x68] sm:$0xff] }
 0x186   :  { %5837 = vst [vmem:[#allocation26_spill] sm:$0xff] %v4598_v25 }
 0x187   :  { %v1169_v34 = vpop.f32.mrf.mxu2 }
 0x188   :  { %v1170_v58 = vadd.f32 %v1169_v34, %v4257_v43  ;;  %v4529_v34 = vld [vmem:[%s5623_s4 + $0xd8] sm:$0xff] }
 0x189   :  { %1541 = vmatpush.msrb.mxu3 %v4529_v34 }
 0x193   :  { %v1128_v40 = vpop.f32.mrf.mxu1 }
 0x194   :  { %v4500_v39 = vadd.f32 %v1128_v40, %v1088_v7  ;;  %v1090_v37 = vpop.f32.mrf.mxu0  ;;  %v4522_v7 = vld [vmem:[%s5623_s4 + $0xc8] sm:$0xff]  ;;  %v4534_v40 = vld [vmem:[%s5623_s4 + $0xf0] sm:$0xff] }
 0x195   :  { %v1091_v35 = vadd.f32 %v1090_v37, %v4252_v30  ;;  %1501 = vmatpush.msra.mxu1 %v4522_v7  ;;  %1520 = vmatpush.msrb.mxu2 %v4534_v40 }
 0x196   :  { %5827 = vst [vmem:[#allocation16_spill] sm:$0xff] %v4500_v39  ;;  %v4593_v39 = vld [vmem:[%s5623_s4 + $0x60] sm:$0xff] }
 0x197   :  { %5836 = vst [vmem:[#allocation25_spill] sm:$0xff] %v4593_v39 }
 0x199   :  { %v1210_v55 = vpop.f32.mrf.mxu3 }
 0x19a   :  { %v4504_v60 = vadd.f32 %v1210_v55, %v1170_v58  ;;  %v1172_v27 = vpop.f32.mrf.mxu2  ;;  %v1155_v55 = vadd.f32 %v4242_v10, %v4257_v43  ;;  %v1073_v10 = vadd.f32 %v4236_v11, %v4252_v30  ;;  %v4582_v11 = vld [vmem:[%s5623_s4 + $0x98] sm:$0xff] }
 0x19b   :  { %v1173_v46 = vadd.f32 %v1172_v27, %v4257_v43  ;;  %v4551_v27 = vld [vmem:[%s5623_s4 + $0xa0] sm:$0xff]  ;;  %5834 = vst [vmem:[#allocation23_spill] sm:$0xff] %v4582_v11 }
 0x19c   :  { %5828 = vst [vmem:[#allocation17_spill] sm:$0xff] %v4504_v60  ;;  %v1131_v45 = vpop.f32.mrf.mxu1  ;;  %1482 = vmatpush.msrb.mxu0 %v4551_v27  ;;  %v4577_v60 = vld [vmem:[%s5623_s4 + $0x88] sm:$0xff]  ;;  %v1196_v61 = vadd.f32 %v4244_v29, %v1155_v55  ;;  %v4618_v29 = vld [vmem:[%s5623_s4 + $0x40] sm:$0xff]  ;;  %v1114_v21 = vadd.f32 %v4238_v3, %v1073_v10 }
 0x19d   :  { %v4506_v20 = vadd.f32 %v1131_v45, %v1091_v35  ;;  %v4546_v45 = vld [vmem:[%s5623_s4 + $0xd0] sm:$0xff]  ;;  %5833 = vst [vmem:[#allocation22_spill] sm:$0xff] %v4577_v60  ;;  %v4623_v55 = vld [vmem:[%s5623_s4 + $0x48] sm:$0xff]  ;;  %v4645_v3 = vld [vmem:[%s5623_s4 + $0x20] sm:$0xff] }
 0x19e   :  { %1521 = vmatpush.msrb.mxu2 %v4546_v45  ;;  %5840 = vst [vmem:[#allocation29_spill] sm:$0xff] %v4618_v29  ;;  %v1384_v10 = vmul.f32 0.5, %v1196_v61  ;;  %v4673_v61 = vld [vmem:[%s5623_s4] sm:$0xff] }
 0x19f   :  { %5829 = vst [vmem:[#allocation18_spill] sm:$0xff] %v4506_v20  ;;  %v4556_v20 = vld [vmem:[%s5623_s4 + $0xa8] sm:$0xff] }
 0x1a0   :  { %1502 = vmatpush.msra.mxu1 %v4556_v20  ;;  %5841 = vst [vmem:[#allocation30_spill] sm:$0xff] %v4623_v55  ;;  %2536 = vtanh.f32 %v1384_v10 }
 0x1a1   :  { %v1093_v58 = vpop.f32.mrf.mxu0  ;;  %5845 = vst [vmem:[#allocation34_spill] sm:$0xff] %v4645_v3 }
 0x1a2   :  { %v1213_v37 = vpop.f32.mrf.mxu3  ;;  %1503 = vmatpush.msra.mxu1 %v4577_v60  ;;  %v4638_v60 = vld [vmem:[%s5623_s4 + $0x70] sm:$0xff]  ;;  %5850 = vst [vmem:[#allocation39_spill] sm:$0xff] %v4673_v61 }
 0x1a3   :  { %v4539_v35 = vadd.f32 %v1213_v37, %v1173_v46  ;;  %v4561_v46 = vld [vmem:[%s5623_s4 + $0xb8] sm:$0xff]  ;;  %v1094_v37 = vadd.f32 %v1093_v58, %v4252_v30  ;;  %v4588_v30 = vld [vmem:[%s5623_s4 + $0xb0] sm:$0xff]  ;;  %5844 = vst [vmem:[#allocation33_spill] sm:$0xff] %v4638_v60 }
 0x1a4   :  { %5831 = vst [vmem:[#allocation20_spill] sm:$0xff] %v4561_v46  ;;  %1542 = vmatpush.msrb.mxu3 %v4561_v46  ;;  %1522 = vmatpush.msrb.mxu2 %v4588_v30 }
 0x1a5   :  { %5830 = vst [vmem:[#allocation19_spill] sm:$0xff] %v4539_v35  ;;  %v4572_v35 = vld [vmem:[%s5623_s4 + $0x80] sm:$0xff]  ;;  %1504 = vmatpush.msra.mxu1 %v4598_v25  ;;  %v4666_v25 = vperm.slane %v4249_v48, 2 }
 0x1a6   :  { %5832 = vst [vmem:[#allocation21_spill] sm:$0xff] %v4572_v35  ;;  %1483 = vmatpush.msrb.mxu0 %v4572_v35  ;;  %1543 = vmatpush.msrb.mxu3 %v4582_v11  ;;  %v4633_v11 = vld [vmem:[%s5623_s4 + $0x58] sm:$0xff] }
 0x1a7   :  { %v1175_v58 = vpop.f32.mrf.mxu2  ;;  %5835 = vst [vmem:[#allocation24_spill] sm:$0xff] %v4588_v30  ;;  %1523 = vmatpush.msrb.mxu2 %v4611_v1  ;;  %1505 = vmatpush.msra.mxu1 %v4623_v55  ;;  %v4690_v55 = vld [vmem:[%s5623_s4 + $0x30] sm:$0xff] }
 0x1a8   :  { %1484 = vmatpush.msrb.mxu0 %v4593_v39  ;;  %5843 = vst [vmem:[#allocation32_spill] sm:$0xff] %v4633_v11  ;;  %1544 = vmatpush.msrb.mxu3 %v4606_v53  ;;  %v4663_v53 = vld [vmem:[%s5623_s4 + $0x50] sm:$0xff] }
 0x1a9   :  { %v1134_v56 = vpop.f32.mrf.mxu1  ;;  %5848 = vst [vmem:[#allocation37_spill] sm:$0xff] %v4663_v53  ;;  %1524 = vmatpush.msrb.mxu2 %v4638_v60  ;;  %v4704_v60 = vld [vmem:[%s5623_s4 + $0x10] sm:$0xff] }
 0x1aa   :  { %v4626_v14 = vadd.f32 %v1134_v56, %v1094_v37  ;;  %v1236_v9 = vpop.f32.mrf.mxu0  ;;  %v4650_v56 = vld [vmem:[%s5623_s4 + $0x28] sm:$0xff]  ;;  %v1176_v37 = vadd.f32 %v1175_v58, %v4257_v43  ;;  %1485 = vmatpush.msrb.mxu0 %v4618_v29  ;;  %5849 = vst [vmem:[#allocation38_spill] sm:$0xff] %v4666_v25  ;;  %1545 = vmatpush.msrb.mxu3 %v4633_v11  ;;  %v1383_v43 = vmul.f32 0.5, %v1114_v21  ;;  %v4685_v11 = vld [vmem:[%s5623_s4 + $0x18] sm:$0xff] }
 0x1ab   :  { %5846 = vst [vmem:[#allocation35_spill] sm:$0xff] %v4650_v56  ;;  %v4678_v58 = vld [vmem:[%s5623_s4 + $0x8] sm:$0xff]  ;;  %1506 = vmatpush.msra.mxu1 %v4650_v56  ;;  %1525 = vmatpush.msrb.mxu2 %v4663_v53  ;;  %v4697_v56 = vperm.slane %v4249_v48, 3 }
 0x1ac   :  { %5842 = vst [vmem:[#allocation31_spill] sm:$0xff] %v4626_v14  ;;  %v4658_v14 = vld [vmem:[%s5623_s4 + $0x38] sm:$0xff]  ;;  %1486 = vmatpush.msrb.mxu0 %v4645_v3  ;;  %2538 = vtanh.f32 %v1383_v43  ;;  %v2537_v43 = vpop.eup %2536 }
 0x1ad   :  { %5847 = vst [vmem:[#allocation36_spill] sm:$0xff] %v4658_v14  ;;  %1546 = vmatpush.msrb.mxu3 %v4658_v14  ;;  %1507 = vmatpush.msra.mxu1 %v4678_v58  ;;  %v1237_v14 = vadd.f32 %v1236_v9, %v4666_v25 }
 0x1ae   :  { %5851 = vst [vmem:[#allocation40_spill] sm:$0xff] %v4678_v58  ;;  %1487 = vmatpush.msrb.mxu0 %v4673_v61  ;;  %1526 = vmatpush.msrb.mxu2 %v4690_v55 }
 0x1af   :  { %5852 = vst [vmem:[#allocation41_spill] sm:$0xff] %v4685_v11  ;;  %v1216_v29 = vpop.f32.mrf.mxu3  ;;  %1547 = vmatpush.msrb.mxu3 %v4685_v11  ;;  %1594 = vmatpush.msrb.mxu1 %v4275_v28 }
 0x1b0   :  { %5853 = vst [vmem:[#allocation42_spill] sm:$0xff] %v4690_v55  ;;  %v4694_v21 = vadd.f32 %v1216_v29, %v1176_v37  ;;  %v1318_v3 = vpop.f32.mrf.mxu2  ;;  %1574 = vmatpush.msra.mxu0 %v4270_v42  ;;  %1527 = vmatpush.msrb.mxu2 %v4704_v60  ;;  %v1401_v37 = vlaneseq }
 0x1b1   :  { %5855 = vst [vmem:[#allocation44_spill] sm:$0xff] %v4697_v56  ;;  %v1277_v39 = vpop.f32.mrf.mxu1  ;;  %1634 = vmatpush.msra.mxu3 %v4282_v63  ;;  %v1319_v29 = vadd.f32 %v1318_v3, %v4697_v56  ;;  %1595 = vmatpush.msrb.mxu1 %v4298_v19 }
 0x1b2   :  { %5854 = vst [vmem:[#allocation43_spill] sm:$0xff] %v4694_v21  ;;  %v4709_v48 = vpop.f32.mrf.mxu0  ;;  %1614 = vmatpush.msra.mxu2 %v4311_v41  ;;  %1575 = vmatpush.msra.mxu0 %v4293_v36  ;;  %v1278_v9 = vadd.f32 %v1277_v39, %v1237_v14  ;;  %v2539_v3 = vpop.eup %2538  ;;  %v1390_v14 = vadd.f32 1.0, %v2537_v43 }
 0x1b3   :  { %5856 = vst [vmem:[#allocation45_spill] sm:$0xff] %v4704_v60  ;;  %1635 = vmatpush.msra.mxu3 %v4303_v54  ;;  %1596 = vmatpush.msrb.mxu1 %v4331_v18 }
 0x1b4   :  { %5857 = vst [vmem:[#allocation46_spill] sm:$0xff] %v4709_v48  ;;  %1615 = vmatpush.msra.mxu2 %v4347_v44  ;;  %1576 = vmatpush.msra.mxu0 %v4326_v32  ;;  %v1385_v39 = vmul.f32 0.5, %v1278_v9  ;;  %v1393_v9 = vmul.f32 0.5, %v1390_v14 }
 0x1b5   :  { %1636 = vmatpush.msra.mxu3 %v4336_v13  ;;  %1597 = vmatpush.msrb.mxu1 %v4357_v33 }
 0x1b6   :  { %1616 = vmatpush.msra.mxu2 %v4371_v12  ;;  %1577 = vmatpush.msra.mxu0 %v4352_v17 }
 0x1b7   :  { %v1359_v10 = vpop.f32.mrf.mxu3  ;;  %1637 = vmatpush.msra.mxu3 %v4366_v16  ;;  %1598 = vmatpush.msrb.mxu1 %v4386_v38 }
 0x1b8   :  { %v1360_v21 = vadd.f32 %v1359_v10, %v1319_v29  ;;  %v4724_v48 = vpop.f32.mrf.mxu2  ;;  %1617 = vmatpush.msra.mxu2 %v4401_v26  ;;  %1578 = vmatpush.msra.mxu0 %v4381_v8  ;;  %v1389_v29 = vadd.f32 1.0, %v2539_v3  ;;  %v1402_v10 = vand.u32 127, %v1401_v37 }
 0x1b9   :  { %5858 = vst [vmem:[#allocation47_spill] sm:$0xff] %v4724_v48  ;;  %v4728_v54 = vpop.f32.mrf.mxu1  ;;  %1638 = vmatpush.msra.mxu3 %v4391_v52  ;;  %1599 = vmatpush.msrb.mxu1 %v4411_v6 }
 0x1ba   :  { %5859 = vst [vmem:[#allocation48_spill] sm:$0xff] %v4728_v54  ;;  %2540 = vtanh.f32 %v1360_v21  ;;  %v1242_v18 = vpop.f32.mrf.mxu0  ;;  %1618 = vmatpush.msra.mxu2 %v4425_v23  ;;  %1579 = vmatpush.msra.mxu0 %v4406_v4  ;;  %v1392_v43 = vmul.f32 0.5, %v1389_v29  ;;  %vm1403_vm2 = vcmp.lt.s32.totalorder %v1402_v10, 64 }
 0x1bb   :  { %2542 = vtanh.f32 %v1385_v39  ;;  %1639 = vmatpush.msra.mxu3 %v4420_v31  ;;  %v1243_v21 = vadd.f32 %v1242_v18, %v4666_v25  ;;  %1600 = vmatpush.msrb.mxu1 %v4439_v59  ;;  %v1396_v39 = vmul.f32 0.0, %v1393_v9 }
 0x1bc   :  { %1619 = vmatpush.msra.mxu2 %v4454_v24  ;;  %1580 = vmatpush.msra.mxu0 %v4434_v5 }
 0x1bd   :  { %1640 = vmatpush.msra.mxu3 %v4444_v0  ;;  %1601 = vmatpush.msrb.mxu1 %v4464_v49 }
 0x1be   :  { %1620 = vmatpush.msra.mxu2 %v4476_v2  ;;  %1581 = vmatpush.msra.mxu0 %v4459_v51 }
 0x1bf   :  { %v4743_v37 = vpop.f32.mrf.mxu3  ;;  %1641 = vmatpush.msra.mxu3 %v4471_v62  ;;  %1602 = vmatpush.msrb.mxu1 %v4490_v57 }
 0x1c0   :  { %5860 = vst [vmem:[#allocation49_spill] sm:$0xff] %v4743_v37  ;;  %v2541_v3 = vpop.eup %2540  ;;  %v1324_v14 = vpop.f32.mrf.mxu2  ;;  %v2690_v37 = vmov 0.0   ;;  %1621 = vmatpush.msra.mxu2 %v4512_v22  ;;  %1582 = vmatpush.msra.mxu0 %v4485_v47 }
 0x1c1   :  { %v1397_v18 = vmul.f32 %v2541_v3, %v1392_v43  ;;  %v1283_v54 = vpop.f32.mrf.mxu1  ;;  %v2400_v48 = vsel %vm1403_vm2, 1.0, %v2690_v37  ;;  %v2543_v0 = vpop.eup %2542  ;;  %1642 = vmatpush.msra.mxu3 %v4495_v50  ;;  %v1325_v9 = vadd.f32 %v1324_v14, %v4697_v56  ;;  %1603 = vmatpush.msrb.mxu1 %v4522_v7 }
 0x1c2   :  { %v4751_v29 = vadd.f32 %v1283_v54, %v1243_v21  ;;  %v1245_v10 = vpop.f32.mrf.mxu0  ;;  %1622 = vmatpush.msra.mxu2 %v4534_v40  ;;  %1583 = vmatpush.msra.mxu0 %v4517_v15  ;;  %v1391_v21 = vadd.f32 1.0, %v2543_v0  ;;  %v5864_v0 = vld [vmem:[#allocation22_spill] sm:$0xff] }
 0x1c3   :  { %v1398_v2 = vadd.f32 %v1397_v18, %v1396_v39  ;;  %1643 = vmatpush.msra.mxu3 %v4529_v34  ;;  %v1246_v43 = vadd.f32 %v1245_v10, %v4666_v25  ;;  %1604 = vmatpush.msrb.mxu1 %v4556_v20  ;;  %v5865_v39 = vld [vmem:[#allocation23_spill] sm:$0xff] }
 0x1c4   :  { %5861 = vst [vmem:[#allocation50_spill] sm:$0xff] %v4751_v29  ;;  %1623 = vmatpush.msra.mxu2 %v4546_v45  ;;  %1584 = vmatpush.msra.mxu0 %v4551_v27  ;;  %v1394_v18 = vmul.f32 0.5, %v1391_v21  ;;  %v5872_v21 = vld [vmem:[#allocation30_spill] sm:$0xff] }
 0x1c5   :  { %2544 = vtanh.f32 %v1398_v2  ;;  %v4760_v54 = vmul.f32 %v2400_v48, %v1398_v2  ;;  %1644 = vmatpush.msra.mxu3 %v4561_v46  ;;  %1605 = vmatpush.msrb.mxu1 %v5864_v0  ;;  %v5871_v0 = vld [vmem:[#allocation29_spill] sm:$0xff] }
 0x1c6   :  { %1624 = vmatpush.msra.mxu2 %v4588_v30  ;;  %1585 = vmatpush.msra.mxu0 %v4572_v35  ;;  %v5870_v30 = vld [vmem:[#allocation33_spill] sm:$0xff] }
 0x1c7   :  { %5862 = vst [vmem:[#allocation51_spill] sm:$0xff] %v4760_v54  ;;  %v1365_v37 = vpop.f32.mrf.mxu3  ;;  %1645 = vmatpush.msra.mxu3 %v5865_v39  ;;  %v5867_v54 = vld [vmem:[#allocation25_spill] sm:$0xff] }
 0x1c8   :  { %v4769_v3 = vadd.f32 %v1365_v37, %v1325_v9  ;;  %v1327_v2 = vpop.f32.mrf.mxu2  ;;  %1625 = vmatpush.msra.mxu2 %v4611_v1  ;;  %1586 = vmatpush.msra.mxu0 %v5867_v54  ;;  %v5868_v37 = vld [vmem:[#allocation26_spill] sm:$0xff] }
 0x1c9   :  { %v1286_v14 = vpop.f32.mrf.mxu1  ;;  %1606 = vmatpush.msrb.mxu1 %v5868_v37  ;;  %v1328_v35 = vadd.f32 %v1327_v2, %v4697_v56  ;;  %v5874_v54 = vld [vmem:[#allocation34_spill] sm:$0xff]  ;;  %v5876_v2 = vld [vmem:[#allocation36_spill] sm:$0xff] }
 0x1ca   :  { %5863 = vst [vmem:[#allocation52_spill] sm:$0xff] %v4769_v3  ;;  %v4775_v10 = vadd.f32 %v1286_v14, %v1246_v43  ;;  %v1248_v29 = vpop.f32.mrf.mxu0  ;;  %v5869_v3 = vld [vmem:[#allocation27_spill] sm:$0xff]  ;;  %1626 = vmatpush.msra.mxu2 %v5870_v30  ;;  %1587 = vmatpush.msra.mxu0 %v5871_v0  ;;  %v5873_v43 = vld [vmem:[#allocation32_spill] sm:$0xff] }
 0x1cb   :  { %v2545_v9 = vpop.eup %2544  ;;  %1646 = vmatpush.msra.mxu3 %v5869_v3  ;;  %1607 = vmatpush.msrb.mxu1 %v5872_v21  ;;  %v1249_v14 = vadd.f32 %v1248_v29, %v4666_v25  ;;  %v5875_v3 = vld [vmem:[#allocation35_spill] sm:$0xff] }
 0x1cc   :  { %5866 = vst [vmem:[#allocation53_spill] sm:$0xff] %v4775_v10  ;;  %v1400_v46 = vmul.f32 %v2545_v9, %v1394_v18  ;;  %1627 = vmatpush.msra.mxu2 %v4663_v53  ;;  %1588 = vmatpush.msra.mxu0 %v5874_v54 }
 0x1cd   :  { %1647 = vmatpush.msra.mxu3 %v5873_v43  ;;  %1608 = vmatpush.msrb.mxu1 %v5875_v3 }
 0x1ce   :  { %v1406_v10 = vmul.f32 %v2400_v48, %v1400_v46  ;;  %1628 = vmatpush.msra.mxu2 %v4690_v55  ;;  %1589 = vmatpush.msra.mxu0 %v4673_v61 }
 0x1cf   :  { %v1368_v37 = vpop.f32.mrf.mxu3  ;;  %1648 = vmatpush.msra.mxu3 %v5876_v2  ;;  %1609 = vmatpush.msrb.mxu1 %v4678_v58 }
 0x1d0   :  { %v4791_v18 = vadd.f32 %v1368_v37, %v1328_v35  ;;  %1488 = vmatmul.f32.vlgmr.msrb.gmra.mxu0 %v1406_v10  ;;  %1508 = vmatmul.f32.vlgmr.msra.gmra.mxu1 %v1406_v10  ;;  %v1330_v9 = vpop.f32.mrf.mxu2 }
 0x1d1   :  { %1528 = vmatmul.f32.vlgmr.msrb.gmra.mxu2 %v1406_v10  ;;  %1548 = vmatmul.f32.vlgmr.msrb.gmra.mxu3 %v1406_v10  ;;  %v1289_v43 = vpop.f32.mrf.mxu1  ;;  %v1331_v35 = vadd.f32 %v1330_v9, %v4697_v56  ;;  %v5881_v9 = vld [vmem:[#allocation9_spill] sm:$0xff] }
 0x1d2   :  { %5877 = vst [vmem:[#allocation54_spill] sm:$0xff] %v4791_v18  ;;  %v4793_v21 = vadd.f32 %v1289_v43, %v1249_v14  ;;  %v1251_v46 = vpop.f32.mrf.mxu0  ;;  %1649 = vmatpush.msra.mxu3 %v4685_v11  ;;  %1629 = vmatpush.msra.mxu2 %v4704_v60  ;;  %v5880_v43 = vld [vmem:[#allocation6_spill] sm:$0xff]  ;;  %v5886_v18 = vld [vmem:[#allocation13_spill] sm:$0xff] }
 0x1d3   :  { %1676 = vmatpush.msrb.mxu0 %v4270_v42  ;;  %1696 = vmatpush.msra.mxu1 %v4275_v28  ;;  %v1252_v48 = vadd.f32 %v1251_v46, %v4666_v25 }
 0x1d4   :  { %5878 = vst [vmem:[#allocation55_spill] sm:$0xff] %v4793_v21  ;;  %1716 = vmatpush.msrb.mxu2 %v4311_v41  ;;  %1736 = vmatpush.msrb.mxu3 %v4282_v63 }
 0x1d5   :  { %1677 = vmatpush.msrb.mxu0 %v4293_v36  ;;  %1697 = vmatpush.msra.mxu1 %v4298_v19 }
 0x1d6   :  { %1717 = vmatpush.msrb.mxu2 %v4347_v44  ;;  %1737 = vmatpush.msrb.mxu3 %v5880_v43 }
 0x1d7   :  { %v1371_v29 = vpop.f32.mrf.mxu3  ;;  %1678 = vmatpush.msrb.mxu0 %v4326_v32  ;;  %1698 = vmatpush.msra.mxu1 %v5881_v9 }
 0x1d8   :  { %v4809_v10 = vadd.f32 %v1371_v29, %v1331_v35  ;;  %v1333_v37 = vpop.f32.mrf.mxu2  ;;  %1718 = vmatpush.msrb.mxu2 %v4371_v12  ;;  %1738 = vmatpush.msrb.mxu3 %v4336_v13 }
 0x1d9   :  { %v1292_v14 = vpop.f32.mrf.mxu1  ;;  %1679 = vmatpush.msrb.mxu0 %v4352_v17  ;;  %1699 = vmatpush.msra.mxu1 %v4357_v33  ;;  %v1334_v35 = vadd.f32 %v1333_v37, %v4697_v56 }
 0x1da   :  { %5879 = vst [vmem:[#allocation56_spill] sm:$0xff] %v4809_v10  ;;  %v4815_v46 = vadd.f32 %v1292_v14, %v1252_v48  ;;  %v1254_v21 = vpop.f32.mrf.mxu0  ;;  %1719 = vmatpush.msrb.mxu2 %v4401_v26  ;;  %1739 = vmatpush.msrb.mxu3 %v4366_v16 }
 0x1db   :  { %1680 = vmatpush.msrb.mxu0 %v4381_v8  ;;  %1700 = vmatpush.msra.mxu1 %v4386_v38  ;;  %v1255_v48 = vadd.f32 %v1254_v21, %v4666_v25  ;;  %v5884_v21 = vld [vmem:[#allocation15_spill] sm:$0xff] }
 0x1dc   :  { %5882 = vst [vmem:[#allocation6_spill] sm:$0xff] %v4815_v46  ;;  %1720 = vmatpush.msrb.mxu2 %v4425_v23  ;;  %1740 = vmatpush.msrb.mxu3 %v4391_v52 }
 0x1dd   :  { %1681 = vmatpush.msrb.mxu0 %v4406_v4  ;;  %1701 = vmatpush.msra.mxu1 %v4411_v6 }
 0x1de   :  { %1721 = vmatpush.msrb.mxu2 %v4454_v24  ;;  %1741 = vmatpush.msrb.mxu3 %v4420_v31 }
 0x1df   :  { %v1374_v29 = vpop.f32.mrf.mxu3  ;;  %1682 = vmatpush.msrb.mxu0 %v4434_v5  ;;  %1702 = vmatpush.msra.mxu1 %v4439_v59 }
 0x1e0   :  { %v4831_v37 = vadd.f32 %v1374_v29, %v1334_v35  ;;  %v1336_v46 = vpop.f32.mrf.mxu2  ;;  %1722 = vmatpush.msrb.mxu2 %v5884_v21  ;;  %1742 = vmatpush.msrb.mxu3 %v5886_v18 }
 0x1e1   :  { %v1295_v14 = vpop.f32.mrf.mxu1  ;;  %1683 = vmatpush.msrb.mxu0 %v4459_v51  ;;  %1703 = vmatpush.msra.mxu1 %v4464_v49  ;;  %v1337_v35 = vadd.f32 %v1336_v46, %v4697_v56  ;;  %v5888_v46 = vld [vmem:[#allocation24_spill] sm:$0xff] }
 0x1e2   :  { %5883 = vst [vmem:[#allocation9_spill] sm:$0xff] %v4831_v37  ;;  %v4837_v10 = vadd.f32 %v1295_v14, %v1255_v48  ;;  %1723 = vmatpush.msrb.mxu2 %v4512_v22  ;;  %1743 = vmatpush.msrb.mxu3 %v4471_v62  ;;  %v5889_v14 = vld [vmem:[#allocation20_spill] sm:$0xff]  ;;  %v5891_v37 = vld [vmem:[#allocation22_spill] sm:$0xff] }
 0x1e3   :  { %1684 = vmatpush.msrb.mxu0 %v4485_v47  ;;  %1704 = vmatpush.msra.mxu1 %v4490_v57 }
 0x1e4   :  { %5885 = vst [vmem:[#allocation15_spill] sm:$0xff] %v4837_v10  ;;  %1724 = vmatpush.msrb.mxu2 %v4534_v40  ;;  %1744 = vmatpush.msrb.mxu3 %v4495_v50  ;;  %v5890_v10 = vld [vmem:[#allocation21_spill] sm:$0xff] }
 0x1e5   :  { %1685 = vmatpush.msrb.mxu0 %v4517_v15  ;;  %1705 = vmatpush.msra.mxu1 %v4522_v7 }
 0x1e6   :  { %1725 = vmatpush.msrb.mxu2 %v4546_v45  ;;  %1745 = vmatpush.msrb.mxu3 %v4529_v34 }
 0x1e7   :  { %v1377_v48 = vpop.f32.mrf.mxu3  ;;  %1686 = vmatpush.msrb.mxu0 %v4551_v27  ;;  %1706 = vmatpush.msra.mxu1 %v4556_v20 }
 0x1e8   :  { %v4852_v29 = vadd.f32 %v1377_v48, %v1337_v35  ;;  %1726 = vmatpush.msrb.mxu2 %v5888_v46  ;;  %1746 = vmatpush.msrb.mxu3 %v5889_v14  ;;  %v5892_v35 = vld [vmem:[#allocation25_spill] sm:$0xff]  ;;  %v5893_v48 = vld [vmem:[#allocation26_spill] sm:$0xff] }
 0x1e9   :  { %1687 = vmatpush.msrb.mxu0 %v5890_v10  ;;  %1707 = vmatpush.msra.mxu1 %v5891_v37  ;;  %v5895_v46 = vld [vmem:[#allocation30_spill] sm:$0xff]  ;;  %v5896_v10 = vld [vmem:[#allocation32_spill] sm:$0xff] }
 0x1ea   :  { %5887 = vst [vmem:[#allocation13_spill] sm:$0xff] %v4852_v29  ;;  %1727 = vmatpush.msrb.mxu2 %v4611_v1  ;;  %1747 = vmatpush.msrb.mxu3 %v5865_v39  ;;  %v5894_v29 = vld [vmem:[#allocation27_spill] sm:$0xff] }
 0x1eb   :  { %1688 = vmatpush.msrb.mxu0 %v5892_v35  ;;  %1708 = vmatpush.msra.mxu1 %v5893_v48 }
 0x1ec   :  { %1728 = vmatpush.msrb.mxu2 %v5870_v30  ;;  %1748 = vmatpush.msrb.mxu3 %v5894_v29  ;;  %v5902_v29 = vld [vmem:[#allocation5_spill] sm:$0xff] }
 0x1ed   :  { %1689 = vmatpush.msrb.mxu0 %v5871_v0  ;;  %1709 = vmatpush.msra.mxu1 %v5895_v46  ;;  %v4879_v46 = vpop.f32.mrf.mxu0  ;;  %v5901_v0 = vld [vmem:[#allocation4_spill] sm:$0xff] }
 0x1ee   :  { %1729 = vmatpush.msrb.mxu2 %v4663_v53  ;;  %1749 = vmatpush.msrb.mxu3 %v5896_v10  ;;  %5897 = vst [vmem:[#allocation20_spill] sm:$0xff] %v4879_v46  ;;  %v4881_v53 = vpop.f32.mrf.mxu1  ;;  %v4883_v10 = vpop.f32.mrf.mxu2 }
 0x1ef   :  { %1690 = vmatpush.msrb.mxu0 %v5874_v54  ;;  %1710 = vmatpush.msra.mxu1 %v5875_v3  ;;  %5898 = vst [vmem:[#allocation57_spill] sm:$0xff] %v4881_v53  ;;  %v4885_v54 = vpop.f32.mrf.mxu3  ;;  %v5905_v53 = vld [vmem:[#allocation48_spill] sm:$0xff] }
 0x1f0   :  { %1730 = vmatpush.msrb.mxu2 %v4690_v55  ;;  %1750 = vmatpush.msrb.mxu3 %v5876_v2  ;;  %5899 = vst [vmem:[#allocation58_spill] sm:$0xff] %v4883_v10  ;;  %v5906_v10 = vld [vmem:[#allocation49_spill] sm:$0xff] }
 0x1f1   :  { %1691 = vmatpush.msrb.mxu0 %v4673_v61  ;;  %1711 = vmatpush.msra.mxu1 %v4678_v58  ;;  %5900 = vst [vmem:[#allocation59_spill] sm:$0xff] %v4885_v54  ;;  %v5903_v58 = vld [vmem:[#allocation46_spill] sm:$0xff] }
 0x1f2   :  { %1731 = vmatpush.msrb.mxu2 %v4704_v60  ;;  %1751 = vmatpush.msrb.mxu3 %v4685_v11  ;;  %v1240_v30 = vadd.f32 %v5903_v58, %v4666_v25  ;;  %v5904_v60 = vld [vmem:[#allocation47_spill] sm:$0xff] }
 0x1f3   :  { %v1322_v11 = vadd.f32 %v5904_v60, %v4697_v56 }
 0x1f4   :  { %v1281_v35 = vadd.f32 %v5905_v53, %v1240_v30 }
 0x1f5   :  { %v1363_v39 = vadd.f32 %v5906_v10, %v1322_v11 }
 0x24d   :  { %v1489_v3 = vpop.f32.mrf.mxu0  ;;  %v1509_v55 = vpop.f32.mrf.mxu1 }
 0x24e   :  { %v1552_v2 = vadd.f32 %v1489_v3, %v5901_v0  ;;  %v1553_v61 = vadd.f32 %v1509_v55, %v5902_v29 }
 0x250   :  { %v1556_v48 = vmul.f32 0.5, %v1552_v2  ;;  %v1557_v46 = vmul.f32 0.5, %v1553_v61 }
 0x252   :  { %2546 = vtanh.f32 %v1556_v48  ;;  %v5907_v48 = vld [vmem:[#allocation51_spill] sm:$0xff] }
 0x253   :  { %2548 = vtanh.f32 %v1557_v46  ;;  %v5925_v46 = vld [vmem:[#allocation39_spill] sm:$0xff] }
 0x254   :  { %v1529_v54 = vpop.f32.mrf.mxu2  ;;  %v1549_v1 = vpop.f32.mrf.mxu3 }
 0x255   :  { %v1554_v37 = vadd.f32 %v1529_v54, %v1281_v35  ;;  %v1555_v3 = vadd.f32 %v1549_v1, %v1363_v39  ;;  %v5926_v35 = vld [vmem:[#allocation40_spill] sm:$0xff] }
 0x257   :  { %v1558_v0 = vmul.f32 0.5, %v1554_v37  ;;  %2550 = vtanh.f32 %v1555_v3  ;;  %v5924_v37 = vld [vmem:[#allocation36_spill] sm:$0xff]  ;;  %v5927_v3 = vld [vmem:[#allocation45_spill] sm:$0xff] }
 0x258   :  { %v2547_v55 = vpop.eup %2546 }
 0x259   :  { %v2549_v29 = vpop.eup %2548  ;;  %v1562_v58 = vadd.f32 1.0, %v2547_v55  ;;  %2552 = vtanh.f32 %v1558_v0  ;;  %v5928_v0 = vld [vmem:[#allocation41_spill] sm:$0xff] }
 0x25a   :  { %v1563_v25 = vadd.f32 1.0, %v2549_v29 }
 0x25b   :  { %v1565_v60 = vmul.f32 0.5, %v1562_v58  ;;  %v5929_v58 = vld [vmem:[#allocation7_spill] sm:$0xff] }
 0x25c   :  { %v1566_v2 = vmul.f32 0.5, %v1563_v25  ;;  %v5920_v25 = vld [vmem:[#allocation32_spill] sm:$0xff] }
 0x25d   :  { %v2551_v61 = vpop.eup %2550 }
 0x25e   :  { %v1569_v56 = vmul.f32 %v1566_v2, %v5907_v48  ;;  %v1570_v30 = vmul.f32 %v2551_v61, %v1565_v60  ;;  %v5930_v2 = vld [vmem:[#allocation8_spill] sm:$0xff] }
 0x25f   :  { %v2553_v53 = vpop.eup %2552 }
 0x260   :  { %v4896_v11 = vadd.f32 %v1570_v30, %v1569_v56  ;;  %v1564_v54 = vadd.f32 1.0, %v2553_v53  ;;  %v5921_v56 = vld [vmem:[#allocation34_spill] sm:$0xff] }
 0x262   :  { %2554 = vtanh.f32 %v4896_v11  ;;  %v1567_v1 = vmul.f32 0.5, %v1564_v54 }
 0x268   :  { %v2555_v39 = vpop.eup %2554 }
 0x269   :  { %v1573_v10 = vmul.f32 %v2555_v39, %v1567_v1  ;;  %v5931_v1 = vld [vmem:[#allocation50_spill] sm:$0xff] }
 0x26b   :  { %1590 = vmatmul.f32.vlgmr.msra.gmra.mxu0 %v1573_v10  ;;  %1610 = vmatmul.f32.vlgmr.msrb.gmra.mxu1 %v1573_v10 }
 0x26c   :  { %1630 = vmatmul.f32.vlgmr.msra.gmra.mxu2 %v1573_v10  ;;  %1650 = vmatmul.f32.vlgmr.msra.gmra.mxu3 %v1573_v10  ;;  %v5932_v10 = vld [vmem:[#allocation52_spill] sm:$0xff] }
 0x26d   :  { %1778 = vmatpush.msra.mxu0 %v4270_v42  ;;  %1798 = vmatpush.msrb.mxu1 %v4275_v28  ;;  %v5908_v42 = vld [vmem:[#allocation24_spill] sm:$0xff]  ;;  %v5909_v28 = vld [vmem:[#allocation21_spill] sm:$0xff] }
 0x26e   :  { %1818 = vmatpush.msra.mxu2 %v4311_v41  ;;  %1838 = vmatpush.msra.mxu3 %v4282_v63  ;;  %v5910_v63 = vld [vmem:[#allocation22_spill] sm:$0xff]  ;;  %v5913_v41 = vld [vmem:[#allocation25_spill] sm:$0xff] }
 0x26f   :  { %1779 = vmatpush.msra.mxu0 %v4293_v36  ;;  %1799 = vmatpush.msrb.mxu1 %v4298_v19  ;;  %v5911_v36 = vld [vmem:[#allocation28_spill] sm:$0xff]  ;;  %v5912_v19 = vld [vmem:[#allocation23_spill] sm:$0xff] }
 0x270   :  { %1819 = vmatpush.msra.mxu2 %v4347_v44  ;;  %1839 = vmatpush.msra.mxu3 %v5880_v43  ;;  %v5916_v44 = vld [vmem:[#allocation27_spill] sm:$0xff] }
 0x271   :  { %1780 = vmatpush.msra.mxu0 %v4326_v32  ;;  %1800 = vmatpush.msrb.mxu1 %v5881_v9  ;;  %v5914_v32 = vld [vmem:[#allocation26_spill] sm:$0xff]  ;;  %v5922_v43 = vld [vmem:[#allocation35_spill] sm:$0xff] }
 0x272   :  { %1820 = vmatpush.msra.mxu2 %v4371_v12  ;;  %1840 = vmatpush.msra.mxu3 %v4336_v13  ;;  %v5915_v13 = vld [vmem:[#allocation33_spill] sm:$0xff]  ;;  %v5923_v9 = vld [vmem:[#allocation42_spill] sm:$0xff] }
 0x273   :  { %1781 = vmatpush.msra.mxu0 %v4352_v17  ;;  %1801 = vmatpush.msrb.mxu1 %v4357_v33  ;;  %v5917_v17 = vld [vmem:[#allocation29_spill] sm:$0xff]  ;;  %v5918_v33 = vld [vmem:[#allocation30_spill] sm:$0xff] }
 0x274   :  { %1821 = vmatpush.msra.mxu2 %v4401_v26  ;;  %1841 = vmatpush.msra.mxu3 %v4366_v16  ;;  %v5919_v16 = vld [vmem:[#allocation37_spill] sm:$0xff] }
 0x275   :  { %1782 = vmatpush.msra.mxu0 %v4381_v8  ;;  %1802 = vmatpush.msrb.mxu1 %v4386_v38 }
 0x276   :  { %1822 = vmatpush.msra.mxu2 %v4425_v23  ;;  %1842 = vmatpush.msra.mxu3 %v4391_v52 }
 0x277   :  { %1783 = vmatpush.msra.mxu0 %v4406_v4  ;;  %1803 = vmatpush.msrb.mxu1 %v4411_v6 }
 0x278   :  { %1823 = vmatpush.msra.mxu2 %v4454_v24  ;;  %1843 = vmatpush.msra.mxu3 %v4420_v31 }
 0x279   :  { %1784 = vmatpush.msra.mxu0 %v4434_v5  ;;  %1804 = vmatpush.msrb.mxu1 %v4439_v59 }
 0x27a   :  { %1824 = vmatpush.msra.mxu2 %v5884_v21  ;;  %1844 = vmatpush.msra.mxu3 %v5886_v18 }
 0x27b   :  { %1785 = vmatpush.msra.mxu0 %v4459_v51  ;;  %1805 = vmatpush.msrb.mxu1 %v4464_v49 }
 0x27c   :  { %1825 = vmatpush.msra.mxu2 %v4512_v22  ;;  %1845 = vmatpush.msra.mxu3 %v4471_v62 }
 0x27d   :  { %1786 = vmatpush.msra.mxu0 %v4485_v47  ;;  %1806 = vmatpush.msrb.mxu1 %v4490_v57 }
 0x27e   :  { %1826 = vmatpush.msra.mxu2 %v4534_v40  ;;  %1846 = vmatpush.msra.mxu3 %v4495_v50 }
 0x27f   :  { %1787 = vmatpush.msra.mxu0 %v4517_v15  ;;  %1807 = vmatpush.msrb.mxu1 %v4522_v7 }
 0x280   :  { %1827 = vmatpush.msra.mxu2 %v4546_v45  ;;  %1847 = vmatpush.msra.mxu3 %v4529_v34 }
 0x281   :  { %1788 = vmatpush.msra.mxu0 %v4551_v27  ;;  %1808 = vmatpush.msrb.mxu1 %v4556_v20 }
 0x282   :  { %1828 = vmatpush.msra.mxu2 %v5908_v42  ;;  %1848 = vmatpush.msra.mxu3 %v5889_v14 }
 0x283   :  { %1789 = vmatpush.msra.mxu0 %v5909_v28  ;;  %1809 = vmatpush.msrb.mxu1 %v5910_v63 }
 0x284   :  { %1829 = vmatpush.msra.mxu2 %v5911_v36  ;;  %1849 = vmatpush.msra.mxu3 %v5912_v19 }
 0x285   :  { %1790 = vmatpush.msra.mxu0 %v5913_v41  ;;  %1810 = vmatpush.msrb.mxu1 %v5914_v32 }
 0x286   :  { %1830 = vmatpush.msra.mxu2 %v5915_v13  ;;  %1850 = vmatpush.msra.mxu3 %v5916_v44 }
 0x287   :  { %1791 = vmatpush.msra.mxu0 %v5917_v17  ;;  %1811 = vmatpush.msrb.mxu1 %v5918_v33 }
 0x288   :  { %1831 = vmatpush.msra.mxu2 %v5919_v16  ;;  %1851 = vmatpush.msra.mxu3 %v5920_v25 }
 0x289   :  { %1792 = vmatpush.msra.mxu0 %v5921_v56  ;;  %1812 = vmatpush.msrb.mxu1 %v5922_v43 }
 0x28a   :  { %1832 = vmatpush.msra.mxu2 %v5923_v9  ;;  %1852 = vmatpush.msra.mxu3 %v5924_v37 }
 0x28b   :  { %1793 = vmatpush.msra.mxu0 %v5925_v46  ;;  %1813 = vmatpush.msrb.mxu1 %v5926_v35 }
 0x28c   :  { %1833 = vmatpush.msra.mxu2 %v5927_v3  ;;  %1853 = vmatpush.msra.mxu3 %v5928_v0 }
 0x2e8   :  { %v1591_v55 = vpop.f32.mrf.mxu0  ;;  %v1611_v29 = vpop.f32.mrf.mxu1 }
 0x2e9   :  { %v1654_v60 = vadd.f32 %v1591_v55, %v5929_v58  ;;  %v1655_v61 = vadd.f32 %v1611_v29, %v5930_v2 }
 0x2eb   :  { %v1658_v48 = vmul.f32 0.5, %v1654_v60  ;;  %v1659_v30 = vmul.f32 0.5, %v1655_v61 }
 0x2ed   :  { %2556 = vtanh.f32 %v1658_v48 }
 0x2ee   :  { %2558 = vtanh.f32 %v1659_v30 }
 0x2ef   :  { %v1631_v53 = vpop.f32.mrf.mxu2  ;;  %v1651_v54 = vpop.f32.mrf.mxu3 }
 0x2f0   :  { %v1656_v39 = vadd.f32 %v1631_v53, %v5931_v1  ;;  %v1657_v35 = vadd.f32 %v1651_v54, %v5932_v10  ;;  %v5010_v1 = vld [vmem:[%s5623_s4 + $0x1d0] sm:$0xff]  ;;  %v5022_v10 = vld [vmem:[%s5623_s4 + $0x1a0] sm:$0xff] }
 0x2f2   :  { %v1660_v46 = vmul.f32 0.5, %v1656_v39  ;;  %2560 = vtanh.f32 %v1657_v35  ;;  %v5016_v39 = vld [vmem:[%s5623_s4 + $0x1d8] sm:$0xff] }
 0x2f3   :  { %v2557_v3 = vpop.eup %2556 }
 0x2f4   :  { %v2559_v0 = vpop.eup %2558  ;;  %v1664_v37 = vadd.f32 1.0, %v2557_v3  ;;  %2562 = vtanh.f32 %v1660_v46  ;;  %v4992_v46 = vld [vmem:[%s5623_s4 + $0x1f8] sm:$0xff]  ;;  %v4998_v3 = vld [vmem:[%s5623_s4 + $0x1c0] sm:$0xff] }
 0x2f5   :  { %v1665_v9 = vadd.f32 1.0, %v2559_v0  ;;  %v5004_v0 = vld [vmem:[%s5623_s4 + $0x1c8] sm:$0xff] }
 0x2f6   :  { %v1667_v55 = vmul.f32 0.5, %v1664_v37  ;;  %v4986_v37 = vld [vmem:[%s5623_s4 + $0x1f0] sm:$0xff] }
 0x2f7   :  { %v1668_v58 = vmul.f32 0.5, %v1665_v9  ;;  %v4974_v9 = vld [vmem:[%s5623_s4 + $0x1e0] sm:$0xff] }
 0x2f8   :  { %v2561_v29 = vpop.eup %2560 }
 0x2f9   :  { %v1671_v60 = vmul.f32 %v1668_v58, %v4896_v11  ;;  %v1672_v2 = vmul.f32 %v2561_v29, %v1667_v55  ;;  %v4980_v11 = vld [vmem:[%s5623_s4 + $0x1e8] sm:$0xff]  ;;  %v5035_v58 = vld [vmem:[%s5623_s4 + $0x1b8] sm:$0xff]  ;;  %v5041_v29 = vld [vmem:[%s5623_s4 + $0x180] sm:$0xff] }
 0x2fa   :  { %v2563_v61 = vpop.eup %2562  ;;  %v5028_v55 = vld [vmem:[%s5623_s4 + $0x1a8] sm:$0xff] }
 0x2fb   :  { %v4968_v48 = vadd.f32 %v1672_v2, %v1671_v60  ;;  %v1666_v30 = vadd.f32 1.0, %v2563_v61  ;;  %v5047_v60 = vld [vmem:[%s5623_s4 + $0x188] sm:$0xff]  ;;  %v5178_v61 = vld [vmem:[%s5623_s4 + $0x150] sm:$0xff] }
 0x2fc   :  { %v5172_v2 = vld [vmem:[%s5623_s4 + $0x148] sm:$0xff] }
 0x2fd   :  { %2564 = vtanh.f32 %v4968_v48  ;;  %v1669_v53 = vmul.f32 0.5, %v1666_v30  ;;  %v5190_v30 = vld [vmem:[%s5623_s4 + $0x120] sm:$0xff] }
 0x303   :  { %v2565_v54 = vpop.eup %2564 }
 0x304   :  { %v1675_v35 = vmul.f32 %v2565_v54, %v1669_v53  ;;  %v5196_v53 = vld [vmem:[%s5623_s4 + $0x128] sm:$0xff]  ;;  %v5202_v54 = vld [vmem:[%s5623_s4 + $0x130] sm:$0xff] }
 0x306   :  { %1692 = vmatmul.f32.vlgmr.msrb.gmra.mxu0 %v1675_v35  ;;  %1712 = vmatmul.f32.vlgmr.msra.gmra.mxu1 %v1675_v35 }
 0x307   :  { %1732 = vmatmul.f32.vlgmr.msrb.gmra.mxu2 %v1675_v35  ;;  %1752 = vmatmul.f32.vlgmr.msrb.gmra.mxu3 %v1675_v35  ;;  %v5208_v35 = vld [vmem:[%s5623_s4 + $0x138] sm:$0xff] }
 0x308   :  { %1880 = vmatpush.msrb.mxu0 %v4974_v9  ;;  %1900 = vmatpush.msra.mxu1 %v4980_v11 }
 0x309   :  { %1920 = vmatpush.msrb.mxu2 %v4986_v37  ;;  %1940 = vmatpush.msrb.mxu3 %v4992_v46 }
 0x30a   :  { %1881 = vmatpush.msrb.mxu0 %v4998_v3  ;;  %1901 = vmatpush.msra.mxu1 %v5004_v0 }
 0x30b   :  { %1921 = vmatpush.msrb.mxu2 %v5010_v1  ;;  %1941 = vmatpush.msrb.mxu3 %v5016_v39 }
 0x30c   :  { %1882 = vmatpush.msrb.mxu0 %v5022_v10  ;;  %1902 = vmatpush.msra.mxu1 %v5028_v55 }
 0x30d   :  { %1922 = vmatpush.msrb.mxu2 %v4371_v12  ;;  %1942 = vmatpush.msrb.mxu3 %v5035_v58  ;;  %v5054_v12 = vld [vmem:[%s5623_s4 + $0x198] sm:$0xff] }
 0x30e   :  { %1883 = vmatpush.msrb.mxu0 %v5041_v29  ;;  %1903 = vmatpush.msra.mxu1 %v5047_v60 }
 0x30f   :  { %1923 = vmatpush.msrb.mxu2 %v4401_v26  ;;  %1943 = vmatpush.msrb.mxu3 %v5054_v12  ;;  %v5936_v26 = vld [vmem:[#allocation40_spill] sm:$0xff] }
 0x310   :  { %1884 = vmatpush.msrb.mxu0 %v4381_v8  ;;  %1904 = vmatpush.msra.mxu1 %v4386_v38  ;;  %v5933_v8 = vld [vmem:[#allocation42_spill] sm:$0xff]  ;;  %v5934_v38 = vld [vmem:[#allocation36_spill] sm:$0xff] }
 0x311   :  { %1924 = vmatpush.msrb.mxu2 %v4425_v23  ;;  %1944 = vmatpush.msrb.mxu3 %v4391_v52  ;;  %v5935_v52 = vld [vmem:[#allocation39_spill] sm:$0xff] }
 0x312   :  { %1885 = vmatpush.msrb.mxu0 %v4406_v4  ;;  %1905 = vmatpush.msra.mxu1 %v4411_v6  ;;  %v5937_v4 = vld [vmem:[#allocation45_spill] sm:$0xff] }
 0x313   :  { %1925 = vmatpush.msrb.mxu2 %v4454_v24  ;;  %1945 = vmatpush.msrb.mxu3 %v4420_v31  ;;  %v5938_v6 = vld [vmem:[#allocation41_spill] sm:$0xff]  ;;  %v5940_v24 = vld [vmem:[#allocation11_spill] sm:$0xff] }
 0x314   :  { %1886 = vmatpush.msrb.mxu0 %v4434_v5  ;;  %1906 = vmatpush.msra.mxu1 %v4439_v59  ;;  %v5939_v5 = vld [vmem:[#allocation10_spill] sm:$0xff] }
 0x315   :  { %1926 = vmatpush.msrb.mxu2 %v5884_v21  ;;  %1946 = vmatpush.msrb.mxu3 %v5886_v18 }
 0x316   :  { %1887 = vmatpush.msrb.mxu0 %v4459_v51  ;;  %1907 = vmatpush.msra.mxu1 %v4464_v49 }
 0x317   :  { %1927 = vmatpush.msrb.mxu2 %v4512_v22  ;;  %1947 = vmatpush.msrb.mxu3 %v4471_v62  ;;  %v5942_v22 = vld [vmem:[#allocation54_spill] sm:$0xff] }
 0x318   :  { %1888 = vmatpush.msrb.mxu0 %v4485_v47  ;;  %1908 = vmatpush.msra.mxu1 %v4490_v57 }
 0x319   :  { %1928 = vmatpush.msrb.mxu2 %v4534_v40  ;;  %1948 = vmatpush.msrb.mxu3 %v4495_v50  ;;  %v5941_v50 = vld [vmem:[#allocation53_spill] sm:$0xff] }
 0x31a   :  { %1889 = vmatpush.msrb.mxu0 %v4517_v15  ;;  %1909 = vmatpush.msra.mxu1 %v4522_v7 }
 0x31b   :  { %1929 = vmatpush.msrb.mxu2 %v4546_v45  ;;  %1949 = vmatpush.msrb.mxu3 %v4529_v34 }
 0x31c   :  { %1890 = vmatpush.msrb.mxu0 %v4551_v27  ;;  %1910 = vmatpush.msra.mxu1 %v4556_v20 }
 0x31d   :  { %1930 = vmatpush.msrb.mxu2 %v5908_v42  ;;  %1950 = vmatpush.msrb.mxu3 %v5889_v14 }
 0x31e   :  { %1891 = vmatpush.msrb.mxu0 %v5909_v28  ;;  %1911 = vmatpush.msra.mxu1 %v5910_v63 }
 0x31f   :  { %1931 = vmatpush.msrb.mxu2 %v5911_v36  ;;  %1951 = vmatpush.msrb.mxu3 %v5912_v19 }
 0x320   :  { %1892 = vmatpush.msrb.mxu0 %v5913_v41  ;;  %1912 = vmatpush.msra.mxu1 %v5914_v32 }
 0x321   :  { %1932 = vmatpush.msrb.mxu2 %v5915_v13  ;;  %1952 = vmatpush.msrb.mxu3 %v5916_v44  ;;  %v5126_v44 = vld [vmem:[%s5623_s4 + $0x1b0] sm:$0xff] }
 0x322   :  { %1893 = vmatpush.msrb.mxu0 %v5917_v17  ;;  %1913 = vmatpush.msra.mxu1 %v5918_v33  ;;  %v5135_v17 = vld [vmem:[%s5623_s4 + $0x190] sm:$0xff]  ;;  %v5142_v33 = vld [vmem:[%s5623_s4 + $0x160] sm:$0xff] }
 0x323   :  { %1933 = vmatpush.msrb.mxu2 %v5919_v16  ;;  %1953 = vmatpush.msrb.mxu3 %v5920_v25  ;;  %v5148_v16 = vld [vmem:[%s5623_s4 + $0x168] sm:$0xff]  ;;  %v5154_v25 = vld [vmem:[%s5623_s4 + $0x170] sm:$0xff] }
 0x324   :  { %1894 = vmatpush.msrb.mxu0 %v5921_v56  ;;  %1914 = vmatpush.msra.mxu1 %v5922_v43  ;;  %v5160_v56 = vld [vmem:[%s5623_s4 + $0x178] sm:$0xff]  ;;  %v5166_v43 = vld [vmem:[%s5623_s4 + $0x140] sm:$0xff] }
 0x325   :  { %1934 = vmatpush.msrb.mxu2 %v5933_v8  ;;  %1954 = vmatpush.msrb.mxu3 %v5934_v38  ;;  %v5214_v8 = vld [vmem:[%s5623_s4 + $0x100] sm:$0xff]  ;;  %v5220_v38 = vld [vmem:[%s5623_s4 + $0x108] sm:$0xff] }
 0x326   :  { %1895 = vmatpush.msrb.mxu0 %v5935_v52  ;;  %1915 = vmatpush.msra.mxu1 %v5936_v26  ;;  %v5226_v52 = vld [vmem:[%s5623_s4 + $0x110] sm:$0xff]  ;;  %v5232_v26 = vld [vmem:[%s5623_s4 + $0x118] sm:$0xff] }
 0x327   :  { %1935 = vmatpush.msrb.mxu2 %v5937_v4  ;;  %1955 = vmatpush.msrb.mxu3 %v5938_v6  ;;  %v5238_v4 = vld [vmem:[%s5623_s4 + $0xe0] sm:$0xff]  ;;  %v5244_v6 = vld [vmem:[%s5623_s4 + $0xe8] sm:$0xff] }
 0x383   :  { %v1693_v31 = vpop.f32.mrf.mxu0  ;;  %v1713_v23 = vpop.f32.mrf.mxu1 }
 0x384   :  { %v1756_v59 = vadd.f32 %v1693_v31, %v5939_v5  ;;  %v1757_v51 = vadd.f32 %v1713_v23, %v5940_v24  ;;  %v5250_v31 = vld [vmem:[%s5623_s4 + $0xf0] sm:$0xff]  ;;  %v5256_v23 = vld [vmem:[%s5623_s4 + $0xf8] sm:$0xff]  ;;  %v5262_v5 = vld [vmem:[%s5623_s4 + $0xc0] sm:$0xff] }
 0x385   :  { %v5274_v24 = vld [vmem:[%s5623_s4 + $0xd0] sm:$0xff] }
 0x386   :  { %v1760_v49 = vmul.f32 0.5, %v1756_v59  ;;  %v1761_v62 = vmul.f32 0.5, %v1757_v51  ;;  %v5268_v59 = vld [vmem:[%s5623_s4 + $0xc8] sm:$0xff]  ;;  %v5280_v51 = vld [vmem:[%s5623_s4 + $0xd8] sm:$0xff] }
 0x388   :  { %2566 = vtanh.f32 %v1760_v49  ;;  %v5286_v49 = vld [vmem:[%s5623_s4 + $0xa0] sm:$0xff] }
 0x389   :  { %2568 = vtanh.f32 %v1761_v62  ;;  %v5292_v62 = vld [vmem:[%s5623_s4 + $0xa8] sm:$0xff] }
 0x38a   :  { %v1733_v47 = vpop.f32.mrf.mxu2  ;;  %v1753_v57 = vpop.f32.mrf.mxu3 }
 0x38b   :  { %v1758_v20 = vadd.f32 %v1733_v47, %v5941_v50  ;;  %v1759_v15 = vadd.f32 %v1753_v57, %v5942_v22  ;;  %v5298_v47 = vld [vmem:[%s5623_s4 + $0xb0] sm:$0xff]  ;;  %v5304_v57 = vld [vmem:[%s5623_s4 + $0xb8] sm:$0xff]  ;;  %v5310_v50 = vld [vmem:[%s5623_s4 + $0x80] sm:$0xff] }
 0x38c   :  { %5943 = vst [vmem:[#allocation4_spill] sm:$0xff] %v5310_v50  ;;  %v5322_v22 = vld [vmem:[%s5623_s4 + $0x90] sm:$0xff] }
 0x38d   :  { %v1762_v7 = vmul.f32 0.5, %v1758_v20  ;;  %2570 = vtanh.f32 %v1759_v15  ;;  %v5316_v20 = vld [vmem:[%s5623_s4 + $0x88] sm:$0xff]  ;;  %5945 = vst [vmem:[#allocation46_spill] sm:$0xff] %v5322_v22  ;;  %v5328_v15 = vld [vmem:[%s5623_s4 + $0x98] sm:$0xff] }
 0x38e   :  { %v2567_v34 = vpop.eup %2566  ;;  %5944 = vst [vmem:[#allocation5_spill] sm:$0xff] %v5316_v20 }
 0x38f   :  { %v2569_v40 = vpop.eup %2568  ;;  %v1766_v45 = vadd.f32 1.0, %v2567_v34  ;;  %2572 = vtanh.f32 %v1762_v7  ;;  %5946 = vst [vmem:[#allocation47_spill] sm:$0xff] %v5328_v15  ;;  %v5334_v7 = vld [vmem:[%s5623_s4 + $0x60] sm:$0xff]  ;;  %v5340_v34 = vld [vmem:[%s5623_s4 + $0x68] sm:$0xff] }
 0x390   :  { %v1767_v27 = vadd.f32 1.0, %v2569_v40  ;;  %5947 = vst [vmem:[#allocation48_spill] sm:$0xff] %v5334_v7  ;;  %v5346_v40 = vld [vmem:[%s5623_s4 + $0x70] sm:$0xff] }
 0x391   :  { %v1769_v18 = vmul.f32 0.5, %v1766_v45  ;;  %5948 = vst [vmem:[#allocation49_spill] sm:$0xff] %v5340_v34  ;;  %v5352_v45 = vld [vmem:[%s5623_s4 + $0x78] sm:$0xff] }
 0x392   :  { %v1770_v21 = vmul.f32 0.5, %v1767_v27  ;;  %5949 = vst [vmem:[#allocation51_spill] sm:$0xff] %v5346_v40  ;;  %v5358_v27 = vld [vmem:[%s5623_s4 + $0x40] sm:$0xff] }
 0x393   :  { %v2571_v14 = vpop.eup %2570  ;;  %5950 = vst [vmem:[#allocation24_spill] sm:$0xff] %v5352_v45 }
 0x394   :  { %v1773_v42 = vmul.f32 %v1770_v21, %v4968_v48  ;;  %v1774_v28 = vmul.f32 %v2571_v14, %v1769_v18  ;;  %v5184_v48 = vld [vmem:[%s5623_s4 + $0x158] sm:$0xff]  ;;  %5951 = vst [vmem:[#allocation21_spill] sm:$0xff] %v5358_v27  ;;  %v5364_v18 = vld [vmem:[%s5623_s4 + $0x48] sm:$0xff]  ;;  %v5370_v21 = vld [vmem:[%s5623_s4 + $0x50] sm:$0xff] }
 0x395   :  { %v2573_v63 = vpop.eup %2572  ;;  %5952 = vst [vmem:[#allocation22_spill] sm:$0xff] %v5364_v18  ;;  %v5376_v14 = vld [vmem:[%s5623_s4 + $0x58] sm:$0xff] }
 0x396   :  { %v5110_v36 = vadd.f32 %v1774_v28, %v1773_v42  ;;  %v1768_v19 = vadd.f32 1.0, %v2573_v63  ;;  %5953 = vst [vmem:[#allocation28_spill] sm:$0xff] %v5370_v21  ;;  %v5382_v42 = vld [vmem:[%s5623_s4 + $0x20] sm:$0xff]  ;;  %v5388_v28 = vld [vmem:[%s5623_s4 + $0x28] sm:$0xff]  ;;  %v5394_v63 = vld [vmem:[%s5623_s4 + $0x30] sm:$0xff] }
 0x397   :  { %5954 = vst [vmem:[#allocation23_spill] sm:$0xff] %v5376_v14 }
 0x398   :  { %2574 = vtanh.f32 %v5110_v36  ;;  %v1771_v41 = vmul.f32 0.5, %v1768_v19  ;;  %5955 = vst [vmem:[#allocation25_spill] sm:$0xff] %v5382_v42  ;;  %v5400_v19 = vld [vmem:[%s5623_s4 + $0x38] sm:$0xff] }
 0x399   :  { %5956 = vst [vmem:[#allocation26_spill] sm:$0xff] %v5388_v28 }
 0x39a   :  { %5957 = vst [vmem:[#allocation33_spill] sm:$0xff] %v5394_v63 }
 0x39b   :  { %5958 = vst [vmem:[#allocation27_spill] sm:$0xff] %v5400_v19 }
 0x39e   :  { %v2575_v32 = vpop.eup %2574 }
 0x39f   :  { %v1777_v13 = vmul.f32 %v2575_v32, %v1771_v41  ;;  %v5406_v41 = vld [vmem:[%s5623_s4] sm:$0xff]  ;;  %v5412_v32 = vld [vmem:[%s5623_s4 + $0x8] sm:$0xff] }
 0x3a0   :  { %5959 = vst [vmem:[#allocation29_spill] sm:$0xff] %v5406_v41 }
 0x3a1   :  { %1794 = vmatmul.f32.vlgmr.msra.gmra.mxu0 %v1777_v13  ;;  %1814 = vmatmul.f32.vlgmr.msrb.gmra.mxu1 %v1777_v13  ;;  %5960 = vst [vmem:[#allocation30_spill] sm:$0xff] %v5412_v32 }
 0x3a2   :  { %1834 = vmatmul.f32.vlgmr.msra.gmra.mxu2 %v1777_v13  ;;  %1854 = vmatmul.f32.vlgmr.msra.gmra.mxu3 %v1777_v13  ;;  %v5418_v13 = vld [vmem:[%s5623_s4 + $0x10] sm:$0xff] }
 0x3a3   :  { %1982 = vmatpush.msra.mxu0 %v4974_v9  ;;  %2002 = vmatpush.msrb.mxu1 %v4980_v11  ;;  %5961 = vst [vmem:[#allocation37_spill] sm:$0xff] %v5418_v13 }
 0x3a4   :  { %2022 = vmatpush.msra.mxu2 %v4986_v37  ;;  %2042 = vmatpush.msra.mxu3 %v4992_v46 }
 0x3a5   :  { %1983 = vmatpush.msra.mxu0 %v4998_v3  ;;  %2003 = vmatpush.msrb.mxu1 %v5004_v0 }
 0x3a6   :  { %2023 = vmatpush.msra.mxu2 %v5010_v1  ;;  %2043 = vmatpush.msra.mxu3 %v5016_v39 }
 0x3a7   :  { %1984 = vmatpush.msra.mxu0 %v5022_v10  ;;  %2004 = vmatpush.msrb.mxu1 %v5028_v55 }
 0x3a8   :  { %2024 = vmatpush.msra.mxu2 %v5126_v44  ;;  %2044 = vmatpush.msra.mxu3 %v5035_v58 }
 0x3a9   :  { %1985 = vmatpush.msra.mxu0 %v5041_v29  ;;  %2005 = vmatpush.msrb.mxu1 %v5047_v60 }
 0x3aa   :  { %2025 = vmatpush.msra.mxu2 %v5135_v17  ;;  %2045 = vmatpush.msra.mxu3 %v5054_v12 }
 0x3ab   :  { %1986 = vmatpush.msra.mxu0 %v5142_v33  ;;  %2006 = vmatpush.msrb.mxu1 %v5148_v16 }
 0x3ac   :  { %2026 = vmatpush.msra.mxu2 %v5154_v25  ;;  %2046 = vmatpush.msra.mxu3 %v5160_v56 }
 0x3ad   :  { %1987 = vmatpush.msra.mxu0 %v5166_v43  ;;  %2007 = vmatpush.msrb.mxu1 %v5172_v2 }
 0x3ae   :  { %2027 = vmatpush.msra.mxu2 %v5178_v61  ;;  %2047 = vmatpush.msra.mxu3 %v5184_v48 }
 0x3af   :  { %1988 = vmatpush.msra.mxu0 %v5190_v30  ;;  %2008 = vmatpush.msrb.mxu1 %v5196_v53 }
 0x3b0   :  { %2028 = vmatpush.msra.mxu2 %v5202_v54  ;;  %2048 = vmatpush.msra.mxu3 %v5208_v35 }
 0x3b1   :  { %1989 = vmatpush.msra.mxu0 %v5214_v8  ;;  %2009 = vmatpush.msrb.mxu1 %v5220_v38 }
 0x3b2   :  { %2029 = vmatpush.msra.mxu2 %v5226_v52  ;;  %2049 = vmatpush.msra.mxu3 %v5232_v26 }
 0x3b3   :  { %1990 = vmatpush.msra.mxu0 %v5238_v4  ;;  %2010 = vmatpush.msrb.mxu1 %v5244_v6 }
 0x3b4   :  { %2030 = vmatpush.msra.mxu2 %v5250_v31  ;;  %2050 = vmatpush.msra.mxu3 %v5256_v23 }
 0x3b5   :  { %1991 = vmatpush.msra.mxu0 %v5262_v5  ;;  %2011 = vmatpush.msrb.mxu1 %v5268_v59 }
 0x3b6   :  { %2031 = vmatpush.msra.mxu2 %v5274_v24  ;;  %2051 = vmatpush.msra.mxu3 %v5280_v51 }
 0x3b7   :  { %1992 = vmatpush.msra.mxu0 %v5286_v49  ;;  %2012 = vmatpush.msrb.mxu1 %v5292_v62 }
 0x3b8   :  { %2032 = vmatpush.msra.mxu2 %v5298_v47  ;;  %2052 = vmatpush.msra.mxu3 %v5304_v57 }
 0x3b9   :  { %1993 = vmatpush.msra.mxu0 %v5310_v50  ;;  %2013 = vmatpush.msrb.mxu1 %v5316_v20 }
 0x3ba   :  { %2033 = vmatpush.msra.mxu2 %v5322_v22  ;;  %2053 = vmatpush.msra.mxu3 %v5328_v15 }
 0x3bb   :  { %1994 = vmatpush.msra.mxu0 %v5334_v7  ;;  %2014 = vmatpush.msrb.mxu1 %v5340_v34  ;;  %v5966_v34 = vld [vmem:[#allocation56_spill] sm:$0xff] }
 0x3bc   :  { %2034 = vmatpush.msra.mxu2 %v5346_v40  ;;  %2054 = vmatpush.msra.mxu3 %v5352_v45 }
 0x3bd   :  { %1995 = vmatpush.msra.mxu0 %v5358_v27  ;;  %2015 = vmatpush.msrb.mxu1 %v5364_v18 }
 0x3be   :  { %2035 = vmatpush.msra.mxu2 %v5370_v21  ;;  %2055 = vmatpush.msra.mxu3 %v5376_v14  ;;  %v5964_v14 = vld [vmem:[#allocation14_spill] sm:$0xff] }
 0x3bf   :  { %1996 = vmatpush.msra.mxu0 %v5382_v42  ;;  %2016 = vmatpush.msrb.mxu1 %v5388_v28  ;;  %v5963_v28 = vld [vmem:[#allocation12_spill] sm:$0xff] }
 0x3c0   :  { %2036 = vmatpush.msra.mxu2 %v5394_v63  ;;  %2056 = vmatpush.msra.mxu3 %v5400_v19  ;;  %v5424_v19 = vld [vmem:[%s5623_s4 + $0x18] sm:$0xff] }
 0x3c1   :  { %1997 = vmatpush.msra.mxu0 %v5406_v41  ;;  %2017 = vmatpush.msrb.mxu1 %v5412_v32  ;;  %5962 = vst [vmem:[#allocation32_spill] sm:$0xff] %v5424_v19 }
 0x3c2   :  { %2037 = vmatpush.msra.mxu2 %v5418_v13  ;;  %2057 = vmatpush.msra.mxu3 %v5424_v19  ;;  %v5965_v13 = vld [vmem:[#allocation55_spill] sm:$0xff] }
 0x41e   :  { %v1795_v41 = vpop.f32.mrf.mxu0  ;;  %v1815_v63 = vpop.f32.mrf.mxu1 }
 0x41f   :  { %v1858_v42 = vadd.f32 %v1795_v41, %v5963_v28  ;;  %v1859_v32 = vadd.f32 %v1815_v63, %v5964_v14 }
 0x421   :  { %v1862_v21 = vmul.f32 0.5, %v1858_v42  ;;  %v1863_v18 = vmul.f32 0.5, %v1859_v32  ;;  %v5974_v32 = vld [vmem:[#allocation24_spill] sm:$0xff] }
 0x423   :  { %2576 = vtanh.f32 %v1862_v21 }
 0x424   :  { %2578 = vtanh.f32 %v1863_v18 }
 0x425   :  { %v1835_v27 = vpop.f32.mrf.mxu2  ;;  %v1855_v45 = vpop.f32.mrf.mxu3 }
 0x426   :  { %v1860_v40 = vadd.f32 %v1835_v27, %v5965_v13  ;;  %v1861_v7 = vadd.f32 %v1855_v45, %v5966_v34  ;;  %v5972_v45 = vld [vmem:[#allocation49_spill] sm:$0xff] }
 0x427   :  { %v5975_v13 = vld [vmem:[#allocation21_spill] sm:$0xff] }
 0x428   :  { %v1864_v15 = vmul.f32 0.5, %v1860_v40  ;;  %2580 = vtanh.f32 %v1861_v7 }
 0x429   :  { %v2577_v22 = vpop.eup %2576 }
 0x42a   :  { %v2579_v19 = vpop.eup %2578  ;;  %v1868_v20 = vadd.f32 1.0, %v2577_v22  ;;  %2582 = vtanh.f32 %v1864_v15  ;;  %v5970_v22 = vld [vmem:[#allocation47_spill] sm:$0xff]  ;;  %v5971_v15 = vld [vmem:[#allocation48_spill] sm:$0xff] }
 0x42b   :  { %v1869_v50 = vadd.f32 1.0, %v2579_v19  ;;  %v5973_v19 = vld [vmem:[#allocation51_spill] sm:$0xff] }
 0x42c   :  { %v1871_v28 = vmul.f32 0.5, %v1868_v20  ;;  %v5969_v20 = vld [vmem:[#allocation46_spill] sm:$0xff] }
 0x42d   :  { %v1872_v41 = vmul.f32 0.5, %v1869_v50  ;;  %v5968_v50 = vld [vmem:[#allocation5_spill] sm:$0xff] }
 0x42e   :  { %v2581_v14 = vpop.eup %2580 }
 0x42f   :  { %v1875_v42 = vmul.f32 %v1872_v41, %v5110_v36  ;;  %v1876_v21 = vmul.f32 %v2581_v14, %v1871_v28  ;;  %v5967_v36 = vld [vmem:[#allocation4_spill] sm:$0xff]  ;;  %v5976_v28 = vld [vmem:[#allocation22_spill] sm:$0xff]  ;;  %v5978_v14 = vld [vmem:[#allocation23_spill] sm:$0xff] }
 0x430   :  { %v2583_v18 = vpop.eup %2582  ;;  %v5977_v41 = vld [vmem:[#allocation28_spill] sm:$0xff] }
 0x431   :  { %v5432_v63 = vadd.f32 %v1876_v21, %v1875_v42  ;;  %v1870_v27 = vadd.f32 1.0, %v2583_v18  ;;  %v5979_v42 = vld [vmem:[#allocation25_spill] sm:$0xff]  ;;  %v5980_v21 = vld [vmem:[#allocation26_spill] sm:$0xff] }
 0x432   :  { %v5981_v18 = vld [vmem:[#allocation33_spill] sm:$0xff] }
 0x433   :  { %2584 = vtanh.f32 %v5432_v63  ;;  %v1873_v34 = vmul.f32 0.5, %v1870_v27  ;;  %v5982_v27 = vld [vmem:[#allocation27_spill] sm:$0xff] }
 0x439   :  { %v2585_v40 = vpop.eup %2584 }
 0x43a   :  { %v1879_v7 = vmul.f32 %v2585_v40, %v1873_v34  ;;  %v5983_v34 = vld [vmem:[#allocation29_spill] sm:$0xff]  ;;  %v5984_v40 = vld [vmem:[#allocation30_spill] sm:$0xff] }
 0x43c   :  { %1896 = vmatmul.f32.vlgmr.msrb.gmra.mxu0 %v1879_v7  ;;  %1916 = vmatmul.f32.vlgmr.msra.gmra.mxu1 %v1879_v7 }
 0x43d   :  { %1936 = vmatmul.f32.vlgmr.msrb.gmra.mxu2 %v1879_v7  ;;  %1956 = vmatmul.f32.vlgmr.msrb.gmra.mxu3 %v1879_v7  ;;  %v5985_v7 = vld [vmem:[#allocation37_spill] sm:$0xff] }
 0x43e   :  { %2084 = vmatpush.msrb.mxu0 %v4974_v9  ;;  %2104 = vmatpush.msra.mxu1 %v4980_v11 }
 0x43f   :  { %2124 = vmatpush.msrb.mxu2 %v4986_v37  ;;  %2144 = vmatpush.msrb.mxu3 %v4992_v46 }
 0x440   :  { %2085 = vmatpush.msrb.mxu0 %v4998_v3  ;;  %2105 = vmatpush.msra.mxu1 %v5004_v0 }
 0x441   :  { %2125 = vmatpush.msrb.mxu2 %v5010_v1  ;;  %2145 = vmatpush.msrb.mxu3 %v5016_v39 }
 0x442   :  { %2086 = vmatpush.msrb.mxu0 %v5022_v10  ;;  %2106 = vmatpush.msra.mxu1 %v5028_v55 }
 0x443   :  { %2126 = vmatpush.msrb.mxu2 %v5126_v44  ;;  %2146 = vmatpush.msrb.mxu3 %v5035_v58 }
 0x444   :  { %2087 = vmatpush.msrb.mxu0 %v5041_v29  ;;  %2107 = vmatpush.msra.mxu1 %v5047_v60 }
 0x445   :  { %2127 = vmatpush.msrb.mxu2 %v5135_v17  ;;  %2147 = vmatpush.msrb.mxu3 %v5054_v12 }
 0x446   :  { %2088 = vmatpush.msrb.mxu0 %v5142_v33  ;;  %2108 = vmatpush.msra.mxu1 %v5148_v16 }
 0x447   :  { %2128 = vmatpush.msrb.mxu2 %v5154_v25  ;;  %2148 = vmatpush.msrb.mxu3 %v5160_v56 }
 0x448   :  { %2089 = vmatpush.msrb.mxu0 %v5166_v43  ;;  %2109 = vmatpush.msra.mxu1 %v5172_v2 }
 0x449   :  { %2129 = vmatpush.msrb.mxu2 %v5178_v61  ;;  %2149 = vmatpush.msrb.mxu3 %v5184_v48 }
 0x44a   :  { %2090 = vmatpush.msrb.mxu0 %v5190_v30  ;;  %2110 = vmatpush.msra.mxu1 %v5196_v53 }
 0x44b   :  { %2130 = vmatpush.msrb.mxu2 %v5202_v54  ;;  %2150 = vmatpush.msrb.mxu3 %v5208_v35 }
 0x44c   :  { %2091 = vmatpush.msrb.mxu0 %v5214_v8  ;;  %2111 = vmatpush.msra.mxu1 %v5220_v38 }
 0x44d   :  { %2131 = vmatpush.msrb.mxu2 %v5226_v52  ;;  %2151 = vmatpush.msrb.mxu3 %v5232_v26 }
 0x44e   :  { %2092 = vmatpush.msrb.mxu0 %v5238_v4  ;;  %2112 = vmatpush.msra.mxu1 %v5244_v6 }
 0x44f   :  { %2132 = vmatpush.msrb.mxu2 %v5250_v31  ;;  %2152 = vmatpush.msrb.mxu3 %v5256_v23 }
 0x450   :  { %2093 = vmatpush.msrb.mxu0 %v5262_v5  ;;  %2113 = vmatpush.msra.mxu1 %v5268_v59 }
 0x451   :  { %2133 = vmatpush.msrb.mxu2 %v5274_v24  ;;  %2153 = vmatpush.msrb.mxu3 %v5280_v51 }
 0x452   :  { %2094 = vmatpush.msrb.mxu0 %v5286_v49  ;;  %2114 = vmatpush.msra.mxu1 %v5292_v62 }
 0x453   :  { %2134 = vmatpush.msrb.mxu2 %v5298_v47  ;;  %2154 = vmatpush.msrb.mxu3 %v5304_v57 }
 0x454   :  { %2095 = vmatpush.msrb.mxu0 %v5967_v36  ;;  %2115 = vmatpush.msra.mxu1 %v5968_v50 }
 0x455   :  { %2135 = vmatpush.msrb.mxu2 %v5969_v20  ;;  %2155 = vmatpush.msrb.mxu3 %v5970_v22  ;;  %v5990_v22 = vld [vmem:[#allocation9_spill] sm:$0xff] }
 0x456   :  { %2096 = vmatpush.msrb.mxu0 %v5971_v15  ;;  %2116 = vmatpush.msra.mxu1 %v5972_v45  ;;  %v5989_v15 = vld [vmem:[#allocation6_spill] sm:$0xff] }
 0x457   :  { %2136 = vmatpush.msrb.mxu2 %v5973_v19  ;;  %2156 = vmatpush.msrb.mxu3 %v5974_v32  ;;  %v5987_v32 = vld [vmem:[#allocation16_spill] sm:$0xff]  ;;  %v5988_v19 = vld [vmem:[#allocation17_spill] sm:$0xff] }
 0x458   :  { %2097 = vmatpush.msrb.mxu0 %v5975_v13  ;;  %2117 = vmatpush.msra.mxu1 %v5976_v28  ;;  %v5986_v13 = vld [vmem:[#allocation32_spill] sm:$0xff] }
 0x459   :  { %2137 = vmatpush.msrb.mxu2 %v5977_v41  ;;  %2157 = vmatpush.msrb.mxu3 %v5978_v14 }
 0x45a   :  { %2098 = vmatpush.msrb.mxu0 %v5979_v42  ;;  %2118 = vmatpush.msra.mxu1 %v5980_v21 }
 0x45b   :  { %2138 = vmatpush.msrb.mxu2 %v5981_v18  ;;  %2158 = vmatpush.msrb.mxu3 %v5982_v27 }
 0x45c   :  { %2099 = vmatpush.msrb.mxu0 %v5983_v34  ;;  %2119 = vmatpush.msra.mxu1 %v5984_v40 }
 0x45d   :  { %2139 = vmatpush.msrb.mxu2 %v5985_v7  ;;  %2159 = vmatpush.msrb.mxu3 %v5986_v13 }
 0x4b9   :  { %v1897_v28 = vpop.f32.mrf.mxu0  ;;  %v1917_v41 = vpop.f32.mrf.mxu1 }
 0x4ba   :  { %v1960_v14 = vadd.f32 %v1897_v28, %v5987_v32  ;;  %v1961_v42 = vadd.f32 %v1917_v41, %v5988_v19 }
 0x4bc   :  { %v1964_v45 = vmul.f32 0.5, %v1960_v14  ;;  %v1965_v21 = vmul.f32 0.5, %v1961_v42 }
 0x4be   :  { %2586 = vtanh.f32 %v1964_v45 }
 0x4bf   :  { %2588 = vtanh.f32 %v1965_v21 }
 0x4c0   :  { %v1937_v18 = vpop.f32.mrf.mxu2  ;;  %v1957_v27 = vpop.f32.mrf.mxu3 }
 0x4c1   :  { %v1962_v34 = vadd.f32 %v1937_v18, %v5989_v15  ;;  %v1963_v40 = vadd.f32 %v1957_v27, %v5990_v22 }
 0x4c3   :  { %v1966_v20 = vmul.f32 0.5, %v1962_v34  ;;  %2590 = vtanh.f32 %v1963_v40 }
 0x4c4   :  { %v2587_v7 = vpop.eup %2586 }
 0x4c5   :  { %v2589_v13 = vpop.eup %2588  ;;  %v1970_v50 = vadd.f32 1.0, %v2587_v7  ;;  %2592 = vtanh.f32 %v1966_v20  ;;  %v6015_v7 = vld [vmem:[#allocation31_spill] sm:$0xff] }
 0x4c6   :  { %v1971_v36 = vadd.f32 1.0, %v2589_v13 }
 0x4c7   :  { %v1973_v32 = vmul.f32 0.5, %v1970_v50 }
 0x4c8   :  { %v1974_v28 = vmul.f32 0.5, %v1971_v36 }
 0x4c9   :  { %v2591_v19 = vpop.eup %2590 }
 0x4ca   :  { %v1977_v41 = vmul.f32 %v1974_v28, %v5432_v63  ;;  %v1978_v45 = vmul.f32 %v2591_v19, %v1973_v32  ;;  %v6016_v28 = vld [vmem:[#allocation43_spill] sm:$0xff] }
 0x4cb   :  { %v2593_v14 = vpop.eup %2592 }
 0x4cc   :  { %v5504_v42 = vadd.f32 %v1978_v45, %v1977_v41  ;;  %v1972_v15 = vadd.f32 1.0, %v2593_v14  ;;  %v6017_v41 = vld [vmem:[#allocation38_spill] sm:$0xff]  ;;  %v6018_v45 = vld [vmem:[#allocation20_spill] sm:$0xff] }
 0x4cd   :  { %v1258_v14 = vadd.f32 %v6018_v45, %v6017_v41 }
 0x4ce   :  { %2594 = vtanh.f32 %v5504_v42  ;;  %v1975_v22 = vmul.f32 0.5, %v1972_v15  ;;  %v6020_v15 = vld [vmem:[#allocation58_spill] sm:$0xff] }
 0x4d4   :  { %v2595_v21 = vpop.eup %2594 }
 0x4d5   :  { %v1981_v18 = vmul.f32 %v2595_v21, %v1975_v22 }
 0x4d7   :  { %1998 = vmatmul.f32.vlgmr.msra.gmra.mxu0 %v1981_v18  ;;  %2018 = vmatmul.f32.vlgmr.msrb.gmra.mxu1 %v1981_v18 }
 0x4d8   :  { %2038 = vmatmul.f32.vlgmr.msra.gmra.mxu2 %v1981_v18  ;;  %2058 = vmatmul.f32.vlgmr.msra.gmra.mxu3 %v1981_v18 }
 0x4d9   :  { %2186 = vmatpush.msra.mxu0 %v4974_v9  ;;  %2206 = vmatpush.msrb.mxu1 %v4980_v11  ;;  %v5991_v9 = vld [vmem:[#allocation4_spill] sm:$0xff]  ;;  %v5992_v11 = vld [vmem:[#allocation5_spill] sm:$0xff] }
 0x4da   :  { %2226 = vmatpush.msra.mxu2 %v4986_v37  ;;  %2246 = vmatpush.msra.mxu3 %v4992_v46  ;;  %v5993_v37 = vld [vmem:[#allocation46_spill] sm:$0xff]  ;;  %v5994_v46 = vld [vmem:[#allocation47_spill] sm:$0xff] }
 0x4db   :  { %2187 = vmatpush.msra.mxu0 %v4998_v3  ;;  %2207 = vmatpush.msrb.mxu1 %v5004_v0  ;;  %v5995_v3 = vld [vmem:[#allocation48_spill] sm:$0xff]  ;;  %v5996_v0 = vld [vmem:[#allocation49_spill] sm:$0xff] }
 0x4dc   :  { %2227 = vmatpush.msra.mxu2 %v5010_v1  ;;  %2247 = vmatpush.msra.mxu3 %v5016_v39  ;;  %v5997_v1 = vld [vmem:[#allocation51_spill] sm:$0xff]  ;;  %v5998_v39 = vld [vmem:[#allocation24_spill] sm:$0xff] }
 0x4dd   :  { %2188 = vmatpush.msra.mxu0 %v5022_v10  ;;  %2208 = vmatpush.msrb.mxu1 %v5028_v55  ;;  %v5999_v10 = vld [vmem:[#allocation21_spill] sm:$0xff]  ;;  %v6000_v55 = vld [vmem:[#allocation22_spill] sm:$0xff] }
 0x4de   :  { %2228 = vmatpush.msra.mxu2 %v5126_v44  ;;  %2248 = vmatpush.msra.mxu3 %v5035_v58  ;;  %v6001_v58 = vld [vmem:[#allocation28_spill] sm:$0xff]  ;;  %v6005_v44 = vld [vmem:[#allocation33_spill] sm:$0xff] }
 0x4df   :  { %2189 = vmatpush.msra.mxu0 %v5041_v29  ;;  %2209 = vmatpush.msrb.mxu1 %v5047_v60  ;;  %v6002_v29 = vld [vmem:[#allocation23_spill] sm:$0xff]  ;;  %v6003_v60 = vld [vmem:[#allocation25_spill] sm:$0xff] }
 0x4e0   :  { %2229 = vmatpush.msra.mxu2 %v5135_v17  ;;  %2249 = vmatpush.msra.mxu3 %v5054_v12  ;;  %v6004_v12 = vld [vmem:[#allocation26_spill] sm:$0xff]  ;;  %v6006_v17 = vld [vmem:[#allocation27_spill] sm:$0xff] }
 0x4e1   :  { %2190 = vmatpush.msra.mxu0 %v5142_v33  ;;  %2210 = vmatpush.msrb.mxu1 %v5148_v16  ;;  %v6007_v33 = vld [vmem:[#allocation29_spill] sm:$0xff]  ;;  %v6008_v16 = vld [vmem:[#allocation30_spill] sm:$0xff] }
 0x4e2   :  { %2230 = vmatpush.msra.mxu2 %v5154_v25  ;;  %2250 = vmatpush.msra.mxu3 %v5160_v56  ;;  %v6009_v25 = vld [vmem:[#allocation37_spill] sm:$0xff]  ;;  %v6010_v56 = vld [vmem:[#allocation32_spill] sm:$0xff] }
 0x4e3   :  { %2191 = vmatpush.msra.mxu0 %v5166_v43  ;;  %2211 = vmatpush.msrb.mxu1 %v5172_v2 }
 0x4e4   :  { %2231 = vmatpush.msra.mxu2 %v5178_v61  ;;  %2251 = vmatpush.msra.mxu3 %v5184_v48  ;;  %v6011_v61 = vld [vmem:[#allocation18_spill] sm:$0xff] }
 0x4e5   :  { %2192 = vmatpush.msra.mxu0 %v5190_v30  ;;  %2212 = vmatpush.msrb.mxu1 %v5196_v53  ;;  %v6012_v30 = vld [vmem:[#allocation19_spill] sm:$0xff] }
 0x4e6   :  { %2232 = vmatpush.msra.mxu2 %v5202_v54  ;;  %2252 = vmatpush.msra.mxu3 %v5208_v35 }
 0x4e7   :  { %2193 = vmatpush.msra.mxu0 %v5214_v8  ;;  %2213 = vmatpush.msrb.mxu1 %v5220_v38 }
 0x4e8   :  { %2233 = vmatpush.msra.mxu2 %v5226_v52  ;;  %2253 = vmatpush.msra.mxu3 %v5232_v26  ;;  %v6013_v52 = vld [vmem:[#allocation15_spill] sm:$0xff] }
 0x4e9   :  { %2194 = vmatpush.msra.mxu0 %v5238_v4  ;;  %2214 = vmatpush.msrb.mxu1 %v5244_v6  ;;  %v6014_v4 = vld [vmem:[#allocation13_spill] sm:$0xff] }
 0x4ea   :  { %2234 = vmatpush.msra.mxu2 %v5250_v31  ;;  %2254 = vmatpush.msra.mxu3 %v5256_v23 }
 0x4eb   :  { %2195 = vmatpush.msra.mxu0 %v5262_v5  ;;  %2215 = vmatpush.msrb.mxu1 %v5268_v59 }
 0x4ec   :  { %2235 = vmatpush.msra.mxu2 %v5274_v24  ;;  %2255 = vmatpush.msra.mxu3 %v5280_v51 }
 0x4ed   :  { %2196 = vmatpush.msra.mxu0 %v5286_v49  ;;  %2216 = vmatpush.msrb.mxu1 %v5292_v62 }
 0x4ee   :  { %2236 = vmatpush.msra.mxu2 %v5298_v47  ;;  %2256 = vmatpush.msra.mxu3 %v5304_v57 }
 0x4ef   :  { %2197 = vmatpush.msra.mxu0 %v5991_v9  ;;  %2217 = vmatpush.msrb.mxu1 %v5992_v11  ;;  %v6021_v9 = vld [vmem:[#allocation57_spill] sm:$0xff] }
 0x4f0   :  { %2237 = vmatpush.msra.mxu2 %v5993_v37  ;;  %2257 = vmatpush.msra.mxu3 %v5994_v46  ;;  %v1299_v11 = vadd.f32 %v6021_v9, %v1258_v14  ;;  %v6022_v37 = vld [vmem:[#allocation59_spill] sm:$0xff] }
 0x4f1   :  { %2198 = vmatpush.msra.mxu0 %v5995_v3  ;;  %2218 = vmatpush.msrb.mxu1 %v5996_v0 }
 0x4f2   :  { %2238 = vmatpush.msra.mxu2 %v5997_v1  ;;  %2258 = vmatpush.msra.mxu3 %v5998_v39 }
 0x4f3   :  { %2199 = vmatpush.msra.mxu0 %v5999_v10  ;;  %2219 = vmatpush.msrb.mxu1 %v6000_v55 }
 0x4f4   :  { %2239 = vmatpush.msra.mxu2 %v6001_v58  ;;  %2259 = vmatpush.msra.mxu3 %v6002_v29 }
 0x4f5   :  { %2200 = vmatpush.msra.mxu0 %v6003_v60  ;;  %2220 = vmatpush.msrb.mxu1 %v6004_v12 }
 0x4f6   :  { %2240 = vmatpush.msra.mxu2 %v6005_v44  ;;  %2260 = vmatpush.msra.mxu3 %v6006_v17 }
 0x4f7   :  { %2201 = vmatpush.msra.mxu0 %v6007_v33  ;;  %2221 = vmatpush.msrb.mxu1 %v6008_v16 }
 0x4f8   :  { %2241 = vmatpush.msra.mxu2 %v6009_v25  ;;  %2261 = vmatpush.msra.mxu3 %v6010_v56 }
 0x554   :  { %v1999_v43 = vpop.f32.mrf.mxu0  ;;  %v2019_v2 = vpop.f32.mrf.mxu1 }
 0x555   :  { %v2062_v48 = vadd.f32 %v1999_v43, %v6011_v61  ;;  %v2063_v53 = vadd.f32 %v2019_v2, %v6012_v30  ;;  %v2295_v30 = vld [vmem:[%s5624_s6 + $0x38] sm:$0xff] }
 0x557   :  { %v2066_v54 = vmul.f32 0.5, %v2062_v48  ;;  %v2067_v35 = vmul.f32 0.5, %v2063_v53  ;;  %v2294_v53 = vld [vmem:[%s5624_s6 + $0x30] sm:$0xff] }
 0x559   :  { %2596 = vtanh.f32 %v2066_v54 }
 0x55a   :  { %2598 = vtanh.f32 %v2067_v35 }
 0x55b   :  { %v2039_v8 = vpop.f32.mrf.mxu2  ;;  %v2059_v38 = vpop.f32.mrf.mxu3 }
 0x55c   :  { %v2064_v26 = vadd.f32 %v2039_v8, %v6013_v52  ;;  %v2065_v6 = vadd.f32 %v2059_v38, %v6014_v4  ;;  %v2293_v8 = vld [vmem:[%s5624_s6 + $0x28] sm:$0xff]  ;;  %v6023_v38 = vld [vmem:[#allocation2_spill] sm:$0xff] }
 0x55e   :  { %v2068_v31 = vmul.f32 0.5, %v2064_v26  ;;  %2600 = vtanh.f32 %v2065_v6  ;;  %v6024_v26 = vld [vmem:[#allocation3_spill] sm:$0xff]  ;;  %v2292_v6 = vld [vmem:[%s5624_s6 + $0x20] sm:$0xff] }
 0x55f   :  { %v2597_v23 = vpop.eup %2596 }
 0x560   :  { %v2599_v5 = vpop.eup %2598  ;;  %v2072_v59 = vadd.f32 1.0, %v2597_v23  ;;  %2602 = vtanh.f32 %v2068_v31 }
 0x561   :  { %v2073_v24 = vadd.f32 1.0, %v2599_v5  ;;  %v2291_v5 = vld [vmem:[%s5624_s6 + $0x18] sm:$0xff] }
 0x562   :  { %v2075_v51 = vmul.f32 0.5, %v2072_v59  ;;  %v2290_v59 = vld [vmem:[%s5624_s6 + $0x10] sm:$0xff] }
 0x563   :  { %v2076_v49 = vmul.f32 0.5, %v2073_v24 }
 0x564   :  { %v2601_v62 = vpop.eup %2600 }
 0x565   :  { %v2079_v47 = vmul.f32 %v2076_v49, %v5504_v42  ;;  %v2080_v57 = vmul.f32 %v2601_v62, %v2075_v51  ;;  %v6019_v42 = vld [vmem:[#allocation44_spill] sm:$0xff] }
 0x566   :  { %v2603_v63 = vpop.eup %2602  ;;  %v1340_v22 = vadd.f32 %v6020_v15, %v6019_v42 }
 0x567   :  { %v2081_v36 = vadd.f32 %v2080_v57, %v2079_v47  ;;  %v2074_v50 = vadd.f32 1.0, %v2603_v63  ;;  %v2289_v47 = vld [vmem:[%s5624_s6 + $0x8] sm:$0xff] }
 0x568   :  { %v1381_v46 = vadd.f32 %v6022_v37, %v1340_v22  ;;  %v2407_v22 = vld [vmem:[%s5625_s7] ss:$0 sm:$0xff] }
 0x569   :  { %2604 = vtanh.f32 %v2081_v36  ;;  %v2077_v20 = vmul.f32 0.5, %v2074_v50 }
 0x56f   :  { %v2605_v13 = vpop.eup %2604 }
 0x570   :  { %v2083_v27 = vmul.f32 %v2605_v13, %v2077_v20 }
 0x572   :  { %2100 = vmatmul.f32.vlgmr.msrb.gmra.mxu0 %v2083_v27  ;;  %2120 = vmatmul.f32.vlgmr.msra.gmra.mxu1 %v2083_v27 }
 0x573   :  { %2140 = vmatmul.f32.vlgmr.msrb.gmra.mxu2 %v2083_v27  ;;  %2160 = vmatmul.f32.vlgmr.msrb.gmra.mxu3 %v2083_v27 }
 0x574   :  { %2314 = vmatpush.msrb.mxu0 %v2295_v30 }
 0x576   :  { %2315 = vmatpush.msrb.mxu0 %v2294_v53 }
 0x578   :  { %2316 = vmatpush.msrb.mxu0 %v2293_v8 }
 0x57a   :  { %2317 = vmatpush.msrb.mxu0 %v2292_v6 }
 0x57c   :  { %2318 = vmatpush.msrb.mxu0 %v2291_v5 }
 0x57e   :  { %2319 = vmatpush.msrb.mxu0 %v2290_v59 }
 0x580   :  { %2320 = vmatpush.msrb.mxu0 %v2289_v47 }
 0x5ef   :  { %v2101_v34 = vpop.f32.mrf.mxu0  ;;  %v2121_v40 = vpop.f32.mrf.mxu1 }
 0x5f0   :  { %v2164_v32 = vadd.f32 %v2101_v34, %v6015_v7  ;;  %v2165_v19 = vadd.f32 %v2121_v40, %v6016_v28 }
 0x5f2   :  { %v2168_v21 = vmul.f32 0.5, %v2164_v32  ;;  %v2169_v18 = vmul.f32 0.5, %v2165_v19 }
 0x5f4   :  { %2606 = vtanh.f32 %v2168_v21 }
 0x5f5   :  { %2608 = vtanh.f32 %v2169_v18 }
 0x5f6   :  { %v2141_v3 = vpop.f32.mrf.mxu2  ;;  %v2161_v0 = vpop.f32.mrf.mxu3 }
 0x5f7   :  { %v2166_v1 = vadd.f32 %v2141_v3, %v1299_v11  ;;  %v2167_v39 = vadd.f32 %v2161_v0, %v1381_v46 }
 0x5f9   :  { %v2170_v10 = vmul.f32 0.5, %v2166_v1  ;;  %2610 = vtanh.f32 %v2167_v39 }
 0x5fa   :  { %v2607_v55 = vpop.eup %2606 }
 0x5fb   :  { %v2609_v58 = vpop.eup %2608  ;;  %v2174_v29 = vadd.f32 1.0, %v2607_v55  ;;  %2612 = vtanh.f32 %v2170_v10 }
 0x5fc   :  { %v2175_v60 = vadd.f32 1.0, %v2609_v58 }
 0x5fd   :  { %v2177_v12 = vmul.f32 0.5, %v2174_v29 }
 0x5fe   :  { %v2178_v44 = vmul.f32 0.5, %v2175_v60 }
 0x5ff   :  { %v2611_v17 = vpop.eup %2610 }
 0x600   :  { %v2181_v33 = vmul.f32 %v2178_v44, %v2081_v36  ;;  %v2182_v16 = vmul.f32 %v2611_v17, %v2177_v12 }
 0x601   :  { %v2613_v25 = vpop.eup %2612 }
 0x602   :  { %v2183_v56 = vadd.f32 %v2182_v16, %v2181_v33  ;;  %v2176_v43 = vadd.f32 1.0, %v2613_v25 }
 0x604   :  { %2614 = vtanh.f32 %v2183_v56  ;;  %v2179_v2 = vmul.f32 0.5, %v2176_v43 }
 0x60a   :  { %v2615_v61 = vpop.eup %2614 }
 0x60b   :  { %v2185_v48 = vmul.f32 %v2615_v61, %v2179_v2 }
 0x60d   :  { %2202 = vmatmul.f32.vlgmr.msra.gmra.mxu0 %v2185_v48  ;;  %2222 = vmatmul.f32.vlgmr.msrb.gmra.mxu1 %v2185_v48 }
 0x60e   :  { %2242 = vmatmul.f32.vlgmr.msra.gmra.mxu2 %v2185_v48  ;;  %2262 = vmatmul.f32.vlgmr.msra.gmra.mxu3 %v2185_v48 }
 0x68a   :  { %v2203_v54 = vpop.f32.mrf.mxu0  ;;  %v2223_v35 = vpop.f32.mrf.mxu1 }
 0x68b   :  { %v2266_v52 = vadd.f32 %v2203_v54, %v6023_v38  ;;  %v2267_v4 = vadd.f32 %v2223_v35, %v6024_v26 }
 0x68d   :  { %v2270_v31 = vmul.f32 0.5, %v2266_v52  ;;  %v2271_v23 = vmul.f32 0.5, %v2267_v4 }
 0x68f   :  { %2616 = vtanh.f32 %v2270_v31 }
 0x690   :  { %2618 = vtanh.f32 %v2271_v23 }
 0x691   :  { %v2243_v24 = vpop.f32.mrf.mxu2  ;;  %v2263_v51 = vpop.f32.mrf.mxu3 }
 0x692   :  { %v2268_v49 = vadd.f32 %v2243_v24, %v6017_v41  ;;  %v2269_v62 = vadd.f32 %v2263_v51, %v6019_v42  ;;  %v2288_v42 = vld [vmem:[%s5624_s6] sm:$0xff] }
 0x693   :  { %2321 = vmatpush.msrb.mxu0 %v2288_v42 }
 0x694   :  { %v2272_v57 = vmul.f32 0.5, %v2268_v49  ;;  %2620 = vtanh.f32 %v2269_v62 }
 0x695   :  { %v2617_v63 = vpop.eup %2616 }
 0x696   :  { %v2619_v36 = vpop.eup %2618  ;;  %v2276_v50 = vadd.f32 1.0, %v2617_v63  ;;  %2622 = vtanh.f32 %v2272_v57 }
 0x697   :  { %v2277_v20 = vadd.f32 1.0, %v2619_v36 }
 0x698   :  { %v2279_v13 = vmul.f32 0.5, %v2276_v50 }
 0x699   :  { %v2280_v27 = vmul.f32 0.5, %v2277_v20 }
 0x69a   :  { %v2621_v34 = vpop.eup %2620 }
 0x69b   :  { %v2283_v40 = vmul.f32 %v2280_v27, %v2183_v56  ;;  %v2284_v7 = vmul.f32 %v2621_v34, %v2279_v13 }
 0x69c   :  { %v2623_v32 = vpop.eup %2622 }
 0x69d   :  { %v2285_v28 = vadd.f32 %v2284_v7, %v2283_v40  ;;  %v2278_v19 = vadd.f32 1.0, %v2623_v32 }
 0x69f   :  { %2624 = vtanh.f32 %v2285_v28  ;;  %v2281_v41 = vmul.f32 0.5, %v2278_v19 }
 0x6a5   :  { %v2625_v45 = vpop.eup %2624 }
 0x6a6   :  { %v2287_v14 = vmul.f32 %v2625_v45, %v2281_v41 }
 0x6a8   :  { %2301 = vrot.lane.b32.xlu0 %v2287_v14, %s2691_s9 }
 0x71a   :  { %v2302_v15 = vpop.permute.xlu0 %2301 }
 0x71b   :  { %2401 = vmatmul.msk.f32.vlgmr.msrb.gmra.mxu0 %vm2303_vm3, %v2302_v15 }
 0x798   :  { %v2323_v21 = vpop.f32.mrf.mxu0 }
 0x799   :  { %v2324_v18 = vadd.f32 %v2407_v22, %v2323_v21 }
 0x79b   :  { %2327 = vst.msk [vmem:[%s5626_s8] sm:$0xff] %vm2326_vm4, %v2324_v18 }

</bundles_post_ra>
